<compile_context>
chip_gen: v6e
topology: v6e:2x2x1
jax: 0.10.0
libtpu: 0.0.40
codegen_flags: <defaults>
</compile_context>

<pallas_src>
import functools
import math

import numpy as np
import jax
import jax.numpy as jnp
from jax import lax
from jax.experimental import pallas as pl
from jax.experimental.pallas import tpu as pltpu

LN_EPS = 1e-5            # torch.nn.LayerNorm default
_MASK_NEG = -1e30        # additive mask for cross-group attention entries (kept in f32)
_MXU_DTYPE = jnp.bfloat16  # MXU-native operand dtype; accumulation stays f32


# ----------------------------------------------------------------------------
# In-kernel math helpers
# ----------------------------------------------------------------------------
def _erf_approx(x):
    # Abramowitz & Stegun 7.1.26, |abs err| < 1.5e-7 -> matches torch's exact-erf GELU in f32.
    a1, a2, a3, a4, a5 = 0.254829592, -0.284496736, 1.421413741, -1.453152027, 1.061405429
    p = 0.3275911
    sgn = jnp.where(x >= 0.0, 1.0, -1.0)
    ax = jnp.abs(x)
    t = 1.0 / (1.0 + p * ax)
    poly = ((((a5 * t + a4) * t + a3) * t + a2) * t + a1) * t
    return sgn * (1.0 - poly * jnp.exp(-ax * ax))


def _gelu_exact(x):
    # TODO(synk): torch nn.GELU() uses exact erf; lax.erf has no guaranteed Mosaic lowering, so a
    # <1.5e-7-accurate rational approximation is used in-kernel (f32).
    return 0.5 * x * (1.0 + _erf_approx(x * 0.7071067811865476))


def _mxu(x):
    return x.astype(_MXU_DTYPE)


def _layernorm(x, g_ref, b_ref):
    mu = jnp.mean(x, axis=-1, keepdims=True)
    var = jnp.mean(jnp.square(x - mu), axis=-1, keepdims=True)
    return (x - mu) * lax.rsqrt(var + LN_EPS) * g_ref[...] + b_ref[...]


def _mlp(x, w1_ref, b1_ref, w2_ref, b2_ref):
    # bf16 operands on the MXU, f32 accumulation, GELU in f32.
    h = jnp.dot(_mxu(x), w1_ref[...], preferred_element_type=jnp.float32) + b1_ref[...]
    h = _gelu_exact(h)
    return jnp.dot(_mxu(h), w2_ref[...], preferred_element_type=jnp.float32) + b2_ref[...]


def _group_bias(qg_ref, kg_ref):
    """Rebuild the 0 / -1e30 block-diagonal bias in-kernel from tiny int32 group-id vectors
    ((Rq,1) vs (1,Rk)), instead of DMA-ing a Rq*Rk f32 mask."""
    return jnp.where(qg_ref[...] == kg_ref[...], 0.0, _MASK_NEG).astype(jnp.float32)


def _mha_masked(q_rows, kv_rows, bias, p, n_heads):
    """Multi-head attention over whole row-blocks; `bias` (0 / -1e30) restricts each query row to
    its own group's keys (== independent per-slice attention, batched into big MXU matmuls).
    Q/K/V and output projections are head-fused; only the score/AV step slices per head."""
    wq, bq, wk, bk, wv, bv, wo, bo = p        # wq/wk/wv: (d, H*E) bf16, wo: (H*E, d) bf16, biases f32
    he = wq.shape[-1]
    e = he // n_heads
    scale = 1.0 / math.sqrt(e)                # FullAttention: scale = 1/sqrt(d_keys)
    q16, kv16 = _mxu(q_rows), _mxu(kv_rows)
    q = jnp.dot(q16, wq[...], preferred_element_type=jnp.float32) + bq[...]
    k = jnp.dot(kv16, wk[...], preferred_element_type=jnp.float32) + bk[...]
    v = jnp.dot(kv16, wv[...], preferred_element_type=jnp.float32) + bv[...]
    ctx = []
    for h in range(n_heads):                  # n_heads tiny & static; only (Rq,Rk) scores live per head
        sl = slice(h * e, (h + 1) * e)
        s = lax.dot_general(_mxu(q[:, sl]), _mxu(k[:, sl]), (((1,), (1,)), ((), ())),
                            preferred_element_type=jnp.float32) * scale + bias   # mask add in f32
        m = jnp.max(s, axis=-1, keepdims=True)
        ex = jnp.exp(s - m)
        a = ex * pl.reciprocal(jnp.sum(ex, axis=-1, keepdims=True), approx=True)  # EUP reciprocal
        ctx.append(jnp.dot(_mxu(a), _mxu(v[:, sl]), preferred_element_type=jnp.float32))
    o = ctx[0] if n_heads == 1 else jnp.concatenate(ctx, axis=-1)
    return jnp.dot(_mxu(o), wo[...], preferred_element_type=jnp.float32) + bo[...]


# ----------------------------------------------------------------------------
# Fused kernels (one grid step == a block of slices; everything stays in VMEM)
# ----------------------------------------------------------------------------
def _tsa_time_kernel(x_ref, qg_ref, kg_ref,
                     wq, bq, wk, bk, wv, bv, wo, bo,
                     g1, be1, w1, b1, w2, b2, g2, be2,
                     o_ref, *, n_heads):
    xf = x_ref[0]                                     # (bb*seg, d), rows grouped by slice
    bias = _group_bias(qg_ref, kg_ref)
    attn = _mha_masked(xf, xf, bias, (wq, bq, wk, bk, wv, bv, wo, bo), n_heads)
    y = _layernorm(xf + attn, g1, be1)
    y = _layernorm(y + _mlp(y, w1, b1, w2, b2), g2, be2)
    o_ref[0] = y


def _tsa_dim_kernel(x_ref, r_ref, sq_ref, sk_ref, rq_ref, rk_ref,
                    s_wq, s_bq, s_wk, s_bk, s_wv, s_bv, s_wo, s_bo,
                    r_wq, r_bq, r_wk, r_bk, r_wv, r_bv, r_wo, r_bo,
                    g3, be3, w1, b1, w2, b2, g4, be4,
                    o_ref, *, n_heads):
    # One batch element per step: all ts_d*seg tokens, kept in time-major row order r = t*seg+s.
    # The (b ts_d) seg -> (b seg) ts_d rearrange of the reference is realised by the grouping
    # bias (group = r % seg), so no transpose or b-times-replicated router is materialised.
    send = x_ref[0]                                   # (ts_d*seg, d)
    router = r_ref[...]                               # (seg*factor, d)  -- shared across batch
    buf = _mha_masked(router, send, _group_bias(sq_ref, sk_ref),
                      (s_wq, s_bq, s_wk, s_bk, s_wv, s_bv, s_wo, s_bo), n_heads)
    recv = _mha_masked(send, buf, _group_bias(rq_ref, rk_ref),
                       (r_wq, r_bq, r_wk, r_bk, r_wv, r_bv, r_wo, r_bo), n_heads)
    y = _layernorm(send + recv, g3, be3)
    y = _layernorm(y + _mlp(y, w1, b1, w2, b2), g4, be4)
    o_ref[0] = y                                      # already in (ts_d, seg) order -> final_out layout


def _decoder_kernel(x_ref, c_ref, qg_ref, kg_ref,
                    wq, bq, wk, bk, wv, bv, wo, bo,
                    m1w1, m1b1, m1w2, m1b2, m2w1, m2b1, m2w2, m2b2,
                    g1, be1, g2, be2, wp, bp,
                    dec_ref, pred_ref, *, n_heads):
    xf = x_ref[0]                                     # (bb*out_seg, d)
    cf = c_ref[0]                                     # (bb*in_seg,  d)
    bias = _group_bias(qg_ref, kg_ref)
    attn = _mha_masked(xf, cf, bias, (wq, bq, wk, bk, wv, bv, wo, bo), n_heads)
    x1 = xf + attn                                    # dropout == identity (eval)
    m = _mlp(_mlp(x1, m1w1, m1b1, m1w2, m1b2), m2w1, m2b1, m2w2, m2b2)   # MLP2(MLP1(x)) per reference
    x2 = _layernorm(x1 + m, g1, be1)
    y = _mlp(_mlp(x2, m1w1, m1b1, m1w2, m1b2), m2w1, m2b1, m2w2, m2b2)
    dec = _layernorm(x2 + y, g2, be2)
    dec_ref[0] = dec
    # TODO(synk): pack 16 pred rows per 128-lane row (seg_len=8) for a fully lane-dense store.
    pred_ref[0] = jnp.dot(_mxu(dec), wp[...], preferred_element_type=jnp.float32) + bp[...]


# ----------------------------------------------------------------------------
# pallas_call wrappers
# ----------------------------------------------------------------------------
_ATTN_KEYS = ('wq', 'bq', 'wk', 'bk', 'wv', 'bv', 'wo', 'bo')


def _attn_args(h):
    return tuple(h[k] for k in _ATTN_KEYS)


def _full_spec(shape):
    rank = len(shape)
    return pl.BlockSpec(shape, lambda *_: (0,) * rank)


@functools.lru_cache(maxsize=None)
def _chip_config():
    """(two_tensorcores, vmem_limit_bytes) derived from the attached TPU generation."""
    try:
        kind = jax.devices()[0].device_kind.lower()
    except Exception:                                  # pragma: no cover
        kind = ""
    two_cores = ("v7" in kind) or ("tpu7" in kind) or ("v4" in kind) or ("v5p" in kind)
    if "v7" in kind or "tpu7" in kind:
        vmem = 32 * 1024 * 1024        # v7x: 64 MiB physical -> stay well inside, keep double-buffers
    elif ("v6" in kind) or ("v5e" in kind) or ("lite" in kind):
        vmem = 64 * 1024 * 1024        # v5e/v6e: 128 MiB physical, raise above 16/32 MiB scoped default
    else:
        vmem = None
    return two_cores, vmem


def _cparams():
    _, vmem = _chip_config()
    kw = dict(dimension_semantics=("parallel",))
    if vmem is not None:
        kw['vmem_limit_bytes'] = vmem
    return pltpu.CompilerParams(**kw)


def _pick_block(n_slices, rows_per_slice, target_rows=256):
    """Largest divisor of n_slices such that (a) on multi-TC chips there are >=2 grid steps,
    (b) the masked-dense attention block stays <= target_rows rows (score cost grows ~rows^2),
    preferring row counts that are multiples of 8 (f32 sublane height)."""
    two_cores, _ = _chip_config()
    best, best_key = 1, (False, 0)
    for cand in range(1, n_slices + 1):
        if n_slices % cand:
            continue
        if two_cores and n_slices >= 2 and n_slices // cand < 2:
            continue
        rows = cand * rows_per_slice
        if cand > 1 and rows > target_rows:
            continue
        key = (rows % 8 == 0, cand)
        if key > best_key:
            best, best_key = cand, key
    return best


def tsa_time_stage(x_blocks, qg, kg, attn_p, ln_a, mlp_p, ln_b, n_heads):
    nblk, rows, d = x_blocks.shape
    args = (qg, kg, *_attn_args(attn_p),
            ln_a['g'], ln_a['b'],
            mlp_p['l1']['w'], mlp_p['l1']['b'], mlp_p['l2']['w'], mlp_p['l2']['b'],
            ln_b['g'], ln_b['b'])
    in_specs = [pl.BlockSpec((1, rows, d), lambda i: (i, 0, 0))] + [_full_spec(a.shape) for a in args]
    return pl.pallas_call(
        functools.partial(_tsa_time_kernel, n_heads=n_heads),
        grid=(nblk,),
        in_specs=in_specs,
        out_specs=pl.BlockSpec((1, rows, d), lambda i: (i, 0, 0)),
        out_shape=jax.ShapeDtypeStruct((nblk, rows, d), jnp.float32),
        compiler_params=_cparams(),
    )(x_blocks, *args)


def tsa_dim_stage(send, router2d, sq, sk, rq, rk, send_p, recv_p, ln_a, mlp_p, ln_b, n_heads):
    b, rows, d = send.shape
    args = (router2d, sq, sk, rq, rk, *_attn_args(send_p), *_attn_args(recv_p),
            ln_a['g'], ln_a['b'],
            mlp_p['l1']['w'], mlp_p['l1']['b'], mlp_p['l2']['w'], mlp_p['l2']['b'],
            ln_b['g'], ln_b['b'])
    in_specs = [pl.BlockSpec((1, rows, d), lambda i: (i, 0, 0))] + [_full_spec(a.shape) for a in args]
    return pl.pallas_call(
        functools.partial(_tsa_dim_kernel, n_heads=n_heads),
        grid=(b,),
        in_specs=in_specs,
        out_specs=pl.BlockSpec((1, rows, d), lambda i: (i, 0, 0)),
        out_shape=jax.ShapeDtypeStruct((b, rows, d), jnp.float32),
        compiler_params=_cparams(),
    )(send, *args)


def decoder_stage(xb, cb, qg, kg, attn_p, mlp1_p, mlp2_p, ln1, ln2, pred_p, n_heads):
    nblk, rl, d = xb.shape
    rs = cb.shape[1]
    seg_len = pred_p['w'].shape[1]
    w_args = (qg, kg, *_attn_args(attn_p),
              mlp1_p['l1']['w'], mlp1_p['l1']['b'], mlp1_p['l2']['w'], mlp1_p['l2']['b'],
              mlp2_p['l1']['w'], mlp2_p['l1']['b'], mlp2_p['l2']['w'], mlp2_p['l2']['b'],
              ln1['g'], ln1['b'], ln2['g'], ln2['b'],
              pred_p['w'], pred_p['b'])
    in_specs = [pl.BlockSpec((1, rl, d), lambda i: (i, 0, 0)),
                pl.BlockSpec((1, rs, d), lambda i: (i, 0, 0))]
    in_specs += [_full_spec(a.shape) for a in w_args]
    return pl.pallas_call(
        functools.partial(_decoder_kernel, n_heads=n_heads),
        grid=(nblk,),
        in_specs=in_specs,
        out_specs=(pl.BlockSpec((1, rl, d), lambda i: (i, 0, 0)),
                   pl.BlockSpec((1, rl, seg_len), lambda i: (i, 0, 0))),
        out_shape=(jax.ShapeDtypeStruct((nblk, rl, d), jnp.float32),
                   jax.ShapeDtypeStruct((nblk, rl, seg_len), jnp.float32)),
        compiler_params=_cparams(),
    )(xb, cb, *w_args)


# ----------------------------------------------------------------------------
# Module forward (JAX glue is only free leading-dim reshapes + tiny int32 group vectors)
# ----------------------------------------------------------------------------
def _col(g):
    return jnp.asarray(np.asarray(g, np.int32).reshape(-1, 1))


def _row(g):
    return jnp.asarray(np.asarray(g, np.int32).reshape(1, -1))


def two_stage_attention(x, tsa, n_heads):
    """TwoStageAttentionLayer. x: [b, ts_d, seg_num, d_model] -> same shape."""
    b, ts_d, seg, d = x.shape
    bf = b * ts_d
    bb = _pick_block(bf, seg)
    nblk = bf // bb
    rows = bb * seg

    # ---- cross-time stage (fused attn + add&LN + MLP1 + add&LN) ----
    x_blocks = x.reshape(nblk, rows, d)                       # free (leading-dim) reshape
    tgrp = np.arange(rows, dtype=np.int32) // seg
    time_out = tsa_time_stage(x_blocks, _col(tgrp), _row(tgrp), tsa['time_attn'],
                              tsa['norm1'], tsa['mlp1'], tsa['norm2'], n_heads)

    # ---- cross-dimension stage (router attention); transpose handled by grouping, router untiled ----
    factor = tsa['router'].shape[1]
    send = time_out.reshape(b, ts_d * seg, d)                 # free reshape, rows r = t*seg + s
    router2d = tsa['router'].reshape(seg * factor, d)
    r_grp = np.arange(seg * factor, dtype=np.int32) // factor
    s_grp = np.arange(ts_d * seg, dtype=np.int32) % seg
    dim_out = tsa_dim_stage(send, router2d,
                            _col(r_grp), _row(s_grp),          # sender: router queries vs send keys
                            _col(s_grp), _row(r_grp),          # receiver: send queries vs buffer keys
                            tsa['dim_sender'], tsa['dim_receiver'],
                            tsa['norm3'], tsa['mlp2'], tsa['norm4'], n_heads)
    return dim_out.reshape(b, ts_d, seg, d)


def decoder_layer_forward(x, cross, params, n_heads):
    """x: [b, ts_d, out_seg_num, d_model], cross: [b, ts_d, in_seg_num, d_model]."""
    b, ts_d, out_seg, d = x.shape
    in_seg = cross.shape[2]

    x = two_stage_attention(x, params['tsa'], n_heads)        # (b, ts_d, out_seg, d)

    bf = b * ts_d
    bb = _pick_block(bf, max(out_seg, in_seg))
    nblk = bf // bb
    xb = x.reshape(nblk, bb * out_seg, d)
    cb = cross.reshape(nblk, bb * in_seg, d)
    qg = _col(np.arange(bb * out_seg, dtype=np.int32) // out_seg)
    kg = _row(np.arange(bb * in_seg, dtype=np.int32) // in_seg)

    dec, pred = decoder_stage(xb, cb, qg, kg, params['cross_attn'],
                              params['mlp1'], params['mlp2'],
                              params['norm1'], params['norm2'],
                              params['linear_pred'], n_heads)

    dec_output = dec.reshape(b, ts_d, out_seg, d)
    layer_predict = pred.reshape(b, ts_d * out_seg, -1)       # 'b out_d seg_num seg_len -> b (out_d seg_num) seg_len'
    return dec_output, layer_predict


# ----------------------------------------------------------------------------
# Parameter init (torch-like layout, y = x @ W + b) and a one-time preparation pass that
# casts all MXU weight operands to bf16 (biases / LN params stay f32).
# ----------------------------------------------------------------------------
def init_params(key, d_model, n_heads, d_ff, seg_len, out_seg_num, factor):
    keys = iter(jax.random.split(key, 64))

    def lin(din, dout):
        return {'w': 0.05 * jax.random.normal(next(keys), (din, dout), jnp.float32),
                'b': 0.05 * jax.random.normal(next(keys), (1, dout), jnp.float32)}

    def attn():
        return {'q': lin(d_model, d_model), 'k': lin(d_model, d_model),
                'v': lin(d_model, d_model), 'o': lin(d_model, d_model)}

    def ln():
        return {'g': jnp.ones((1, d_model), jnp.float32),
                'b': jnp.zeros((1, d_model), jnp.float32)}

    def mlp_p(dh):
        return {'l1': lin(d_model, dh), 'l2': lin(dh, d_model)}

    tsa = {'time_attn': attn(), 'dim_sender': attn(), 'dim_receiver': attn(),
           'router': jax.random.normal(next(keys), (out_seg_num, factor, d_model), jnp.float32),
           'norm1': ln(), 'norm2': ln(), 'norm3': ln(), 'norm4': ln(),
           'mlp1': mlp_p(d_ff), 'mlp2': mlp_p(d_ff)}

    return {'tsa': tsa,
            'cross_attn': attn(),
            'norm1': ln(), 'norm2': ln(),
            'mlp1': mlp_p(d_model), 'mlp2': mlp_p(d_model),
            'linear_pred': lin(d_model, seg_len)}


def _prep_attn(a):
    return {'wq': a['q']['w'].astype(_MXU_DTYPE), 'bq': a['q']['b'],
            'wk': a['k']['w'].astype(_MXU_DTYPE), 'bk': a['k']['b'],
            'wv': a['v']['w'].astype(_MXU_DTYPE), 'bv': a['v']['b'],
            'wo': a['o']['w'].astype(_MXU_DTYPE), 'bo': a['o']['b']}


def _prep_mlp(m):
    return {'l1': {'w': m['l1']['w'].astype(_MXU_DTYPE), 'b': m['l1']['b']},
            'l2': {'w': m['l2']['w'].astype(_MXU_DTYPE), 'b': m['l2']['b']}}


def prepare_params(params):
    tsa = params['tsa']
    prep_tsa = {'time_attn': _prep_attn(tsa['time_attn']),
                'dim_sender': _prep_attn(tsa['dim_sender']),
                'dim_receiver': _prep_attn(tsa['dim_receiver']),
                'router': tsa['router'],
                'norm1': tsa['norm1'], 'norm2': tsa['norm2'],
                'norm3': tsa['norm3'], 'norm4': tsa['norm4'],
                'mlp1': _prep_mlp(tsa['mlp1']), 'mlp2': _prep_mlp(tsa['mlp2'])}
    return {'tsa': prep_tsa,
            'cross_attn': _prep_attn(params['cross_attn']),
            'norm1': params['norm1'], 'norm2': params['norm2'],
            'mlp1': _prep_mlp(params['mlp1']), 'mlp2': _prep_mlp(params['mlp2']),
            'linear_pred': {'w': params['linear_pred']['w'].astype(_MXU_DTYPE),
                            'b': params['linear_pred']['b']}}


# ----------------------------------------------------------------------------
# Pure-JAX f32 reference (mirrors the PyTorch module) used only for the self-check.
# ----------------------------------------------------------------------------
def _ref_ln(x, p):
    mu = x.mean(-1, keepdims=True)
    var = ((x - mu) ** 2).mean(-1, keepdims=True)
    return (x - mu) / jnp.sqrt(var + LN_EPS) * p['g'] + p['b']


def _ref_mlp(x, p):
    h = _gelu_exact(x @ p['l1']['w'] + p['l1']['b'])
    return h @ p['l2']['w'] + p['l2']['b']


def _ref_mha(q, k, v, ap, n_heads):
    B, Lq, d = q.shape
    Lk = k.shape[1]
    e = d // n_heads
    Q = (q @ ap['q']['w'] + ap['q']['b']).reshape(B, Lq, n_heads, e)
    K = (k @ ap['k']['w'] + ap['k']['b']).reshape(B, Lk, n_heads, e)
    V = (v @ ap['v']['w'] + ap['v']['b']).reshape(B, Lk, n_heads, e)
    s = jnp.einsum('bqhe,bkhe->bhqk', Q, K) / math.sqrt(e)
    a = jax.nn.softmax(s, axis=-1)
    o = jnp.einsum('bhqk,bkhe->bqhe', a, V).reshape(B, Lq, d)
    return o @ ap['o']['w'] + ap['o']['b']


def _ref_tsa(x, tsa, n_heads):
    b, ts_d, seg, d = x.shape
    time_in = x.reshape(b * ts_d, seg, d)
    time_enc = _ref_mha(time_in, time_in, time_in, tsa['time_attn'], n_heads)
    dim_in = _ref_ln(time_in + time_enc, tsa['norm1'])
    dim_in = _ref_ln(dim_in + _ref_mlp(dim_in, tsa['mlp1']), tsa['norm2'])

    dim_send = dim_in.reshape(b, ts_d, seg, d).transpose(0, 2, 1, 3).reshape(b * seg, ts_d, d)
    router = jnp.tile(tsa['router'], (b, 1, 1))
    buf = _ref_mha(router, dim_send, dim_send, tsa['dim_sender'], n_heads)
    recv = _ref_mha(dim_send, buf, buf, tsa['dim_receiver'], n_heads)
    dim_enc = _ref_ln(dim_send + recv, tsa['norm3'])
    dim_enc = _ref_ln(dim_enc + _ref_mlp(dim_enc, tsa['mlp2']), tsa['norm4'])
    return dim_enc.reshape(b, seg, ts_d, d).transpose(0, 2, 1, 3)


def _ref_decoder(x, cross, params, n_heads):
    b = x.shape[0]
    x = _ref_tsa(x, params['tsa'], n_heads)
    ts_d, out_seg, d = x.shape[1:]
    xq = x.reshape(b * ts_d, out_seg, d)
    cr = cross.reshape(b * ts_d, cross.shape[2], d)
    x1 = xq + _ref_mha(xq, cr, cr, params['cross_attn'], n_heads)
    m = _ref_mlp(_ref_mlp(x1, params['mlp1']), params['mlp2'])
    x2 = _ref_ln(x1 + m, params['norm1'])
    y = _ref_mlp(_ref_mlp(x2, params['mlp1']), params['mlp2'])
    dec = _ref_ln(x2 + y, params['norm2'])
    dec_out = dec.reshape(b, ts_d, out_seg, d)
    pred = dec_out @ params['linear_pred']['w'] + params['linear_pred']['b']
    return dec_out, pred.reshape(b, ts_d * out_seg, -1)


if __name__ == "__main__":
    # Small shapes consistent with the module.
    batch, ts_d, out_seg_num, in_seg_num = 2, 3, 4, 6
    d_model, n_heads, d_ff, seg_len, factor = 32, 2, 64, 8, 5

    key = jax.random.PRNGKey(0)
    kx, kc, kp = jax.random.split(key, 3)
    x = jax.random.normal(kx, (batch, ts_d, out_seg_num, d_model), jnp.float32)
    cross = jax.random.normal(kc, (batch, ts_d, in_seg_num, d_model), jnp.float32)
    params = init_params(kp, d_model, n_heads, d_ff, seg_len, out_seg_num, factor)
    prep = prepare_params(params)   # one-time bf16 cast of MXU weight operands

    fwd = jax.jit(functools.partial(decoder_layer_forward, n_heads=n_heads))
    dec_output, layer_predict = fwd(x, cross, prep)
    jax.block_until_ready(dec_output)
    jax.block_until_ready(layer_predict)

    assert dec_output.shape == (batch, ts_d, out_seg_num, d_model)
    assert layer_predict.shape == (batch, ts_d * out_seg_num, seg_len)
    assert bool(jnp.all(jnp.isfinite(dec_output))) and bool(jnp.all(jnp.isfinite(layer_predict)))

    # Loose tolerance: bf16 MXU operands + approx softmax reciprocal vs exact f32 reference.
    ref_dec, ref_pred = _ref_decoder(x, cross, params, n_heads)
    err_dec = float(jnp.max(jnp.abs(dec_output - ref_dec)))
    err_pred = float(jnp.max(jnp.abs(layer_predict - ref_pred)))
    assert err_dec < 5e-2 and err_pred < 5e-2, (err_dec, err_pred)

    print("KERNEL_OK")
</pallas_src>

<mosaic_0001>
module attributes {stable_mosaic.version = 11 : i64} {
  func.func @_tsa_time_kernel(%arg0: i32, %arg1: memref<1x24x32xf32, #tpu.memory_space<vmem>>, %arg2: memref<24x1xi32, #tpu.memory_space<vmem>>, %arg3: memref<1x24xi32, #tpu.memory_space<vmem>>, %arg4: memref<32x32xbf16, #tpu.memory_space<vmem>>, %arg5: memref<1x32xf32, #tpu.memory_space<vmem>>, %arg6: memref<32x32xbf16, #tpu.memory_space<vmem>>, %arg7: memref<1x32xf32, #tpu.memory_space<vmem>>, %arg8: memref<32x32xbf16, #tpu.memory_space<vmem>>, %arg9: memref<1x32xf32, #tpu.memory_space<vmem>>, %arg10: memref<32x32xbf16, #tpu.memory_space<vmem>>, %arg11: memref<1x32xf32, #tpu.memory_space<vmem>>, %arg12: memref<1x32xf32, #tpu.memory_space<vmem>>, %arg13: memref<1x32xf32, #tpu.memory_space<vmem>>, %arg14: memref<32x64xbf16, #tpu.memory_space<vmem>>, %arg15: memref<1x64xf32, #tpu.memory_space<vmem>>, %arg16: memref<64x32xbf16, #tpu.memory_space<vmem>>, %arg17: memref<1x32xf32, #tpu.memory_space<vmem>>, %arg18: memref<1x32xf32, #tpu.memory_space<vmem>>, %arg19: memref<1x32xf32, #tpu.memory_space<vmem>>, %arg20: memref<1x24x32xf32, #tpu.memory_space<vmem>>) attributes {dimension_semantics = [#tpu.dimension_semantics<parallel>], iteration_bounds = array<i64: 1>, scalar_prefetch = 0 : i64, scratch_operands = 0 : i64, tpu.core_type = #tpu.core_type<tc>, window_params = [{transform_indices = @transform_0, window_bounds = array<i64: 1, 24, 32>}, {pipeline_mode = #tpu.pipeline_mode<synchronous>, transform_indices = @transform_1, window_bounds = array<i64: 24, 1>}, {pipeline_mode = #tpu.pipeline_mode<synchronous>, transform_indices = @transform_2, window_bounds = array<i64: 1, 24>}, {pipeline_mode = #tpu.pipeline_mode<synchronous>, transform_indices = @transform_3, window_bounds = array<i64: 32, 32>}, {pipeline_mode = #tpu.pipeline_mode<synchronous>, transform_indices = @transform_4, window_bounds = array<i64: 1, 32>}, {pipeline_mode = #tpu.pipeline_mode<synchronous>, transform_indices = @transform_5, window_bounds = array<i64: 32, 32>}, {pipeline_mode = #tpu.pipeline_mode<synchronous>, transform_indices = @transform_6, window_bounds = array<i64: 1, 32>}, {pipeline_mode = #tpu.pipeline_mode<synchronous>, transform_indices = @transform_7, window_bounds = array<i64: 32, 32>}, {pipeline_mode = #tpu.pipeline_mode<synchronous>, transform_indices = @transform_8, window_bounds = array<i64: 1, 32>}, {pipeline_mode = #tpu.pipeline_mode<synchronous>, transform_indices = @transform_9, window_bounds = array<i64: 32, 32>}, {pipeline_mode = #tpu.pipeline_mode<synchronous>, transform_indices = @transform_10, window_bounds = array<i64: 1, 32>}, {pipeline_mode = #tpu.pipeline_mode<synchronous>, transform_indices = @transform_11, window_bounds = array<i64: 1, 32>}, {pipeline_mode = #tpu.pipeline_mode<synchronous>, transform_indices = @transform_12, window_bounds = array<i64: 1, 32>}, {pipeline_mode = #tpu.pipeline_mode<synchronous>, transform_indices = @transform_13, window_bounds = array<i64: 32, 64>}, {pipeline_mode = #tpu.pipeline_mode<synchronous>, transform_indices = @transform_14, window_bounds = array<i64: 1, 64>}, {pipeline_mode = #tpu.pipeline_mode<synchronous>, transform_indices = @transform_15, window_bounds = array<i64: 64, 32>}, {pipeline_mode = #tpu.pipeline_mode<synchronous>, transform_indices = @transform_16, window_bounds = array<i64: 1, 32>}, {pipeline_mode = #tpu.pipeline_mode<synchronous>, transform_indices = @transform_17, window_bounds = array<i64: 1, 32>}, {pipeline_mode = #tpu.pipeline_mode<synchronous>, transform_indices = @transform_18, window_bounds = array<i64: 1, 32>}, {transform_indices = @transform_19, window_bounds = array<i64: 1, 24, 32>}]} {
    %c0 = arith.constant 0 : index
    %c0_0 = arith.constant 0 : index
    %c0_1 = arith.constant 0 : index
    %0 = vector.load %arg1[%c0, %c0_0, %c0_1] : memref<1x24x32xf32, #tpu.memory_space<vmem>>, vector<1x24x32xf32>
    %1 = vector.shape_cast %0 : vector<1x24x32xf32> to vector<24x32xf32>
    %c0_2 = arith.constant 0 : index
    %c0_3 = arith.constant 0 : index
    %2 = vector.load %arg2[%c0_2, %c0_3] : memref<24x1xi32, #tpu.memory_space<vmem>>, vector<24x1xi32>
    %c0_4 = arith.constant 0 : index
    %c0_5 = arith.constant 0 : index
    %3 = vector.load %arg3[%c0_4, %c0_5] : memref<1x24xi32, #tpu.memory_space<vmem>>, vector<1x24xi32>
    %4 = vector.broadcast %2 : vector<24x1xi32> to vector<24x24xi32>
    %5 = vector.broadcast %3 : vector<1x24xi32> to vector<24x24xi32>
    %6 = arith.cmpi eq, %4, %5 : vector<24x24xi32>
    %cst = arith.constant 0.000000e+00 : f32
    %cst_6 = arith.constant -1.000000e+30 : f32
    %7 = vector.broadcast %cst : f32 to vector<24x24xf32>
    %8 = vector.broadcast %cst_6 : f32 to vector<24x24xf32>
    %9 = arith.select %6, %7, %8 : vector<24x24xi1>, vector<24x24xf32>
    %10 = arith.truncf %1 : vector<24x32xf32> to vector<24x32xbf16>
    %11 = arith.truncf %1 : vector<24x32xf32> to vector<24x32xbf16>
    %c0_7 = arith.constant 0 : index
    %c0_8 = arith.constant 0 : index
    %12 = vector.load %arg4[%c0_7, %c0_8] : memref<32x32xbf16, #tpu.memory_space<vmem>>, vector<32x32xbf16>
    %cst_9 = arith.constant dense<0.000000e+00> : vector<24x32xf32>
    %13 = tpu.matmul %10, %12, %cst_9 {dimension_numbers = #tpu.dot_dimension_numbers<[1], [0], [0], [1], [0, 0, 1, 1], [], []>} : vector<24x32xbf16>, vector<32x32xbf16>, vector<24x32xf32> -> vector<24x32xf32>
    %c0_10 = arith.constant 0 : index
    %c0_11 = arith.constant 0 : index
    %14 = vector.load %arg5[%c0_10, %c0_11] : memref<1x32xf32, #tpu.memory_space<vmem>>, vector<1x32xf32>
    %15 = vector.broadcast %14 : vector<1x32xf32> to vector<24x32xf32>
    %16 = arith.addf %13, %15 : vector<24x32xf32>
    %c0_12 = arith.constant 0 : index
    %c0_13 = arith.constant 0 : index
    %17 = vector.load %arg6[%c0_12, %c0_13] : memref<32x32xbf16, #tpu.memory_space<vmem>>, vector<32x32xbf16>
    %cst_14 = arith.constant dense<0.000000e+00> : vector<24x32xf32>
    %18 = tpu.matmul %11, %17, %cst_14 {dimension_numbers = #tpu.dot_dimension_numbers<[1], [0], [0], [1], [0, 0, 1, 1], [], []>} : vector<24x32xbf16>, vector<32x32xbf16>, vector<24x32xf32> -> vector<24x32xf32>
    %c0_15 = arith.constant 0 : index
    %c0_16 = arith.constant 0 : index
    %19 = vector.load %arg7[%c0_15, %c0_16] : memref<1x32xf32, #tpu.memory_space<vmem>>, vector<1x32xf32>
    %20 = vector.broadcast %19 : vector<1x32xf32> to vector<24x32xf32>
    %21 = arith.addf %18, %20 : vector<24x32xf32>
    %c0_17 = arith.constant 0 : index
    %c0_18 = arith.constant 0 : index
    %22 = vector.load %arg8[%c0_17, %c0_18] : memref<32x32xbf16, #tpu.memory_space<vmem>>, vector<32x32xbf16>
    %cst_19 = arith.constant dense<0.000000e+00> : vector<24x32xf32>
    %23 = tpu.matmul %11, %22, %cst_19 {dimension_numbers = #tpu.dot_dimension_numbers<[1], [0], [0], [1], [0, 0, 1, 1], [], []>} : vector<24x32xbf16>, vector<32x32xbf16>, vector<24x32xf32> -> vector<24x32xf32>
    %c0_20 = arith.constant 0 : index
    %c0_21 = arith.constant 0 : index
    %24 = vector.load %arg9[%c0_20, %c0_21] : memref<1x32xf32, #tpu.memory_space<vmem>>, vector<1x32xf32>
    %25 = vector.broadcast %24 : vector<1x32xf32> to vector<24x32xf32>
    %26 = arith.addf %23, %25 : vector<24x32xf32>
    %27 = vector.extract_strided_slice %16 {offsets = [0, 0], sizes = [24, 16], strides = [1, 1]} : vector<24x32xf32> to vector<24x16xf32>
    %28 = arith.truncf %27 : vector<24x16xf32> to vector<24x16xbf16>
    %29 = vector.extract_strided_slice %21 {offsets = [0, 0], sizes = [24, 16], strides = [1, 1]} : vector<24x32xf32> to vector<24x16xf32>
    %30 = arith.truncf %29 : vector<24x16xf32> to vector<24x16xbf16>
    %cst_22 = arith.constant dense<0.000000e+00> : vector<24x24xf32>
    %31 = tpu.matmul %28, %30, %cst_22 {dimension_numbers = #tpu.dot_dimension_numbers<[1], [1], [0], [0], [0, 0, 1, 0], [], []>} : vector<24x16xbf16>, vector<24x16xbf16>, vector<24x24xf32> -> vector<24x24xf32>
    %cst_23 = arith.constant 2.500000e-01 : f32
    %32 = vector.broadcast %cst_23 : f32 to vector<24x24xf32>
    %33 = arith.mulf %31, %32 : vector<24x24xf32>
    %34 = arith.addf %33, %9 : vector<24x24xf32>
    %cst_24 = arith.constant dense<0xFF800000> : vector<24xf32>
    %35 = vector.multi_reduction <maximumf>, %34, %cst_24 [1] : vector<24x24xf32> to vector<24xf32>
    %36 = vector.shape_cast %35 : vector<24xf32> to vector<24x1xf32>
    %37 = vector.broadcast %36 : vector<24x1xf32> to vector<24x24xf32>
    %38 = arith.subf %34, %37 : vector<24x24xf32>
    %39 = math.exp %38 : vector<24x24xf32>
    %cst_25 = arith.constant dense<0.000000e+00> : vector<24xf32>
    %40 = vector.multi_reduction <add>, %39, %cst_25 [1] : vector<24x24xf32> to vector<24xf32>
    %41 = vector.shape_cast %40 : vector<24xf32> to vector<24x1xf32>
    %42 = tpu.reciprocal %41 {approx = true} : vector<24x1xf32> -> vector<24x1xf32>
    %43 = vector.broadcast %42 : vector<24x1xf32> to vector<24x24xf32>
    %44 = arith.mulf %39, %43 : vector<24x24xf32>
    %45 = arith.truncf %44 : vector<24x24xf32> to vector<24x24xbf16>
    %46 = vector.extract_strided_slice %26 {offsets = [0, 0], sizes = [24, 16], strides = [1, 1]} : vector<24x32xf32> to vector<24x16xf32>
    %47 = arith.truncf %46 : vector<24x16xf32> to vector<24x16xbf16>
    %cst_26 = arith.constant dense<0.000000e+00> : vector<24x16xf32>
    %48 = tpu.matmul %45, %47, %cst_26 {dimension_numbers = #tpu.dot_dimension_numbers<[1], [0], [0], [1], [0, 0, 1, 1], [], []>} : vector<24x24xbf16>, vector<24x16xbf16>, vector<24x16xf32> -> vector<24x16xf32>
    %49 = vector.extract_strided_slice %16 {offsets = [0, 16], sizes = [24, 16], strides = [1, 1]} : vector<24x32xf32> to vector<24x16xf32>
    %50 = arith.truncf %49 : vector<24x16xf32> to vector<24x16xbf16>
    %51 = vector.extract_strided_slice %21 {offsets = [0, 16], sizes = [24, 16], strides = [1, 1]} : vector<24x32xf32> to vector<24x16xf32>
    %52 = arith.truncf %51 : vector<24x16xf32> to vector<24x16xbf16>
    %cst_27 = arith.constant dense<0.000000e+00> : vector<24x24xf32>
    %53 = tpu.matmul %50, %52, %cst_27 {dimension_numbers = #tpu.dot_dimension_numbers<[1], [1], [0], [0], [0, 0, 1, 0], [], []>} : vector<24x16xbf16>, vector<24x16xbf16>, vector<24x24xf32> -> vector<24x24xf32>
    %cst_28 = arith.constant 2.500000e-01 : f32
    %54 = vector.broadcast %cst_28 : f32 to vector<24x24xf32>
    %55 = arith.mulf %53, %54 : vector<24x24xf32>
    %56 = arith.addf %55, %9 : vector<24x24xf32>
    %cst_29 = arith.constant dense<0xFF800000> : vector<24xf32>
    %57 = vector.multi_reduction <maximumf>, %56, %cst_29 [1] : vector<24x24xf32> to vector<24xf32>
    %58 = vector.shape_cast %57 : vector<24xf32> to vector<24x1xf32>
    %59 = vector.broadcast %58 : vector<24x1xf32> to vector<24x24xf32>
    %60 = arith.subf %56, %59 : vector<24x24xf32>
    %61 = math.exp %60 : vector<24x24xf32>
    %cst_30 = arith.constant dense<0.000000e+00> : vector<24xf32>
    %62 = vector.multi_reduction <add>, %61, %cst_30 [1] : vector<24x24xf32> to vector<24xf32>
    %63 = vector.shape_cast %62 : vector<24xf32> to vector<24x1xf32>
    %64 = tpu.reciprocal %63 {approx = true} : vector<24x1xf32> -> vector<24x1xf32>
    %65 = vector.broadcast %64 : vector<24x1xf32> to vector<24x24xf32>
    %66 = arith.mulf %61, %65 : vector<24x24xf32>
    %67 = arith.truncf %66 : vector<24x24xf32> to vector<24x24xbf16>
    %68 = vector.extract_strided_slice %26 {offsets = [0, 16], sizes = [24, 16], strides = [1, 1]} : vector<24x32xf32> to vector<24x16xf32>
    %69 = arith.truncf %68 : vector<24x16xf32> to vector<24x16xbf16>
    %cst_31 = arith.constant dense<0.000000e+00> : vector<24x16xf32>
    %70 = tpu.matmul %67, %69, %cst_31 {dimension_numbers = #tpu.dot_dimension_numbers<[1], [0], [0], [1], [0, 0, 1, 1], [], []>} : vector<24x24xbf16>, vector<24x16xbf16>, vector<24x16xf32> -> vector<24x16xf32>
    %71 = tpu.concatenate %48, %70 in 1 : vector<24x16xf32>, vector<24x16xf32> -> vector<24x32xf32>
    %72 = arith.truncf %71 : vector<24x32xf32> to vector<24x32xbf16>
    %c0_32 = arith.constant 0 : index
    %c0_33 = arith.constant 0 : index
    %73 = vector.load %arg10[%c0_32, %c0_33] : memref<32x32xbf16, #tpu.memory_space<vmem>>, vector<32x32xbf16>
    %cst_34 = arith.constant dense<0.000000e+00> : vector<24x32xf32>
    %74 = tpu.matmul %72, %73, %cst_34 {dimension_numbers = #tpu.dot_dimension_numbers<[1], [0], [0], [1], [0, 0, 1, 1], [], []>} : vector<24x32xbf16>, vector<32x32xbf16>, vector<24x32xf32> -> vector<24x32xf32>
    %c0_35 = arith.constant 0 : index
    %c0_36 = arith.constant 0 : index
    %75 = vector.load %arg11[%c0_35, %c0_36] : memref<1x32xf32, #tpu.memory_space<vmem>>, vector<1x32xf32>
    %76 = vector.broadcast %75 : vector<1x32xf32> to vector<24x32xf32>
    %77 = arith.addf %74, %76 : vector<24x32xf32>
    %78 = arith.addf %1, %77 : vector<24x32xf32>
    %cst_37 = arith.constant dense<0.000000e+00> : vector<24xf32>
    %79 = vector.multi_reduction <add>, %78, %cst_37 [1] : vector<24x32xf32> to vector<24xf32>
    %80 = vector.shape_cast %79 : vector<24xf32> to vector<24x1xf32>
    %cst_38 = arith.constant 3.200000e+01 : f32
    %81 = vector.broadcast %cst_38 : f32 to vector<24x1xf32>
    %82 = arith.divf %80, %81 : vector<24x1xf32>
    %83 = vector.broadcast %82 : vector<24x1xf32> to vector<24x32xf32>
    %84 = arith.subf %78, %83 : vector<24x32xf32>
    %85 = arith.mulf %84, %84 : vector<24x32xf32>
    %cst_39 = arith.constant dense<0.000000e+00> : vector<24xf32>
    %86 = vector.multi_reduction <add>, %85, %cst_39 [1] : vector<24x32xf32> to vector<24xf32>
    %87 = vector.shape_cast %86 : vector<24xf32> to vector<24x1xf32>
    %cst_40 = arith.constant 3.200000e+01 : f32
    %88 = vector.broadcast %cst_40 : f32 to vector<24x1xf32>
    %89 = arith.divf %87, %88 : vector<24x1xf32>
    %90 = vector.broadcast %82 : vector<24x1xf32> to vector<24x32xf32>
    %91 = arith.subf %78, %90 : vector<24x32xf32>
    %cst_41 = arith.constant 9.99999974E-6 : f32
    %92 = vector.broadcast %cst_41 : f32 to vector<24x1xf32>
    %93 = arith.addf %89, %92 : vector<24x1xf32>
    %94 = math.rsqrt %93 : vector<24x1xf32>
    %95 = vector.broadcast %94 : vector<24x1xf32> to vector<24x32xf32>
    %96 = arith.mulf %91, %95 : vector<24x32xf32>
    %c0_42 = arith.constant 0 : index
    %c0_43 = arith.constant 0 : index
    %97 = vector.load %arg12[%c0_42, %c0_43] : memref<1x32xf32, #tpu.memory_space<vmem>>, vector<1x32xf32>
    %98 = vector.broadcast %97 : vector<1x32xf32> to vector<24x32xf32>
    %99 = arith.mulf %96, %98 : vector<24x32xf32>
    %c0_44 = arith.constant 0 : index
    %c0_45 = arith.constant 0 : index
    %100 = vector.load %arg13[%c0_44, %c0_45] : memref<1x32xf32, #tpu.memory_space<vmem>>, vector<1x32xf32>
    %101 = vector.broadcast %100 : vector<1x32xf32> to vector<24x32xf32>
    %102 = arith.addf %99, %101 : vector<24x32xf32>
    %103 = arith.truncf %102 : vector<24x32xf32> to vector<24x32xbf16>
    %c0_46 = arith.constant 0 : index
    %c0_47 = arith.constant 0 : index
    %104 = vector.load %arg14[%c0_46, %c0_47] : memref<32x64xbf16, #tpu.memory_space<vmem>>, vector<32x64xbf16>
    %cst_48 = arith.constant dense<0.000000e+00> : vector<24x64xf32>
    %105 = tpu.matmul %103, %104, %cst_48 {dimension_numbers = #tpu.dot_dimension_numbers<[1], [0], [0], [1], [0, 0, 1, 1], [], []>} : vector<24x32xbf16>, vector<32x64xbf16>, vector<24x64xf32> -> vector<24x64xf32>
    %c0_49 = arith.constant 0 : index
    %c0_50 = arith.constant 0 : index
    %106 = vector.load %arg15[%c0_49, %c0_50] : memref<1x64xf32, #tpu.memory_space<vmem>>, vector<1x64xf32>
    %107 = vector.broadcast %106 : vector<1x64xf32> to vector<24x64xf32>
    %108 = arith.addf %105, %107 : vector<24x64xf32>
    %cst_51 = arith.constant 5.000000e-01 : f32
    %109 = vector.broadcast %cst_51 : f32 to vector<24x64xf32>
    %110 = arith.mulf %109, %108 : vector<24x64xf32>
    %cst_52 = arith.constant 0.707106769 : f32
    %111 = vector.broadcast %cst_52 : f32 to vector<24x64xf32>
    %112 = arith.mulf %108, %111 : vector<24x64xf32>
    %cst_53 = arith.constant 0.000000e+00 : f32
    %113 = vector.broadcast %cst_53 : f32 to vector<24x64xf32>
    %114 = arith.cmpf oge, %112, %113 : vector<24x64xf32>
    %cst_54 = arith.constant 1.000000e+00 : f32
    %cst_55 = arith.constant -1.000000e+00 : f32
    %115 = vector.broadcast %cst_54 : f32 to vector<24x64xf32>
    %116 = vector.broadcast %cst_55 : f32 to vector<24x64xf32>
    %117 = arith.select %114, %115, %116 : vector<24x64xi1>, vector<24x64xf32>
    %118 = math.absf %112 : vector<24x64xf32>
    %cst_56 = arith.constant 0.327591091 : f32
    %119 = vector.broadcast %cst_56 : f32 to vector<24x64xf32>
    %120 = arith.mulf %119, %118 : vector<24x64xf32>
    %cst_57 = arith.constant 1.000000e+00 : f32
    %121 = vector.broadcast %cst_57 : f32 to vector<24x64xf32>
    %122 = arith.addf %121, %120 : vector<24x64xf32>
    %cst_58 = arith.constant 1.000000e+00 : f32
    %123 = vector.broadcast %cst_58 : f32 to vector<24x64xf32>
    %124 = arith.divf %123, %122 : vector<24x64xf32>
    %cst_59 = arith.constant 1.06140542 : f32
    %125 = vector.broadcast %cst_59 : f32 to vector<24x64xf32>
    %126 = arith.mulf %125, %124 : vector<24x64xf32>
    %cst_60 = arith.constant -1.45315206 : f32
    %127 = vector.broadcast %cst_60 : f32 to vector<24x64xf32>
    %128 = arith.addf %126, %127 : vector<24x64xf32>
    %129 = arith.mulf %128, %124 : vector<24x64xf32>
    %cst_61 = arith.constant 1.42141378 : f32
    %130 = vector.broadcast %cst_61 : f32 to vector<24x64xf32>
    %131 = arith.addf %129, %130 : vector<24x64xf32>
    %132 = arith.mulf %131, %124 : vector<24x64xf32>
    %cst_62 = arith.constant -0.284496725 : f32
    %133 = vector.broadcast %cst_62 : f32 to vector<24x64xf32>
    %134 = arith.addf %132, %133 : vector<24x64xf32>
    %135 = arith.mulf %134, %124 : vector<24x64xf32>
    %cst_63 = arith.constant 0.254829586 : f32
    %136 = vector.broadcast %cst_63 : f32 to vector<24x64xf32>
    %137 = arith.addf %135, %136 : vector<24x64xf32>
    %138 = arith.mulf %137, %124 : vector<24x64xf32>
    %cst_64 = arith.constant 0.000000e+00 : f32
    %139 = vector.broadcast %cst_64 : f32 to vector<24x64xf32>
    %140 = arith.subf %139, %118 : vector<24x64xf32>
    %141 = arith.mulf %140, %118 : vector<24x64xf32>
    %142 = math.exp %141 : vector<24x64xf32>
    %143 = arith.mulf %138, %142 : vector<24x64xf32>
    %cst_65 = arith.constant 1.000000e+00 : f32
    %144 = vector.broadcast %cst_65 : f32 to vector<24x64xf32>
    %145 = arith.subf %144, %143 : vector<24x64xf32>
    %146 = arith.mulf %117, %145 : vector<24x64xf32>
    %cst_66 = arith.constant 1.000000e+00 : f32
    %147 = vector.broadcast %cst_66 : f32 to vector<24x64xf32>
    %148 = arith.addf %147, %146 : vector<24x64xf32>
    %149 = arith.mulf %110, %148 : vector<24x64xf32>
    %150 = arith.truncf %149 : vector<24x64xf32> to vector<24x64xbf16>
    %c0_67 = arith.constant 0 : index
    %c0_68 = arith.constant 0 : index
    %151 = vector.load %arg16[%c0_67, %c0_68] : memref<64x32xbf16, #tpu.memory_space<vmem>>, vector<64x32xbf16>
    %cst_69 = arith.constant dense<0.000000e+00> : vector<24x32xf32>
    %152 = tpu.matmul %150, %151, %cst_69 {dimension_numbers = #tpu.dot_dimension_numbers<[1], [0], [0], [1], [0, 0, 1, 1], [], []>} : vector<24x64xbf16>, vector<64x32xbf16>, vector<24x32xf32> -> vector<24x32xf32>
    %c0_70 = arith.constant 0 : index
    %c0_71 = arith.constant 0 : index
    %153 = vector.load %arg17[%c0_70, %c0_71] : memref<1x32xf32, #tpu.memory_space<vmem>>, vector<1x32xf32>
    %154 = vector.broadcast %153 : vector<1x32xf32> to vector<24x32xf32>
    %155 = arith.addf %152, %154 : vector<24x32xf32>
    %156 = arith.addf %102, %155 : vector<24x32xf32>
    %cst_72 = arith.constant dense<0.000000e+00> : vector<24xf32>
    %157 = vector.multi_reduction <add>, %156, %cst_72 [1] : vector<24x32xf32> to vector<24xf32>
    %158 = vector.shape_cast %157 : vector<24xf32> to vector<24x1xf32>
    %cst_73 = arith.constant 3.200000e+01 : f32
    %159 = vector.broadcast %cst_73 : f32 to vector<24x1xf32>
    %160 = arith.divf %158, %159 : vector<24x1xf32>
    %161 = vector.broadcast %160 : vector<24x1xf32> to vector<24x32xf32>
    %162 = arith.subf %156, %161 : vector<24x32xf32>
    %163 = arith.mulf %162, %162 : vector<24x32xf32>
    %cst_74 = arith.constant dense<0.000000e+00> : vector<24xf32>
    %164 = vector.multi_reduction <add>, %163, %cst_74 [1] : vector<24x32xf32> to vector<24xf32>
    %165 = vector.shape_cast %164 : vector<24xf32> to vector<24x1xf32>
    %cst_75 = arith.constant 3.200000e+01 : f32
    %166 = vector.broadcast %cst_75 : f32 to vector<24x1xf32>
    %167 = arith.divf %165, %166 : vector<24x1xf32>
    %168 = vector.broadcast %160 : vector<24x1xf32> to vector<24x32xf32>
    %169 = arith.subf %156, %168 : vector<24x32xf32>
    %cst_76 = arith.constant 9.99999974E-6 : f32
    %170 = vector.broadcast %cst_76 : f32 to vector<24x1xf32>
    %171 = arith.addf %167, %170 : vector<24x1xf32>
    %172 = math.rsqrt %171 : vector<24x1xf32>
    %173 = vector.broadcast %172 : vector<24x1xf32> to vector<24x32xf32>
    %174 = arith.mulf %169, %173 : vector<24x32xf32>
    %c0_77 = arith.constant 0 : index
    %c0_78 = arith.constant 0 : index
    %175 = vector.load %arg18[%c0_77, %c0_78] : memref<1x32xf32, #tpu.memory_space<vmem>>, vector<1x32xf32>
    %176 = vector.broadcast %175 : vector<1x32xf32> to vector<24x32xf32>
    %177 = arith.mulf %174, %176 : vector<24x32xf32>
    %c0_79 = arith.constant 0 : index
    %c0_80 = arith.constant 0 : index
    %178 = vector.load %arg19[%c0_79, %c0_80] : memref<1x32xf32, #tpu.memory_space<vmem>>, vector<1x32xf32>
    %179 = vector.broadcast %178 : vector<1x32xf32> to vector<24x32xf32>
    %180 = arith.addf %177, %179 : vector<24x32xf32>
    %c0_81 = arith.constant 0 : index
    %c0_82 = arith.constant 0 : index
    %c0_83 = arith.constant 0 : index
    %181 = vector.load %arg20[%c0_81, %c0_82, %c0_83] : memref<1x24x32xf32, #tpu.memory_space<vmem>>, vector<1x24x32xf32>
    %182 = vector.shape_cast %181 : vector<1x24x32xf32> to vector<24x32xf32>
    %183 = vector.shape_cast %180 : vector<24x32xf32> to vector<1x24x32xf32>
    tpu.vector_store %arg20[%c0_81, %c0_82, %c0_83], %183 {strides = array<i32>} : memref<1x24x32xf32, #tpu.memory_space<vmem>>, vector<1x24x32xf32>,
    return
  }
  func.func @transform_0(%arg0: i32) -> (i32, i32, i32) {
    %c0_i32 = arith.constant 0 : i32
    %c0_i32_0 = arith.constant 0 : i32
    %c0_i32_1 = arith.constant 0 : i32
    return %arg0, %c0_i32, %c0_i32_0 : i32, i32, i32
  }
  func.func @transform_1(%arg0: i32) -> (i32, i32) {
    %c0_i32 = arith.constant 0 : i32
    %c0_i32_0 = arith.constant 0 : i32
    %c0_i32_1 = arith.constant 0 : i32
    return %c0_i32, %c0_i32_0 : i32, i32
  }
  func.func @transform_2(%arg0: i32) -> (i32, i32) {
    %c0_i32 = arith.constant 0 : i32
    %c0_i32_0 = arith.constant 0 : i32
    %c0_i32_1 = arith.constant 0 : i32
    return %c0_i32, %c0_i32_0 : i32, i32
  }
  func.func @transform_3(%arg0: i32) -> (i32, i32) {
    %c0_i32 = arith.constant 0 : i32
    %c0_i32_0 = arith.constant 0 : i32
    %c0_i32_1 = arith.constant 0 : i32
    return %c0_i32, %c0_i32_0 : i32, i32
  }
  func.func @transform_4(%arg0: i32) -> (i32, i32) {
    %c0_i32 = arith.constant 0 : i32
    %c0_i32_0 = arith.constant 0 : i32
    %c0_i32_1 = arith.constant 0 : i32
    return %c0_i32, %c0_i32_0 : i32, i32
  }
  func.func @transform_5(%arg0: i32) -> (i32, i32) {
    %c0_i32 = arith.constant 0 : i32
    %c0_i32_0 = arith.constant 0 : i32
    %c0_i32_1 = arith.constant 0 : i32
    return %c0_i32, %c0_i32_0 : i32, i32
  }
  func.func @transform_6(%arg0: i32) -> (i32, i32) {
    %c0_i32 = arith.constant 0 : i32
    %c0_i32_0 = arith.constant 0 : i32
    %c0_i32_1 = arith.constant 0 : i32
    return %c0_i32, %c0_i32_0 : i32, i32
  }
  func.func @transform_7(%arg0: i32) -> (i32, i32) {
    %c0_i32 = arith.constant 0 : i32
    %c0_i32_0 = arith.constant 0 : i32
    %c0_i32_1 = arith.constant 0 : i32
    return %c0_i32, %c0_i32_0 : i32, i32
  }
  func.func @transform_8(%arg0: i32) -> (i32, i32) {
    %c0_i32 = arith.constant 0 : i32
    %c0_i32_0 = arith.constant 0 : i32
    %c0_i32_1 = arith.constant 0 : i32
    return %c0_i32, %c0_i32_0 : i32, i32
  }
  func.func @transform_9(%arg0: i32) -> (i32, i32) {
    %c0_i32 = arith.constant 0 : i32
    %c0_i32_0 = arith.constant 0 : i32
    %c0_i32_1 = arith.constant 0 : i32
    return %c0_i32, %c0_i32_0 : i32, i32
  }
  func.func @transform_10(%arg0: i32) -> (i32, i32) {
    %c0_i32 = arith.constant 0 : i32
    %c0_i32_0 = arith.constant 0 : i32
    %c0_i32_1 = arith.constant 0 : i32
    return %c0_i32, %c0_i32_0 : i32, i32
  }
  func.func @transform_11(%arg0: i32) -> (i32, i32) {
    %c0_i32 = arith.constant 0 : i32
    %c0_i32_0 = arith.constant 0 : i32
    %c0_i32_1 = arith.constant 0 : i32
    return %c0_i32, %c0_i32_0 : i32, i32
  }
  func.func @transform_12(%arg0: i32) -> (i32, i32) {
    %c0_i32 = arith.constant 0 : i32
    %c0_i32_0 = arith.constant 0 : i32
    %c0_i32_1 = arith.constant 0 : i32
    return %c0_i32, %c0_i32_0 : i32, i32
  }
  func.func @transform_13(%arg0: i32) -> (i32, i32) {
    %c0_i32 = arith.constant 0 : i32
    %c0_i32_0 = arith.constant 0 : i32
    %c0_i32_1 = arith.constant 0 : i32
    return %c0_i32, %c0_i32_0 : i32, i32
  }
  func.func @transform_14(%arg0: i32) -> (i32, i32) {
    %c0_i32 = arith.constant 0 : i32
    %c0_i32_0 = arith.constant 0 : i32
    %c0_i32_1 = arith.constant 0 : i32
    return %c0_i32, %c0_i32_0 : i32, i32
  }
  func.func @transform_15(%arg0: i32) -> (i32, i32) {
    %c0_i32 = arith.constant 0 : i32
    %c0_i32_0 = arith.constant 0 : i32
    %c0_i32_1 = arith.constant 0 : i32
    return %c0_i32, %c0_i32_0 : i32, i32
  }
  func.func @transform_16(%arg0: i32) -> (i32, i32) {
    %c0_i32 = arith.constant 0 : i32
    %c0_i32_0 = arith.constant 0 : i32
    %c0_i32_1 = arith.constant 0 : i32
    return %c0_i32, %c0_i32_0 : i32, i32
  }
  func.func @transform_17(%arg0: i32) -> (i32, i32) {
    %c0_i32 = arith.constant 0 : i32
    %c0_i32_0 = arith.constant 0 : i32
    %c0_i32_1 = arith.constant 0 : i32
    return %c0_i32, %c0_i32_0 : i32, i32
  }
  func.func @transform_18(%arg0: i32) -> (i32, i32) {
    %c0_i32 = arith.constant 0 : i32
    %c0_i32_0 = arith.constant 0 : i32
    %c0_i32_1 = arith.constant 0 : i32
    return %c0_i32, %c0_i32_0 : i32, i32
  }
  func.func @transform_19(%arg0: i32) -> (i32, i32, i32) {
    %c0_i32 = arith.constant 0 : i32
    %c0_i32_0 = arith.constant 0 : i32
    %c0_i32_1 = arith.constant 0 : i32
    return %arg0, %c0_i32, %c0_i32_0 : i32, i32, i32
  }
}

module attributes {stable_mosaic.version = 11 : i64} {
  func.func @_tsa_dim_kernel(%arg0: i32, %arg1: memref<1x12x32xf32, #tpu.memory_space<vmem>>, %arg2: memref<20x32xf32, #tpu.memory_space<vmem>>, %arg3: memref<20x1xi32, #tpu.memory_space<vmem>>, %arg4: memref<1x12xi32, #tpu.memory_space<vmem>>, %arg5: memref<12x1xi32, #tpu.memory_space<vmem>>, %arg6: memref<1x20xi32, #tpu.memory_space<vmem>>, %arg7: memref<32x32xbf16, #tpu.memory_space<vmem>>, %arg8: memref<1x32xf32, #tpu.memory_space<vmem>>, %arg9: memref<32x32xbf16, #tpu.memory_space<vmem>>, %arg10: memref<1x32xf32, #tpu.memory_space<vmem>>, %arg11: memref<32x32xbf16, #tpu.memory_space<vmem>>, %arg12: memref<1x32xf32, #tpu.memory_space<vmem>>, %arg13: memref<32x32xbf16, #tpu.memory_space<vmem>>, %arg14: memref<1x32xf32, #tpu.memory_space<vmem>>, %arg15: memref<32x32xbf16, #tpu.memory_space<vmem>>, %arg16: memref<1x32xf32, #tpu.memory_space<vmem>>, %arg17: memref<32x32xbf16, #tpu.memory_space<vmem>>, %arg18: memref<1x32xf32, #tpu.memory_space<vmem>>, %arg19: memref<32x32xbf16, #tpu.memory_space<vmem>>, %arg20: memref<1x32xf32, #tpu.memory_space<vmem>>, %arg21: memref<32x32xbf16, #tpu.memory_space<vmem>>, %arg22: memref<1x32xf32, #tpu.memory_space<vmem>>, %arg23: memref<1x32xf32, #tpu.memory_space<vmem>>, %arg24: memref<1x32xf32, #tpu.memory_space<vmem>>, %arg25: memref<32x64xbf16, #tpu.memory_space<vmem>>, %arg26: memref<1x64xf32, #tpu.memory_space<vmem>>, %arg27: memref<64x32xbf16, #tpu.memory_space<vmem>>, %arg28: memref<1x32xf32, #tpu.memory_space<vmem>>, %arg29: memref<1x32xf32, #tpu.memory_space<vmem>>, %arg30: memref<1x32xf32, #tpu.memory_space<vmem>>, %arg31: memref<1x12x32xf32, #tpu.memory_space<vmem>>) attributes {dimension_semantics = [#tpu.dimension_semantics<parallel>], iteration_bounds = array<i64: 2>, scalar_prefetch = 0 : i64, scratch_operands = 0 : i64, tpu.core_type = #tpu.core_type<tc>, window_params = [{transform_indices = @transform_0, window_bounds = array<i64: 1, 12, 32>}, {pipeline_mode = #tpu.pipeline_mode<synchronous>, transform_indices = @transform_1, window_bounds = array<i64: 20, 32>}, {pipeline_mode = #tpu.pipeline_mode<synchronous>, transform_indices = @transform_2, window_bounds = array<i64: 20, 1>}, {pipeline_mode = #tpu.pipeline_mode<synchronous>, transform_indices = @transform_3, window_bounds = array<i64: 1, 12>}, {pipeline_mode = #tpu.pipeline_mode<synchronous>, transform_indices = @transform_4, window_bounds = array<i64: 12, 1>}, {pipeline_mode = #tpu.pipeline_mode<synchronous>, transform_indices = @transform_5, window_bounds = array<i64: 1, 20>}, {pipeline_mode = #tpu.pipeline_mode<synchronous>, transform_indices = @transform_6, window_bounds = array<i64: 32, 32>}, {pipeline_mode = #tpu.pipeline_mode<synchronous>, transform_indices = @transform_7, window_bounds = array<i64: 1, 32>}, {pipeline_mode = #tpu.pipeline_mode<synchronous>, transform_indices = @transform_8, window_bounds = array<i64: 32, 32>}, {pipeline_mode = #tpu.pipeline_mode<synchronous>, transform_indices = @transform_9, window_bounds = array<i64: 1, 32>}, {pipeline_mode = #tpu.pipeline_mode<synchronous>, transform_indices = @transform_10, window_bounds = array<i64: 32, 32>}, {pipeline_mode = #tpu.pipeline_mode<synchronous>, transform_indices = @transform_11, window_bounds = array<i64: 1, 32>}, {pipeline_mode = #tpu.pipeline_mode<synchronous>, transform_indices = @transform_12, window_bounds = array<i64: 32, 32>}, {pipeline_mode = #tpu.pipeline_mode<synchronous>, transform_indices = @transform_13, window_bounds = array<i64: 1, 32>}, {pipeline_mode = #tpu.pipeline_mode<synchronous>, transform_indices = @transform_14, window_bounds = array<i64: 32, 32>}, {pipeline_mode = #tpu.pipeline_mode<synchronous>, transform_indices = @transform_15, window_bounds = array<i64: 1, 32>}, {pipeline_mode = #tpu.pipeline_mode<synchronous>, transform_indices = @transform_16, window_bounds = array<i64: 32, 32>}, {pipeline_mode = #tpu.pipeline_mode<synchronous>, transform_indices = @transform_17, window_bounds = array<i64: 1, 32>}, {pipeline_mode = #tpu.pipeline_mode<synchronous>, transform_indices = @transform_18, window_bounds = array<i64: 32, 32>}, {pipeline_mode = #tpu.pipeline_mode<synchronous>, transform_indices = @transform_19, window_bounds = array<i64: 1, 32>}, {pipeline_mode = #tpu.pipeline_mode<synchronous>, transform_indices = @transform_20, window_bounds = array<i64: 32, 32>}, {pipeline_mode = #tpu.pipeline_mode<synchronous>, transform_indices = @transform_21, window_bounds = array<i64: 1, 32>}, {pipeline_mode = #tpu.pipeline_mode<synchronous>, transform_indices = @transform_22, window_bounds = array<i64: 1, 32>}, {pipeline_mode = #tpu.pipeline_mode<synchronous>, transform_indices = @transform_23, window_bounds = array<i64: 1, 32>}, {pipeline_mode = #tpu.pipeline_mode<synchronous>, transform_indices = @transform_24, window_bounds = array<i64: 32, 64>}, {pipeline_mode = #tpu.pipeline_mode<synchronous>, transform_indices = @transform_25, window_bounds = array<i64: 1, 64>}, {pipeline_mode = #tpu.pipeline_mode<synchronous>, transform_indices = @transform_26, window_bounds = array<i64: 64, 32>}, {pipeline_mode = #tpu.pipeline_mode<synchronous>, transform_indices = @transform_27, window_bounds = array<i64: 1, 32>}, {pipeline_mode = #tpu.pipeline_mode<synchronous>, transform_indices = @transform_28, window_bounds = array<i64: 1, 32>}, {pipeline_mode = #tpu.pipeline_mode<synchronous>, transform_indices = @transform_29, window_bounds = array<i64: 1, 32>}, {transform_indices = @transform_30, window_bounds = array<i64: 1, 12, 32>}]} {
    %c0 = arith.constant 0 : index
    %c0_0 = arith.constant 0 : index
    %c0_1 = arith.constant 0 : index
    %0 = vector.load %arg1[%c0, %c0_0, %c0_1] : memref<1x12x32xf32, #tpu.memory_space<vmem>>, vector<1x12x32xf32>
    %1 = vector.shape_cast %0 : vector<1x12x32xf32> to vector<12x32xf32>
    %c0_2 = arith.constant 0 : index
    %c0_3 = arith.constant 0 : index
    %2 = vector.load %arg2[%c0_2, %c0_3] : memref<20x32xf32, #tpu.memory_space<vmem>>, vector<20x32xf32>
    %c0_4 = arith.constant 0 : index
    %c0_5 = arith.constant 0 : index
    %3 = vector.load %arg3[%c0_4, %c0_5] : memref<20x1xi32, #tpu.memory_space<vmem>>, vector<20x1xi32>
    %c0_6 = arith.constant 0 : index
    %c0_7 = arith.constant 0 : index
    %4 = vector.load %arg4[%c0_6, %c0_7] : memref<1x12xi32, #tpu.memory_space<vmem>>, vector<1x12xi32>
    %5 = vector.broadcast %3 : vector<20x1xi32> to vector<20x12xi32>
    %6 = vector.broadcast %4 : vector<1x12xi32> to vector<20x12xi32>
    %7 = arith.cmpi eq, %5, %6 : vector<20x12xi32>
    %cst = arith.constant 0.000000e+00 : f32
    %cst_8 = arith.constant -1.000000e+30 : f32
    %8 = vector.broadcast %cst : f32 to vector<20x12xf32>
    %9 = vector.broadcast %cst_8 : f32 to vector<20x12xf32>
    %10 = arith.select %7, %8, %9 : vector<20x12xi1>, vector<20x12xf32>
    %11 = arith.truncf %2 : vector<20x32xf32> to vector<20x32xbf16>
    %12 = arith.truncf %1 : vector<12x32xf32> to vector<12x32xbf16>
    %c0_9 = arith.constant 0 : index
    %c0_10 = arith.constant 0 : index
    %13 = vector.load %arg7[%c0_9, %c0_10] : memref<32x32xbf16, #tpu.memory_space<vmem>>, vector<32x32xbf16>
    %cst_11 = arith.constant dense<0.000000e+00> : vector<20x32xf32>
    %14 = tpu.matmul %11, %13, %cst_11 {dimension_numbers = #tpu.dot_dimension_numbers<[1], [0], [0], [1], [0, 0, 1, 1], [], []>} : vector<20x32xbf16>, vector<32x32xbf16>, vector<20x32xf32> -> vector<20x32xf32>
    %c0_12 = arith.constant 0 : index
    %c0_13 = arith.constant 0 : index
    %15 = vector.load %arg8[%c0_12, %c0_13] : memref<1x32xf32, #tpu.memory_space<vmem>>, vector<1x32xf32>
    %16 = vector.broadcast %15 : vector<1x32xf32> to vector<20x32xf32>
    %17 = arith.addf %14, %16 : vector<20x32xf32>
    %c0_14 = arith.constant 0 : index
    %c0_15 = arith.constant 0 : index
    %18 = vector.load %arg9[%c0_14, %c0_15] : memref<32x32xbf16, #tpu.memory_space<vmem>>, vector<32x32xbf16>
    %cst_16 = arith.constant dense<0.000000e+00> : vector<12x32xf32>
    %19 = tpu.matmul %12, %18, %cst_16 {dimension_numbers = #tpu.dot_dimension_numbers<[1], [0], [0], [1], [0, 0, 1, 1], [], []>} : vector<12x32xbf16>, vector<32x32xbf16>, vector<12x32xf32> -> vector<12x32xf32>
    %c0_17 = arith.constant 0 : index
    %c0_18 = arith.constant 0 : index
    %20 = vector.load %arg10[%c0_17, %c0_18] : memref<1x32xf32, #tpu.memory_space<vmem>>, vector<1x32xf32>
    %21 = vector.broadcast %20 : vector<1x32xf32> to vector<12x32xf32>
    %22 = arith.addf %19, %21 : vector<12x32xf32>
    %c0_19 = arith.constant 0 : index
    %c0_20 = arith.constant 0 : index
    %23 = vector.load %arg11[%c0_19, %c0_20] : memref<32x32xbf16, #tpu.memory_space<vmem>>, vector<32x32xbf16>
    %cst_21 = arith.constant dense<0.000000e+00> : vector<12x32xf32>
    %24 = tpu.matmul %12, %23, %cst_21 {dimension_numbers = #tpu.dot_dimension_numbers<[1], [0], [0], [1], [0, 0, 1, 1], [], []>} : vector<12x32xbf16>, vector<32x32xbf16>, vector<12x32xf32> -> vector<12x32xf32>
    %c0_22 = arith.constant 0 : index
    %c0_23 = arith.constant 0 : index
    %25 = vector.load %arg12[%c0_22, %c0_23] : memref<1x32xf32, #tpu.memory_space<vmem>>, vector<1x32xf32>
    %26 = vector.broadcast %25 : vector<1x32xf32> to vector<12x32xf32>
    %27 = arith.addf %24, %26 : vector<12x32xf32>
    %28 = vector.extract_strided_slice %17 {offsets = [0, 0], sizes = [20, 16], strides = [1, 1]} : vector<20x32xf32> to vector<20x16xf32>
    %29 = arith.truncf %28 : vector<20x16xf32> to vector<20x16xbf16>
    %30 = vector.extract_strided_slice %22 {offsets = [0, 0], sizes = [12, 16], strides = [1, 1]} : vector<12x32xf32> to vector<12x16xf32>
    %31 = arith.truncf %30 : vector<12x16xf32> to vector<12x16xbf16>
    %cst_24 = arith.constant dense<0.000000e+00> : vector<20x12xf32>
    %32 = tpu.matmul %29, %31, %cst_24 {dimension_numbers = #tpu.dot_dimension_numbers<[1], [1], [0], [0], [0, 0, 1, 0], [], []>} : vector<20x16xbf16>, vector<12x16xbf16>, vector<20x12xf32> -> vector<20x12xf32>
    %cst_25 = arith.constant 2.500000e-01 : f32
    %33 = vector.broadcast %cst_25 : f32 to vector<20x12xf32>
    %34 = arith.mulf %32, %33 : vector<20x12xf32>
    %35 = arith.addf %34, %10 : vector<20x12xf32>
    %cst_26 = arith.constant dense<0xFF800000> : vector<20xf32>
    %36 = vector.multi_reduction <maximumf>, %35, %cst_26 [1] : vector<20x12xf32> to vector<20xf32>
    %37 = vector.shape_cast %36 : vector<20xf32> to vector<20x1xf32>
    %38 = vector.broadcast %37 : vector<20x1xf32> to vector<20x12xf32>
    %39 = arith.subf %35, %38 : vector<20x12xf32>
    %40 = math.exp %39 : vector<20x12xf32>
    %cst_27 = arith.constant dense<0.000000e+00> : vector<20xf32>
    %41 = vector.multi_reduction <add>, %40, %cst_27 [1] : vector<20x12xf32> to vector<20xf32>
    %42 = vector.shape_cast %41 : vector<20xf32> to vector<20x1xf32>
    %43 = tpu.reciprocal %42 {approx = true} : vector<20x1xf32> -> vector<20x1xf32>
    %44 = vector.broadcast %43 : vector<20x1xf32> to vector<20x12xf32>
    %45 = arith.mulf %40, %44 : vector<20x12xf32>
    %46 = arith.truncf %45 : vector<20x12xf32> to vector<20x12xbf16>
    %47 = vector.extract_strided_slice %27 {offsets = [0, 0], sizes = [12, 16], strides = [1, 1]} : vector<12x32xf32> to vector<12x16xf32>
    %48 = arith.truncf %47 : vector<12x16xf32> to vector<12x16xbf16>
    %cst_28 = arith.constant dense<0.000000e+00> : vector<20x16xf32>
    %49 = tpu.matmul %46, %48, %cst_28 {dimension_numbers = #tpu.dot_dimension_numbers<[1], [0], [0], [1], [0, 0, 1, 1], [], []>} : vector<20x12xbf16>, vector<12x16xbf16>, vector<20x16xf32> -> vector<20x16xf32>
    %50 = vector.extract_strided_slice %17 {offsets = [0, 16], sizes = [20, 16], strides = [1, 1]} : vector<20x32xf32> to vector<20x16xf32>
    %51 = arith.truncf %50 : vector<20x16xf32> to vector<20x16xbf16>
    %52 = vector.extract_strided_slice %22 {offsets = [0, 16], sizes = [12, 16], strides = [1, 1]} : vector<12x32xf32> to vector<12x16xf32>
    %53 = arith.truncf %52 : vector<12x16xf32> to vector<12x16xbf16>
    %cst_29 = arith.constant dense<0.000000e+00> : vector<20x12xf32>
    %54 = tpu.matmul %51, %53, %cst_29 {dimension_numbers = #tpu.dot_dimension_numbers<[1], [1], [0], [0], [0, 0, 1, 0], [], []>} : vector<20x16xbf16>, vector<12x16xbf16>, vector<20x12xf32> -> vector<20x12xf32>
    %cst_30 = arith.constant 2.500000e-01 : f32
    %55 = vector.broadcast %cst_30 : f32 to vector<20x12xf32>
    %56 = arith.mulf %54, %55 : vector<20x12xf32>
    %57 = arith.addf %56, %10 : vector<20x12xf32>
    %cst_31 = arith.constant dense<0xFF800000> : vector<20xf32>
    %58 = vector.multi_reduction <maximumf>, %57, %cst_31 [1] : vector<20x12xf32> to vector<20xf32>
    %59 = vector.shape_cast %58 : vector<20xf32> to vector<20x1xf32>
    %60 = vector.broadcast %59 : vector<20x1xf32> to vector<20x12xf32>
    %61 = arith.subf %57, %60 : vector<20x12xf32>
    %62 = math.exp %61 : vector<20x12xf32>
    %cst_32 = arith.constant dense<0.000000e+00> : vector<20xf32>
    %63 = vector.multi_reduction <add>, %62, %cst_32 [1] : vector<20x12xf32> to vector<20xf32>
    %64 = vector.shape_cast %63 : vector<20xf32> to vector<20x1xf32>
    %65 = tpu.reciprocal %64 {approx = true} : vector<20x1xf32> -> vector<20x1xf32>
    %66 = vector.broadcast %65 : vector<20x1xf32> to vector<20x12xf32>
    %67 = arith.mulf %62, %66 : vector<20x12xf32>
    %68 = arith.truncf %67 : vector<20x12xf32> to vector<20x12xbf16>
    %69 = vector.extract_strided_slice %27 {offsets = [0, 16], sizes = [12, 16], strides = [1, 1]} : vector<12x32xf32> to vector<12x16xf32>
    %70 = arith.truncf %69 : vector<12x16xf32> to vector<12x16xbf16>
    %cst_33 = arith.constant dense<0.000000e+00> : vector<20x16xf32>
    %71 = tpu.matmul %68, %70, %cst_33 {dimension_numbers = #tpu.dot_dimension_numbers<[1], [0], [0], [1], [0, 0, 1, 1], [], []>} : vector<20x12xbf16>, vector<12x16xbf16>, vector<20x16xf32> -> vector<20x16xf32>
    %72 = tpu.concatenate %49, %71 in 1 : vector<20x16xf32>, vector<20x16xf32> -> vector<20x32xf32>
    %73 = arith.truncf %72 : vector<20x32xf32> to vector<20x32xbf16>
    %c0_34 = arith.constant 0 : index
    %c0_35 = arith.constant 0 : index
    %74 = vector.load %arg13[%c0_34, %c0_35] : memref<32x32xbf16, #tpu.memory_space<vmem>>, vector<32x32xbf16>
    %cst_36 = arith.constant dense<0.000000e+00> : vector<20x32xf32>
    %75 = tpu.matmul %73, %74, %cst_36 {dimension_numbers = #tpu.dot_dimension_numbers<[1], [0], [0], [1], [0, 0, 1, 1], [], []>} : vector<20x32xbf16>, vector<32x32xbf16>, vector<20x32xf32> -> vector<20x32xf32>
    %c0_37 = arith.constant 0 : index
    %c0_38 = arith.constant 0 : index
    %76 = vector.load %arg14[%c0_37, %c0_38] : memref<1x32xf32, #tpu.memory_space<vmem>>, vector<1x32xf32>
    %77 = vector.broadcast %76 : vector<1x32xf32> to vector<20x32xf32>
    %78 = arith.addf %75, %77 : vector<20x32xf32>
    %c0_39 = arith.constant 0 : index
    %c0_40 = arith.constant 0 : index
    %79 = vector.load %arg5[%c0_39, %c0_40] : memref<12x1xi32, #tpu.memory_space<vmem>>, vector<12x1xi32>
    %c0_41 = arith.constant 0 : index
    %c0_42 = arith.constant 0 : index
    %80 = vector.load %arg6[%c0_41, %c0_42] : memref<1x20xi32, #tpu.memory_space<vmem>>, vector<1x20xi32>
    %81 = vector.broadcast %79 : vector<12x1xi32> to vector<12x20xi32>
    %82 = vector.broadcast %80 : vector<1x20xi32> to vector<12x20xi32>
    %83 = arith.cmpi eq, %81, %82 : vector<12x20xi32>
    %cst_43 = arith.constant 0.000000e+00 : f32
    %cst_44 = arith.constant -1.000000e+30 : f32
    %84 = vector.broadcast %cst_43 : f32 to vector<12x20xf32>
    %85 = vector.broadcast %cst_44 : f32 to vector<12x20xf32>
    %86 = arith.select %83, %84, %85 : vector<12x20xi1>, vector<12x20xf32>
    %87 = arith.truncf %1 : vector<12x32xf32> to vector<12x32xbf16>
    %88 = arith.truncf %78 : vector<20x32xf32> to vector<20x32xbf16>
    %c0_45 = arith.constant 0 : index
    %c0_46 = arith.constant 0 : index
    %89 = vector.load %arg15[%c0_45, %c0_46] : memref<32x32xbf16, #tpu.memory_space<vmem>>, vector<32x32xbf16>
    %cst_47 = arith.constant dense<0.000000e+00> : vector<12x32xf32>
    %90 = tpu.matmul %87, %89, %cst_47 {dimension_numbers = #tpu.dot_dimension_numbers<[1], [0], [0], [1], [0, 0, 1, 1], [], []>} : vector<12x32xbf16>, vector<32x32xbf16>, vector<12x32xf32> -> vector<12x32xf32>
    %c0_48 = arith.constant 0 : index
    %c0_49 = arith.constant 0 : index
    %91 = vector.load %arg16[%c0_48, %c0_49] : memref<1x32xf32, #tpu.memory_space<vmem>>, vector<1x32xf32>
    %92 = vector.broadcast %91 : vector<1x32xf32> to vector<12x32xf32>
    %93 = arith.addf %90, %92 : vector<12x32xf32>
    %c0_50 = arith.constant 0 : index
    %c0_51 = arith.constant 0 : index
    %94 = vector.load %arg17[%c0_50, %c0_51] : memref<32x32xbf16, #tpu.memory_space<vmem>>, vector<32x32xbf16>
    %cst_52 = arith.constant dense<0.000000e+00> : vector<20x32xf32>
    %95 = tpu.matmul %88, %94, %cst_52 {dimension_numbers = #tpu.dot_dimension_numbers<[1], [0], [0], [1], [0, 0, 1, 1], [], []>} : vector<20x32xbf16>, vector<32x32xbf16>, vector<20x32xf32> -> vector<20x32xf32>
    %c0_53 = arith.constant 0 : index
    %c0_54 = arith.constant 0 : index
    %96 = vector.load %arg18[%c0_53, %c0_54] : memref<1x32xf32, #tpu.memory_space<vmem>>, vector<1x32xf32>
    %97 = vector.broadcast %96 : vector<1x32xf32> to vector<20x32xf32>
    %98 = arith.addf %95, %97 : vector<20x32xf32>
    %c0_55 = arith.constant 0 : index
    %c0_56 = arith.constant 0 : index
    %99 = vector.load %arg19[%c0_55, %c0_56] : memref<32x32xbf16, #tpu.memory_space<vmem>>, vector<32x32xbf16>
    %cst_57 = arith.constant dense<0.000000e+00> : vector<20x32xf32>
    %100 = tpu.matmul %88, %99, %cst_57 {dimension_numbers = #tpu.dot_dimension_numbers<[1], [0], [0], [1], [0, 0, 1, 1], [], []>} : vector<20x32xbf16>, vector<32x32xbf16>, vector<20x32xf32> -> vector<20x32xf32>
    %c0_58 = arith.constant 0 : index
    %c0_59 = arith.constant 0 : index
    %101 = vector.load %arg20[%c0_58, %c0_59] : memref<1x32xf32, #tpu.memory_space<vmem>>, vector<1x32xf32>
    %102 = vector.broadcast %101 : vector<1x32xf32> to vector<20x32xf32>
    %103 = arith.addf %100, %102 : vector<20x32xf32>
    %104 = vector.extract_strided_slice %93 {offsets = [0, 0], sizes = [12, 16], strides = [1, 1]} : vector<12x32xf32> to vector<12x16xf32>
    %105 = arith.truncf %104 : vector<12x16xf32> to vector<12x16xbf16>
    %106 = vector.extract_strided_slice %98 {offsets = [0, 0], sizes = [20, 16], strides = [1, 1]} : vector<20x32xf32> to vector<20x16xf32>
    %107 = arith.truncf %106 : vector<20x16xf32> to vector<20x16xbf16>
    %cst_60 = arith.constant dense<0.000000e+00> : vector<12x20xf32>
    %108 = tpu.matmul %105, %107, %cst_60 {dimension_numbers = #tpu.dot_dimension_numbers<[1], [1], [0], [0], [0, 0, 1, 0], [], []>} : vector<12x16xbf16>, vector<20x16xbf16>, vector<12x20xf32> -> vector<12x20xf32>
    %cst_61 = arith.constant 2.500000e-01 : f32
    %109 = vector.broadcast %cst_61 : f32 to vector<12x20xf32>
    %110 = arith.mulf %108, %109 : vector<12x20xf32>
    %111 = arith.addf %110, %86 : vector<12x20xf32>
    %cst_62 = arith.constant dense<0xFF800000> : vector<12xf32>
    %112 = vector.multi_reduction <maximumf>, %111, %cst_62 [1] : vector<12x20xf32> to vector<12xf32>
    %113 = vector.shape_cast %112 : vector<12xf32> to vector<12x1xf32>
    %114 = vector.broadcast %113 : vector<12x1xf32> to vector<12x20xf32>
    %115 = arith.subf %111, %114 : vector<12x20xf32>
    %116 = math.exp %115 : vector<12x20xf32>
    %cst_63 = arith.constant dense<0.000000e+00> : vector<12xf32>
    %117 = vector.multi_reduction <add>, %116, %cst_63 [1] : vector<12x20xf32> to vector<12xf32>
    %118 = vector.shape_cast %117 : vector<12xf32> to vector<12x1xf32>
    %119 = tpu.reciprocal %118 {approx = true} : vector<12x1xf32> -> vector<12x1xf32>
    %120 = vector.broadcast %119 : vector<12x1xf32> to vector<12x20xf32>
    %121 = arith.mulf %116, %120 : vector<12x20xf32>
    %122 = arith.truncf %121 : vector<12x20xf32> to vector<12x20xbf16>
    %123 = vector.extract_strided_slice %103 {offsets = [0, 0], sizes = [20, 16], strides = [1, 1]} : vector<20x32xf32> to vector<20x16xf32>
    %124 = arith.truncf %123 : vector<20x16xf32> to vector<20x16xbf16>
    %cst_64 = arith.constant dense<0.000000e+00> : vector<12x16xf32>
    %125 = tpu.matmul %122, %124, %cst_64 {dimension_numbers = #tpu.dot_dimension_numbers<[1], [0], [0], [1], [0, 0, 1, 1], [], []>} : vector<12x20xbf16>, vector<20x16xbf16>, vector<12x16xf32> -> vector<12x16xf32>
    %126 = vector.extract_strided_slice %93 {offsets = [0, 16], sizes = [12, 16], strides = [1, 1]} : vector<12x32xf32> to vector<12x16xf32>
    %127 = arith.truncf %126 : vector<12x16xf32> to vector<12x16xbf16>
    %128 = vector.extract_strided_slice %98 {offsets = [0, 16], sizes = [20, 16], strides = [1, 1]} : vector<20x32xf32> to vector<20x16xf32>
    %129 = arith.truncf %128 : vector<20x16xf32> to vector<20x16xbf16>
    %cst_65 = arith.constant dense<0.000000e+00> : vector<12x20xf32>
    %130 = tpu.matmul %127, %129, %cst_65 {dimension_numbers = #tpu.dot_dimension_numbers<[1], [1], [0], [0], [0, 0, 1, 0], [], []>} : vector<12x16xbf16>, vector<20x16xbf16>, vector<12x20xf32> -> vector<12x20xf32>
    %cst_66 = arith.constant 2.500000e-01 : f32
    %131 = vector.broadcast %cst_66 : f32 to vector<12x20xf32>
    %132 = arith.mulf %130, %131 : vector<12x20xf32>
    %133 = arith.addf %132, %86 : vector<12x20xf32>
    %cst_67 = arith.constant dense<0xFF800000> : vector<12xf32>
    %134 = vector.multi_reduction <maximumf>, %133, %cst_67 [1] : vector<12x20xf32> to vector<12xf32>
    %135 = vector.shape_cast %134 : vector<12xf32> to vector<12x1xf32>
    %136 = vector.broadcast %135 : vector<12x1xf32> to vector<12x20xf32>
    %137 = arith.subf %133, %136 : vector<12x20xf32>
    %138 = math.exp %137 : vector<12x20xf32>
    %cst_68 = arith.constant dense<0.000000e+00> : vector<12xf32>
    %139 = vector.multi_reduction <add>, %138, %cst_68 [1] : vector<12x20xf32> to vector<12xf32>
    %140 = vector.shape_cast %139 : vector<12xf32> to vector<12x1xf32>
    %141 = tpu.reciprocal %140 {approx = true} : vector<12x1xf32> -> vector<12x1xf32>
    %142 = vector.broadcast %141 : vector<12x1xf32> to vector<12x20xf32>
    %143 = arith.mulf %138, %142 : vector<12x20xf32>
    %144 = arith.truncf %143 : vector<12x20xf32> to vector<12x20xbf16>
    %145 = vector.extract_strided_slice %103 {offsets = [0, 16], sizes = [20, 16], strides = [1, 1]} : vector<20x32xf32> to vector<20x16xf32>
    %146 = arith.truncf %145 : vector<20x16xf32> to vector<20x16xbf16>
    %cst_69 = arith.constant dense<0.000000e+00> : vector<12x16xf32>
    %147 = tpu.matmul %144, %146, %cst_69 {dimension_numbers = #tpu.dot_dimension_numbers<[1], [0], [0], [1], [0, 0, 1, 1], [], []>} : vector<12x20xbf16>, vector<20x16xbf16>, vector<12x16xf32> -> vector<12x16xf32>
    %148 = tpu.concatenate %125, %147 in 1 : vector<12x16xf32>, vector<12x16xf32> -> vector<12x32xf32>
    %149 = arith.truncf %148 : vector<12x32xf32> to vector<12x32xbf16>
    %c0_70 = arith.constant 0 : index
    %c0_71 = arith.constant 0 : index
    %150 = vector.load %arg21[%c0_70, %c0_71] : memref<32x32xbf16, #tpu.memory_space<vmem>>, vector<32x32xbf16>
    %cst_72 = arith.constant dense<0.000000e+00> : vector<12x32xf32>
    %151 = tpu.matmul %149, %150, %cst_72 {dimension_numbers = #tpu.dot_dimension_numbers<[1], [0], [0], [1], [0, 0, 1, 1], [], []>} : vector<12x32xbf16>, vector<32x32xbf16>, vector<12x32xf32> -> vector<12x32xf32>
    %c0_73 = arith.constant 0 : index
    %c0_74 = arith.constant 0 : index
    %152 = vector.load %arg22[%c0_73, %c0_74] : memref<1x32xf32, #tpu.memory_space<vmem>>, vector<1x32xf32>
    %153 = vector.broadcast %152 : vector<1x32xf32> to vector<12x32xf32>
    %154 = arith.addf %151, %153 : vector<12x32xf32>
    %155 = arith.addf %1, %154 : vector<12x32xf32>
    %cst_75 = arith.constant dense<0.000000e+00> : vector<12xf32>
    %156 = vector.multi_reduction <add>, %155, %cst_75 [1] : vector<12x32xf32> to vector<12xf32>
    %157 = vector.shape_cast %156 : vector<12xf32> to vector<12x1xf32>
    %cst_76 = arith.constant 3.200000e+01 : f32
    %158 = vector.broadcast %cst_76 : f32 to vector<12x1xf32>
    %159 = arith.divf %157, %158 : vector<12x1xf32>
    %160 = vector.broadcast %159 : vector<12x1xf32> to vector<12x32xf32>
    %161 = arith.subf %155, %160 : vector<12x32xf32>
    %162 = arith.mulf %161, %161 : vector<12x32xf32>
    %cst_77 = arith.constant dense<0.000000e+00> : vector<12xf32>
    %163 = vector.multi_reduction <add>, %162, %cst_77 [1] : vector<12x32xf32> to vector<12xf32>
    %164 = vector.shape_cast %163 : vector<12xf32> to vector<12x1xf32>
    %cst_78 = arith.constant 3.200000e+01 : f32
    %165 = vector.broadcast %cst_78 : f32 to vector<12x1xf32>
    %166 = arith.divf %164, %165 : vector<12x1xf32>
    %167 = vector.broadcast %159 : vector<12x1xf32> to vector<12x32xf32>
    %168 = arith.subf %155, %167 : vector<12x32xf32>
    %cst_79 = arith.constant 9.99999974E-6 : f32
    %169 = vector.broadcast %cst_79 : f32 to vector<12x1xf32>
    %170 = arith.addf %166, %169 : vector<12x1xf32>
    %171 = math.rsqrt %170 : vector<12x1xf32>
    %172 = vector.broadcast %171 : vector<12x1xf32> to vector<12x32xf32>
    %173 = arith.mulf %168, %172 : vector<12x32xf32>
    %c0_80 = arith.constant 0 : index
    %c0_81 = arith.constant 0 : index
    %174 = vector.load %arg23[%c0_80, %c0_81] : memref<1x32xf32, #tpu.memory_space<vmem>>, vector<1x32xf32>
    %175 = vector.broadcast %174 : vector<1x32xf32> to vector<12x32xf32>
    %176 = arith.mulf %173, %175 : vector<12x32xf32>
    %c0_82 = arith.constant 0 : index
    %c0_83 = arith.constant 0 : index
    %177 = vector.load %arg24[%c0_82, %c0_83] : memref<1x32xf32, #tpu.memory_space<vmem>>, vector<1x32xf32>
    %178 = vector.broadcast %177 : vector<1x32xf32> to vector<12x32xf32>
    %179 = arith.addf %176, %178 : vector<12x32xf32>
    %180 = arith.truncf %179 : vector<12x32xf32> to vector<12x32xbf16>
    %c0_84 = arith.constant 0 : index
    %c0_85 = arith.constant 0 : index
    %181 = vector.load %arg25[%c0_84, %c0_85] : memref<32x64xbf16, #tpu.memory_space<vmem>>, vector<32x64xbf16>
    %cst_86 = arith.constant dense<0.000000e+00> : vector<12x64xf32>
    %182 = tpu.matmul %180, %181, %cst_86 {dimension_numbers = #tpu.dot_dimension_numbers<[1], [0], [0], [1], [0, 0, 1, 1], [], []>} : vector<12x32xbf16>, vector<32x64xbf16>, vector<12x64xf32> -> vector<12x64xf32>
    %c0_87 = arith.constant 0 : index
    %c0_88 = arith.constant 0 : index
    %183 = vector.load %arg26[%c0_87, %c0_88] : memref<1x64xf32, #tpu.memory_space<vmem>>, vector<1x64xf32>
    %184 = vector.broadcast %183 : vector<1x64xf32> to vector<12x64xf32>
    %185 = arith.addf %182, %184 : vector<12x64xf32>
    %cst_89 = arith.constant 5.000000e-01 : f32
    %186 = vector.broadcast %cst_89 : f32 to vector<12x64xf32>
    %187 = arith.mulf %186, %185 : vector<12x64xf32>
    %cst_90 = arith.constant 0.707106769 : f32
    %188 = vector.broadcast %cst_90 : f32 to vector<12x64xf32>
    %189 = arith.mulf %185, %188 : vector<12x64xf32>
    %cst_91 = arith.constant 0.000000e+00 : f32
    %190 = vector.broadcast %cst_91 : f32 to vector<12x64xf32>
    %191 = arith.cmpf oge, %189, %190 : vector<12x64xf32>
    %cst_92 = arith.constant 1.000000e+00 : f32
    %cst_93 = arith.constant -1.000000e+00 : f32
    %192 = vector.broadcast %cst_92 : f32 to vector<12x64xf32>
    %193 = vector.broadcast %cst_93 : f32 to vector<12x64xf32>
    %194 = arith.select %191, %192, %193 : vector<12x64xi1>, vector<12x64xf32>
    %195 = math.absf %189 : vector<12x64xf32>
    %cst_94 = arith.constant 0.327591091 : f32
    %196 = vector.broadcast %cst_94 : f32 to vector<12x64xf32>
    %197 = arith.mulf %196, %195 : vector<12x64xf32>
    %cst_95 = arith.constant 1.000000e+00 : f32
    %198 = vector.broadcast %cst_95 : f32 to vector<12x64xf32>
    %199 = arith.addf %198, %197 : vector<12x64xf32>
    %cst_96 = arith.constant 1.000000e+00 : f32
    %200 = vector.broadcast %cst_96 : f32 to vector<12x64xf32>
    %201 = arith.divf %200, %199 : vector<12x64xf32>
    %cst_97 = arith.constant 1.06140542 : f32
    %202 = vector.broadcast %cst_97 : f32 to vector<12x64xf32>
    %203 = arith.mulf %202, %201 : vector<12x64xf32>
    %cst_98 = arith.constant -1.45315206 : f32
    %204 = vector.broadcast %cst_98 : f32 to vector<12x64xf32>
    %205 = arith.addf %203, %204 : vector<12x64xf32>
    %206 = arith.mulf %205, %201 : vector<12x64xf32>
    %cst_99 = arith.constant 1.42141378 : f32
    %207 = vector.broadcast %cst_99 : f32 to vector<12x64xf32>
    %208 = arith.addf %206, %207 : vector<12x64xf32>
    %209 = arith.mulf %208, %201 : vector<12x64xf32>
    %cst_100 = arith.constant -0.284496725 : f32
    %210 = vector.broadcast %cst_100 : f32 to vector<12x64xf32>
    %211 = arith.addf %209, %210 : vector<12x64xf32>
    %212 = arith.mulf %211, %201 : vector<12x64xf32>
    %cst_101 = arith.constant 0.254829586 : f32
    %213 = vector.broadcast %cst_101 : f32 to vector<12x64xf32>
    %214 = arith.addf %212, %213 : vector<12x64xf32>
    %215 = arith.mulf %214, %201 : vector<12x64xf32>
    %cst_102 = arith.constant 0.000000e+00 : f32
    %216 = vector.broadcast %cst_102 : f32 to vector<12x64xf32>
    %217 = arith.subf %216, %195 : vector<12x64xf32>
    %218 = arith.mulf %217, %195 : vector<12x64xf32>
    %219 = math.exp %218 : vector<12x64xf32>
    %220 = arith.mulf %215, %219 : vector<12x64xf32>
    %cst_103 = arith.constant 1.000000e+00 : f32
    %221 = vector.broadcast %cst_103 : f32 to vector<12x64xf32>
    %222 = arith.subf %221, %220 : vector<12x64xf32>
    %223 = arith.mulf %194, %222 : vector<12x64xf32>
    %cst_104 = arith.constant 1.000000e+00 : f32
    %224 = vector.broadcast %cst_104 : f32 to vector<12x64xf32>
    %225 = arith.addf %224, %223 : vector<12x64xf32>
    %226 = arith.mulf %187, %225 : vector<12x64xf32>
    %227 = arith.truncf %226 : vector<12x64xf32> to vector<12x64xbf16>
    %c0_105 = arith.constant 0 : index
    %c0_106 = arith.constant 0 : index
    %228 = vector.load %arg27[%c0_105, %c0_106] : memref<64x32xbf16, #tpu.memory_space<vmem>>, vector<64x32xbf16>
    %cst_107 = arith.constant dense<0.000000e+00> : vector<12x32xf32>
    %229 = tpu.matmul %227, %228, %cst_107 {dimension_numbers = #tpu.dot_dimension_numbers<[1], [0], [0], [1], [0, 0, 1, 1], [], []>} : vector<12x64xbf16>, vector<64x32xbf16>, vector<12x32xf32> -> vector<12x32xf32>
    %c0_108 = arith.constant 0 : index
    %c0_109 = arith.constant 0 : index
    %230 = vector.load %arg28[%c0_108, %c0_109] : memref<1x32xf32, #tpu.memory_space<vmem>>, vector<1x32xf32>
    %231 = vector.broadcast %230 : vector<1x32xf32> to vector<12x32xf32>
    %232 = arith.addf %229, %231 : vector<12x32xf32>
    %233 = arith.addf %179, %232 : vector<12x32xf32>
    %cst_110 = arith.constant dense<0.000000e+00> : vector<12xf32>
    %234 = vector.multi_reduction <add>, %233, %cst_110 [1] : vector<12x32xf32> to vector<12xf32>
    %235 = vector.shape_cast %234 : vector<12xf32> to vector<12x1xf32>
    %cst_111 = arith.constant 3.200000e+01 : f32
    %236 = vector.broadcast %cst_111 : f32 to vector<12x1xf32>
    %237 = arith.divf %235, %236 : vector<12x1xf32>
    %238 = vector.broadcast %237 : vector<12x1xf32> to vector<12x32xf32>
    %239 = arith.subf %233, %238 : vector<12x32xf32>
    %240 = arith.mulf %239, %239 : vector<12x32xf32>
    %cst_112 = arith.constant dense<0.000000e+00> : vector<12xf32>
    %241 = vector.multi_reduction <add>, %240, %cst_112 [1] : vector<12x32xf32> to vector<12xf32>
    %242 = vector.shape_cast %241 : vector<12xf32> to vector<12x1xf32>
    %cst_113 = arith.constant 3.200000e+01 : f32
    %243 = vector.broadcast %cst_113 : f32 to vector<12x1xf32>
    %244 = arith.divf %242, %243 : vector<12x1xf32>
    %245 = vector.broadcast %237 : vector<12x1xf32> to vector<12x32xf32>
    %246 = arith.subf %233, %245 : vector<12x32xf32>
    %cst_114 = arith.constant 9.99999974E-6 : f32
    %247 = vector.broadcast %cst_114 : f32 to vector<12x1xf32>
    %248 = arith.addf %244, %247 : vector<12x1xf32>
    %249 = math.rsqrt %248 : vector<12x1xf32>
    %250 = vector.broadcast %249 : vector<12x1xf32> to vector<12x32xf32>
    %251 = arith.mulf %246, %250 : vector<12x32xf32>
    %c0_115 = arith.constant 0 : index
    %c0_116 = arith.constant 0 : index
    %252 = vector.load %arg29[%c0_115, %c0_116] : memref<1x32xf32, #tpu.memory_space<vmem>>, vector<1x32xf32>
    %253 = vector.broadcast %252 : vector<1x32xf32> to vector<12x32xf32>
    %254 = arith.mulf %251, %253 : vector<12x32xf32>
    %c0_117 = arith.constant 0 : index
    %c0_118 = arith.constant 0 : index
    %255 = vector.load %arg30[%c0_117, %c0_118] : memref<1x32xf32, #tpu.memory_space<vmem>>, vector<1x32xf32>
    %256 = vector.broadcast %255 : vector<1x32xf32> to vector<12x32xf32>
    %257 = arith.addf %254, %256 : vector<12x32xf32>
    %c0_119 = arith.constant 0 : index
    %c0_120 = arith.constant 0 : index
    %c0_121 = arith.constant 0 : index
    %258 = vector.load %arg31[%c0_119, %c0_120, %c0_121] : memref<1x12x32xf32, #tpu.memory_space<vmem>>, vector<1x12x32xf32>
    %259 = vector.shape_cast %258 : vector<1x12x32xf32> to vector<12x32xf32>
    %260 = vector.shape_cast %257 : vector<12x32xf32> to vector<1x12x32xf32>
    tpu.vector_store %arg31[%c0_119, %c0_120, %c0_121], %260 {strides = array<i32>} : memref<1x12x32xf32, #tpu.memory_space<vmem>>, vector<1x12x32xf32>,
    return
  }
  func.func @transform_0(%arg0: i32) -> (i32, i32, i32) {
    %c0_i32 = arith.constant 0 : i32
    %c0_i32_0 = arith.constant 0 : i32
    %c0_i32_1 = arith.constant 0 : i32
    return %arg0, %c0_i32, %c0_i32_0 : i32, i32, i32
  }
  func.func @transform_1(%arg0: i32) -> (i32, i32) {
    %c0_i32 = arith.constant 0 : i32
    %c0_i32_0 = arith.constant 0 : i32
    %c0_i32_1 = arith.constant 0 : i32
    return %c0_i32, %c0_i32_0 : i32, i32
  }
  func.func @transform_2(%arg0: i32) -> (i32, i32) {
    %c0_i32 = arith.constant 0 : i32
    %c0_i32_0 = arith.constant 0 : i32
    %c0_i32_1 = arith.constant 0 : i32
    return %c0_i32, %c0_i32_0 : i32, i32
  }
  func.func @transform_3(%arg0: i32) -> (i32, i32) {
    %c0_i32 = arith.constant 0 : i32
    %c0_i32_0 = arith.constant 0 : i32
    %c0_i32_1 = arith.constant 0 : i32
    return %c0_i32, %c0_i32_0 : i32, i32
  }
  func.func @transform_4(%arg0: i32) -> (i32, i32) {
    %c0_i32 = arith.constant 0 : i32
    %c0_i32_0 = arith.constant 0 : i32
    %c0_i32_1 = arith.constant 0 : i32
    return %c0_i32, %c0_i32_0 : i32, i32
  }
  func.func @transform_5(%arg0: i32) -> (i32, i32) {
    %c0_i32 = arith.constant 0 : i32
    %c0_i32_0 = arith.constant 0 : i32
    %c0_i32_1 = arith.constant 0 : i32
    return %c0_i32, %c0_i32_0 : i32, i32
  }
  func.func @transform_6(%arg0: i32) -> (i32, i32) {
    %c0_i32 = arith.constant 0 : i32
    %c0_i32_0 = arith.constant 0 : i32
    %c0_i32_1 = arith.constant 0 : i32
    return %c0_i32, %c0_i32_0 : i32, i32
  }
  func.func @transform_7(%arg0: i32) -> (i32, i32) {
    %c0_i32 = arith.constant 0 : i32
    %c0_i32_0 = arith.constant 0 : i32
    %c0_i32_1 = arith.constant 0 : i32
    return %c0_i32, %c0_i32_0 : i32, i32
  }
  func.func @transform_8(%arg0: i32) -> (i32, i32) {
    %c0_i32 = arith.constant 0 : i32
    %c0_i32_0 = arith.constant 0 : i32
    %c0_i32_1 = arith.constant 0 : i32
    return %c0_i32, %c0_i32_0 : i32, i32
  }
  func.func @transform_9(%arg0: i32) -> (i32, i32) {
    %c0_i32 = arith.constant 0 : i32
    %c0_i32_0 = arith.constant 0 : i32
    %c0_i32_1 = arith.constant 0 : i32
    return %c0_i32, %c0_i32_0 : i32, i32
  }
  func.func @transform_10(%arg0: i32) -> (i32, i32) {
    %c0_i32 = arith.constant 0 : i32
    %c0_i32_0 = arith.constant 0 : i32
    %c0_i32_1 = arith.constant 0 : i32
    return %c0_i32, %c0_i32_0 : i32, i32
  }
  func.func @transform_11(%arg0: i32) -> (i32, i32) {
    %c0_i32 = arith.constant 0 : i32
    %c0_i32_0 = arith.constant 0 : i32
    %c0_i32_1 = arith.constant 0 : i32
    return %c0_i32, %c0_i32_0 : i32, i32
  }
  func.func @transform_12(%arg0: i32) -> (i32, i32) {
    %c0_i32 = arith.constant 0 : i32
    %c0_i32_0 = arith.constant 0 : i32
    %c0_i32_1 = arith.constant 0 : i32
    return %c0_i32, %c0_i32_0 : i32, i32
  }
  func.func @transform_13(%arg0: i32) -> (i32, i32) {
    %c0_i32 = arith.constant 0 : i32
    %c0_i32_0 = arith.constant 0 : i32
    %c0_i32_1 = arith.constant 0 : i32
    return %c0_i32, %c0_i32_0 : i32, i32
  }
  func.func @transform_14(%arg0: i32) -> (i32, i32) {
    %c0_i32 = arith.constant 0 : i32
    %c0_i32_0 = arith.constant 0 : i32
    %c0_i32_1 = arith.constant 0 : i32
    return %c0_i32, %c0_i32_0 : i32, i32
  }
  func.func @transform_15(%arg0: i32) -> (i32, i32) {
    %c0_i32 = arith.constant 0 : i32
    %c0_i32_0 = arith.constant 0 : i32
    %c0_i32_1 = arith.constant 0 : i32
    return %c0_i32, %c0_i32_0 : i32, i32
  }
  func.func @transform_16(%arg0: i32) -> (i32, i32) {
    %c0_i32 = arith.constant 0 : i32
    %c0_i32_0 = arith.constant 0 : i32
    %c0_i32_1 = arith.constant 0 : i32
    return %c0_i32, %c0_i32_0 : i32, i32
  }
  func.func @transform_17(%arg0: i32) -> (i32, i32) {
    %c0_i32 = arith.constant 0 : i32
    %c0_i32_0 = arith.constant 0 : i32
    %c0_i32_1 = arith.constant 0 : i32
    return %c0_i32, %c0_i32_0 : i32, i32
  }
  func.func @transform_18(%arg0: i32) -> (i32, i32) {
    %c0_i32 = arith.constant 0 : i32
    %c0_i32_0 = arith.constant 0 : i32
    %c0_i32_1 = arith.constant 0 : i32
    return %c0_i32, %c0_i32_0 : i32, i32
  }
  func.func @transform_19(%arg0: i32) -> (i32, i32) {
    %c0_i32 = arith.constant 0 : i32
    %c0_i32_0 = arith.constant 0 : i32
    %c0_i32_1 = arith.constant 0 : i32
    return %c0_i32, %c0_i32_0 : i32, i32
  }
  func.func @transform_20(%arg0: i32) -> (i32, i32) {
    %c0_i32 = arith.constant 0 : i32
    %c0_i32_0 = arith.constant 0 : i32
    %c0_i32_1 = arith.constant 0 : i32
    return %c0_i32, %c0_i32_0 : i32, i32
  }
  func.func @transform_21(%arg0: i32) -> (i32, i32) {
    %c0_i32 = arith.constant 0 : i32
    %c0_i32_0 = arith.constant 0 : i32
    %c0_i32_1 = arith.constant 0 : i32
    return %c0_i32, %c0_i32_0 : i32, i32
  }
  func.func @transform_22(%arg0: i32) -> (i32, i32) {
    %c0_i32 = arith.constant 0 : i32
    %c0_i32_0 = arith.constant 0 : i32
    %c0_i32_1 = arith.constant 0 : i32
    return %c0_i32, %c0_i32_0 : i32, i32
  }
  func.func @transform_23(%arg0: i32) -> (i32, i32) {
    %c0_i32 = arith.constant 0 : i32
    %c0_i32_0 = arith.constant 0 : i32
    %c0_i32_1 = arith.constant 0 : i32
    return %c0_i32, %c0_i32_0 : i32, i32
  }
  func.func @transform_24(%arg0: i32) -> (i32, i32) {
    %c0_i32 = arith.constant 0 : i32
    %c0_i32_0 = arith.constant 0 : i32
    %c0_i32_1 = arith.constant 0 : i32
    return %c0_i32, %c0_i32_0 : i32, i32
  }
  func.func @transform_25(%arg0: i32) -> (i32, i32) {
    %c0_i32 = arith.constant 0 : i32
    %c0_i32_0 = arith.constant 0 : i32
    %c0_i32_1 = arith.constant 0 : i32
    return %c0_i32, %c0_i32_0 : i32, i32
  }
  func.func @transform_26(%arg0: i32) -> (i32, i32) {
    %c0_i32 = arith.constant 0 : i32
    %c0_i32_0 = arith.constant 0 : i32
    %c0_i32_1 = arith.constant 0 : i32
    return %c0_i32, %c0_i32_0 : i32, i32
  }
  func.func @transform_27(%arg0: i32) -> (i32, i32) {
    %c0_i32 = arith.constant 0 : i32
    %c0_i32_0 = arith.constant 0 : i32
    %c0_i32_1 = arith.constant 0 : i32
    return %c0_i32, %c0_i32_0 : i32, i32
  }
  func.func @transform_28(%arg0: i32) -> (i32, i32) {
    %c0_i32 = arith.constant 0 : i32
    %c0_i32_0 = arith.constant 0 : i32
    %c0_i32_1 = arith.constant 0 : i32
    return %c0_i32, %c0_i32_0 : i32, i32
  }
  func.func @transform_29(%arg0: i32) -> (i32, i32) {
    %c0_i32 = arith.constant 0 : i32
    %c0_i32_0 = arith.constant 0 : i32
    %c0_i32_1 = arith.constant 0 : i32
    return %c0_i32, %c0_i32_0 : i32, i32
  }
  func.func @transform_30(%arg0: i32) -> (i32, i32, i32) {
    %c0_i32 = arith.constant 0 : i32
    %c0_i32_0 = arith.constant 0 : i32
    %c0_i32_1 = arith.constant 0 : i32
    return %arg0, %c0_i32, %c0_i32_0 : i32, i32, i32
  }
}

module attributes {stable_mosaic.version = 11 : i64} {
  func.func @_decoder_kernel(%arg0: i32, %arg1: memref<1x24x32xf32, #tpu.memory_space<vmem>>, %arg2: memref<1x36x32xf32, #tpu.memory_space<vmem>>, %arg3: memref<24x1xi32, #tpu.memory_space<vmem>>, %arg4: memref<1x36xi32, #tpu.memory_space<vmem>>, %arg5: memref<32x32xbf16, #tpu.memory_space<vmem>>, %arg6: memref<1x32xf32, #tpu.memory_space<vmem>>, %arg7: memref<32x32xbf16, #tpu.memory_space<vmem>>, %arg8: memref<1x32xf32, #tpu.memory_space<vmem>>, %arg9: memref<32x32xbf16, #tpu.memory_space<vmem>>, %arg10: memref<1x32xf32, #tpu.memory_space<vmem>>, %arg11: memref<32x32xbf16, #tpu.memory_space<vmem>>, %arg12: memref<1x32xf32, #tpu.memory_space<vmem>>, %arg13: memref<32x32xbf16, #tpu.memory_space<vmem>>, %arg14: memref<1x32xf32, #tpu.memory_space<vmem>>, %arg15: memref<32x32xbf16, #tpu.memory_space<vmem>>, %arg16: memref<1x32xf32, #tpu.memory_space<vmem>>, %arg17: memref<32x32xbf16, #tpu.memory_space<vmem>>, %arg18: memref<1x32xf32, #tpu.memory_space<vmem>>, %arg19: memref<32x32xbf16, #tpu.memory_space<vmem>>, %arg20: memref<1x32xf32, #tpu.memory_space<vmem>>, %arg21: memref<1x32xf32, #tpu.memory_space<vmem>>, %arg22: memref<1x32xf32, #tpu.memory_space<vmem>>, %arg23: memref<1x32xf32, #tpu.memory_space<vmem>>, %arg24: memref<1x32xf32, #tpu.memory_space<vmem>>, %arg25: memref<32x8xbf16, #tpu.memory_space<vmem>>, %arg26: memref<1x8xf32, #tpu.memory_space<vmem>>, %arg27: memref<1x24x32xf32, #tpu.memory_space<vmem>>, %arg28: memref<1x24x8xf32, #tpu.memory_space<vmem>>) attributes {dimension_semantics = [#tpu.dimension_semantics<parallel>], iteration_bounds = array<i64: 1>, scalar_prefetch = 0 : i64, scratch_operands = 0 : i64, tpu.core_type = #tpu.core_type<tc>, window_params = [{transform_indices = @transform_0, window_bounds = array<i64: 1, 24, 32>}, {transform_indices = @transform_1, window_bounds = array<i64: 1, 36, 32>}, {pipeline_mode = #tpu.pipeline_mode<synchronous>, transform_indices = @transform_2, window_bounds = array<i64: 24, 1>}, {pipeline_mode = #tpu.pipeline_mode<synchronous>, transform_indices = @transform_3, window_bounds = array<i64: 1, 36>}, {pipeline_mode = #tpu.pipeline_mode<synchronous>, transform_indices = @transform_4, window_bounds = array<i64: 32, 32>}, {pipeline_mode = #tpu.pipeline_mode<synchronous>, transform_indices = @transform_5, window_bounds = array<i64: 1, 32>}, {pipeline_mode = #tpu.pipeline_mode<synchronous>, transform_indices = @transform_6, window_bounds = array<i64: 32, 32>}, {pipeline_mode = #tpu.pipeline_mode<synchronous>, transform_indices = @transform_7, window_bounds = array<i64: 1, 32>}, {pipeline_mode = #tpu.pipeline_mode<synchronous>, transform_indices = @transform_8, window_bounds = array<i64: 32, 32>}, {pipeline_mode = #tpu.pipeline_mode<synchronous>, transform_indices = @transform_9, window_bounds = array<i64: 1, 32>}, {pipeline_mode = #tpu.pipeline_mode<synchronous>, transform_indices = @transform_10, window_bounds = array<i64: 32, 32>}, {pipeline_mode = #tpu.pipeline_mode<synchronous>, transform_indices = @transform_11, window_bounds = array<i64: 1, 32>}, {pipeline_mode = #tpu.pipeline_mode<synchronous>, transform_indices = @transform_12, window_bounds = array<i64: 32, 32>}, {pipeline_mode = #tpu.pipeline_mode<synchronous>, transform_indices = @transform_13, window_bounds = array<i64: 1, 32>}, {pipeline_mode = #tpu.pipeline_mode<synchronous>, transform_indices = @transform_14, window_bounds = array<i64: 32, 32>}, {pipeline_mode = #tpu.pipeline_mode<synchronous>, transform_indices = @transform_15, window_bounds = array<i64: 1, 32>}, {pipeline_mode = #tpu.pipeline_mode<synchronous>, transform_indices = @transform_16, window_bounds = array<i64: 32, 32>}, {pipeline_mode = #tpu.pipeline_mode<synchronous>, transform_indices = @transform_17, window_bounds = array<i64: 1, 32>}, {pipeline_mode = #tpu.pipeline_mode<synchronous>, transform_indices = @transform_18, window_bounds = array<i64: 32, 32>}, {pipeline_mode = #tpu.pipeline_mode<synchronous>, transform_indices = @transform_19, window_bounds = array<i64: 1, 32>}, {pipeline_mode = #tpu.pipeline_mode<synchronous>, transform_indices = @transform_20, window_bounds = array<i64: 1, 32>}, {pipeline_mode = #tpu.pipeline_mode<synchronous>, transform_indices = @transform_21, window_bounds = array<i64: 1, 32>}, {pipeline_mode = #tpu.pipeline_mode<synchronous>, transform_indices = @transform_22, window_bounds = array<i64: 1, 32>}, {pipeline_mode = #tpu.pipeline_mode<synchronous>, transform_indices = @transform_23, window_bounds = array<i64: 1, 32>}, {pipeline_mode = #tpu.pipeline_mode<synchronous>, transform_indices = @transform_24, window_bounds = array<i64: 32, 8>}, {pipeline_mode = #tpu.pipeline_mode<synchronous>, transform_indices = @transform_25, window_bounds = array<i64: 1, 8>}, {transform_indices = @transform_26, window_bounds = array<i64: 1, 24, 32>}, {transform_indices = @transform_27, window_bounds = array<i64: 1, 24, 8>}]} {
    %c0 = arith.constant 0 : index
    %c0_0 = arith.constant 0 : index
    %c0_1 = arith.constant 0 : index
    %0 = vector.load %arg1[%c0, %c0_0, %c0_1] : memref<1x24x32xf32, #tpu.memory_space<vmem>>, vector<1x24x32xf32>
    %1 = vector.shape_cast %0 : vector<1x24x32xf32> to vector<24x32xf32>
    %c0_2 = arith.constant 0 : index
    %c0_3 = arith.constant 0 : index
    %c0_4 = arith.constant 0 : index
    %2 = vector.load %arg2[%c0_2, %c0_3, %c0_4] : memref<1x36x32xf32, #tpu.memory_space<vmem>>, vector<1x36x32xf32>
    %3 = vector.shape_cast %2 : vector<1x36x32xf32> to vector<36x32xf32>
    %c0_5 = arith.constant 0 : index
    %c0_6 = arith.constant 0 : index
    %4 = vector.load %arg3[%c0_5, %c0_6] : memref<24x1xi32, #tpu.memory_space<vmem>>, vector<24x1xi32>
    %c0_7 = arith.constant 0 : index
    %c0_8 = arith.constant 0 : index
    %5 = vector.load %arg4[%c0_7, %c0_8] : memref<1x36xi32, #tpu.memory_space<vmem>>, vector<1x36xi32>
    %6 = vector.broadcast %4 : vector<24x1xi32> to vector<24x36xi32>
    %7 = vector.broadcast %5 : vector<1x36xi32> to vector<24x36xi32>
    %8 = arith.cmpi eq, %6, %7 : vector<24x36xi32>
    %cst = arith.constant 0.000000e+00 : f32
    %cst_9 = arith.constant -1.000000e+30 : f32
    %9 = vector.broadcast %cst : f32 to vector<24x36xf32>
    %10 = vector.broadcast %cst_9 : f32 to vector<24x36xf32>
    %11 = arith.select %8, %9, %10 : vector<24x36xi1>, vector<24x36xf32>
    %12 = arith.truncf %1 : vector<24x32xf32> to vector<24x32xbf16>
    %13 = arith.truncf %3 : vector<36x32xf32> to vector<36x32xbf16>
    %c0_10 = arith.constant 0 : index
    %c0_11 = arith.constant 0 : index
    %14 = vector.load %arg5[%c0_10, %c0_11] : memref<32x32xbf16, #tpu.memory_space<vmem>>, vector<32x32xbf16>
    %cst_12 = arith.constant dense<0.000000e+00> : vector<24x32xf32>
    %15 = tpu.matmul %12, %14, %cst_12 {dimension_numbers = #tpu.dot_dimension_numbers<[1], [0], [0], [1], [0, 0, 1, 1], [], []>} : vector<24x32xbf16>, vector<32x32xbf16>, vector<24x32xf32> -> vector<24x32xf32>
    %c0_13 = arith.constant 0 : index
    %c0_14 = arith.constant 0 : index
    %16 = vector.load %arg6[%c0_13, %c0_14] : memref<1x32xf32, #tpu.memory_space<vmem>>, vector<1x32xf32>
    %17 = vector.broadcast %16 : vector<1x32xf32> to vector<24x32xf32>
    %18 = arith.addf %15, %17 : vector<24x32xf32>
    %c0_15 = arith.constant 0 : index
    %c0_16 = arith.constant 0 : index
    %19 = vector.load %arg7[%c0_15, %c0_16] : memref<32x32xbf16, #tpu.memory_space<vmem>>, vector<32x32xbf16>
    %cst_17 = arith.constant dense<0.000000e+00> : vector<36x32xf32>
    %20 = tpu.matmul %13, %19, %cst_17 {dimension_numbers = #tpu.dot_dimension_numbers<[1], [0], [0], [1], [0, 0, 1, 1], [], []>} : vector<36x32xbf16>, vector<32x32xbf16>, vector<36x32xf32> -> vector<36x32xf32>
    %c0_18 = arith.constant 0 : index
    %c0_19 = arith.constant 0 : index
    %21 = vector.load %arg8[%c0_18, %c0_19] : memref<1x32xf32, #tpu.memory_space<vmem>>, vector<1x32xf32>
    %22 = vector.broadcast %21 : vector<1x32xf32> to vector<36x32xf32>
    %23 = arith.addf %20, %22 : vector<36x32xf32>
    %c0_20 = arith.constant 0 : index
    %c0_21 = arith.constant 0 : index
    %24 = vector.load %arg9[%c0_20, %c0_21] : memref<32x32xbf16, #tpu.memory_space<vmem>>, vector<32x32xbf16>
    %cst_22 = arith.constant dense<0.000000e+00> : vector<36x32xf32>
    %25 = tpu.matmul %13, %24, %cst_22 {dimension_numbers = #tpu.dot_dimension_numbers<[1], [0], [0], [1], [0, 0, 1, 1], [], []>} : vector<36x32xbf16>, vector<32x32xbf16>, vector<36x32xf32> -> vector<36x32xf32>
    %c0_23 = arith.constant 0 : index
    %c0_24 = arith.constant 0 : index
    %26 = vector.load %arg10[%c0_23, %c0_24] : memref<1x32xf32, #tpu.memory_space<vmem>>, vector<1x32xf32>
    %27 = vector.broadcast %26 : vector<1x32xf32> to vector<36x32xf32>
    %28 = arith.addf %25, %27 : vector<36x32xf32>
    %29 = vector.extract_strided_slice %18 {offsets = [0, 0], sizes = [24, 16], strides = [1, 1]} : vector<24x32xf32> to vector<24x16xf32>
    %30 = arith.truncf %29 : vector<24x16xf32> to vector<24x16xbf16>
    %31 = vector.extract_strided_slice %23 {offsets = [0, 0], sizes = [36, 16], strides = [1, 1]} : vector<36x32xf32> to vector<36x16xf32>
    %32 = arith.truncf %31 : vector<36x16xf32> to vector<36x16xbf16>
    %cst_25 = arith.constant dense<0.000000e+00> : vector<24x36xf32>
    %33 = tpu.matmul %30, %32, %cst_25 {dimension_numbers = #tpu.dot_dimension_numbers<[1], [1], [0], [0], [0, 0, 1, 0], [], []>} : vector<24x16xbf16>, vector<36x16xbf16>, vector<24x36xf32> -> vector<24x36xf32>
    %cst_26 = arith.constant 2.500000e-01 : f32
    %34 = vector.broadcast %cst_26 : f32 to vector<24x36xf32>
    %35 = arith.mulf %33, %34 : vector<24x36xf32>
    %36 = arith.addf %35, %11 : vector<24x36xf32>
    %cst_27 = arith.constant dense<0xFF800000> : vector<24xf32>
    %37 = vector.multi_reduction <maximumf>, %36, %cst_27 [1] : vector<24x36xf32> to vector<24xf32>
    %38 = vector.shape_cast %37 : vector<24xf32> to vector<24x1xf32>
    %39 = vector.broadcast %38 : vector<24x1xf32> to vector<24x36xf32>
    %40 = arith.subf %36, %39 : vector<24x36xf32>
    %41 = math.exp %40 : vector<24x36xf32>
    %cst_28 = arith.constant dense<0.000000e+00> : vector<24xf32>
    %42 = vector.multi_reduction <add>, %41, %cst_28 [1] : vector<24x36xf32> to vector<24xf32>
    %43 = vector.shape_cast %42 : vector<24xf32> to vector<24x1xf32>
    %44 = tpu.reciprocal %43 {approx = true} : vector<24x1xf32> -> vector<24x1xf32>
    %45 = vector.broadcast %44 : vector<24x1xf32> to vector<24x36xf32>
    %46 = arith.mulf %41, %45 : vector<24x36xf32>
    %47 = arith.truncf %46 : vector<24x36xf32> to vector<24x36xbf16>
    %48 = vector.extract_strided_slice %28 {offsets = [0, 0], sizes = [36, 16], strides = [1, 1]} : vector<36x32xf32> to vector<36x16xf32>
    %49 = arith.truncf %48 : vector<36x16xf32> to vector<36x16xbf16>
    %cst_29 = arith.constant dense<0.000000e+00> : vector<24x16xf32>
    %50 = tpu.matmul %47, %49, %cst_29 {dimension_numbers = #tpu.dot_dimension_numbers<[1], [0], [0], [1], [0, 0, 1, 1], [], []>} : vector<24x36xbf16>, vector<36x16xbf16>, vector<24x16xf32> -> vector<24x16xf32>
    %51 = vector.extract_strided_slice %18 {offsets = [0, 16], sizes = [24, 16], strides = [1, 1]} : vector<24x32xf32> to vector<24x16xf32>
    %52 = arith.truncf %51 : vector<24x16xf32> to vector<24x16xbf16>
    %53 = vector.extract_strided_slice %23 {offsets = [0, 16], sizes = [36, 16], strides = [1, 1]} : vector<36x32xf32> to vector<36x16xf32>
    %54 = arith.truncf %53 : vector<36x16xf32> to vector<36x16xbf16>
    %cst_30 = arith.constant dense<0.000000e+00> : vector<24x36xf32>
    %55 = tpu.matmul %52, %54, %cst_30 {dimension_numbers = #tpu.dot_dimension_numbers<[1], [1], [0], [0], [0, 0, 1, 0], [], []>} : vector<24x16xbf16>, vector<36x16xbf16>, vector<24x36xf32> -> vector<24x36xf32>
    %cst_31 = arith.constant 2.500000e-01 : f32
    %56 = vector.broadcast %cst_31 : f32 to vector<24x36xf32>
    %57 = arith.mulf %55, %56 : vector<24x36xf32>
    %58 = arith.addf %57, %11 : vector<24x36xf32>
    %cst_32 = arith.constant dense<0xFF800000> : vector<24xf32>
    %59 = vector.multi_reduction <maximumf>, %58, %cst_32 [1] : vector<24x36xf32> to vector<24xf32>
    %60 = vector.shape_cast %59 : vector<24xf32> to vector<24x1xf32>
    %61 = vector.broadcast %60 : vector<24x1xf32> to vector<24x36xf32>
    %62 = arith.subf %58, %61 : vector<24x36xf32>
    %63 = math.exp %62 : vector<24x36xf32>
    %cst_33 = arith.constant dense<0.000000e+00> : vector<24xf32>
    %64 = vector.multi_reduction <add>, %63, %cst_33 [1] : vector<24x36xf32> to vector<24xf32>
    %65 = vector.shape_cast %64 : vector<24xf32> to vector<24x1xf32>
    %66 = tpu.reciprocal %65 {approx = true} : vector<24x1xf32> -> vector<24x1xf32>
    %67 = vector.broadcast %66 : vector<24x1xf32> to vector<24x36xf32>
    %68 = arith.mulf %63, %67 : vector<24x36xf32>
    %69 = arith.truncf %68 : vector<24x36xf32> to vector<24x36xbf16>
    %70 = vector.extract_strided_slice %28 {offsets = [0, 16], sizes = [36, 16], strides = [1, 1]} : vector<36x32xf32> to vector<36x16xf32>
    %71 = arith.truncf %70 : vector<36x16xf32> to vector<36x16xbf16>
    %cst_34 = arith.constant dense<0.000000e+00> : vector<24x16xf32>
    %72 = tpu.matmul %69, %71, %cst_34 {dimension_numbers = #tpu.dot_dimension_numbers<[1], [0], [0], [1], [0, 0, 1, 1], [], []>} : vector<24x36xbf16>, vector<36x16xbf16>, vector<24x16xf32> -> vector<24x16xf32>
    %73 = tpu.concatenate %50, %72 in 1 : vector<24x16xf32>, vector<24x16xf32> -> vector<24x32xf32>
    %74 = arith.truncf %73 : vector<24x32xf32> to vector<24x32xbf16>
    %c0_35 = arith.constant 0 : index
    %c0_36 = arith.constant 0 : index
    %75 = vector.load %arg11[%c0_35, %c0_36] : memref<32x32xbf16, #tpu.memory_space<vmem>>, vector<32x32xbf16>
    %cst_37 = arith.constant dense<0.000000e+00> : vector<24x32xf32>
    %76 = tpu.matmul %74, %75, %cst_37 {dimension_numbers = #tpu.dot_dimension_numbers<[1], [0], [0], [1], [0, 0, 1, 1], [], []>} : vector<24x32xbf16>, vector<32x32xbf16>, vector<24x32xf32> -> vector<24x32xf32>
    %c0_38 = arith.constant 0 : index
    %c0_39 = arith.constant 0 : index
    %77 = vector.load %arg12[%c0_38, %c0_39] : memref<1x32xf32, #tpu.memory_space<vmem>>, vector<1x32xf32>
    %78 = vector.broadcast %77 : vector<1x32xf32> to vector<24x32xf32>
    %79 = arith.addf %76, %78 : vector<24x32xf32>
    %80 = arith.addf %1, %79 : vector<24x32xf32>
    %81 = arith.truncf %80 : vector<24x32xf32> to vector<24x32xbf16>
    %c0_40 = arith.constant 0 : index
    %c0_41 = arith.constant 0 : index
    %82 = vector.load %arg13[%c0_40, %c0_41] : memref<32x32xbf16, #tpu.memory_space<vmem>>, vector<32x32xbf16>
    %cst_42 = arith.constant dense<0.000000e+00> : vector<24x32xf32>
    %83 = tpu.matmul %81, %82, %cst_42 {dimension_numbers = #tpu.dot_dimension_numbers<[1], [0], [0], [1], [0, 0, 1, 1], [], []>} : vector<24x32xbf16>, vector<32x32xbf16>, vector<24x32xf32> -> vector<24x32xf32>
    %c0_43 = arith.constant 0 : index
    %c0_44 = arith.constant 0 : index
    %84 = vector.load %arg14[%c0_43, %c0_44] : memref<1x32xf32, #tpu.memory_space<vmem>>, vector<1x32xf32>
    %85 = vector.broadcast %84 : vector<1x32xf32> to vector<24x32xf32>
    %86 = arith.addf %83, %85 : vector<24x32xf32>
    %cst_45 = arith.constant 5.000000e-01 : f32
    %87 = vector.broadcast %cst_45 : f32 to vector<24x32xf32>
    %88 = arith.mulf %87, %86 : vector<24x32xf32>
    %cst_46 = arith.constant 0.707106769 : f32
    %89 = vector.broadcast %cst_46 : f32 to vector<24x32xf32>
    %90 = arith.mulf %86, %89 : vector<24x32xf32>
    %cst_47 = arith.constant 0.000000e+00 : f32
    %91 = vector.broadcast %cst_47 : f32 to vector<24x32xf32>
    %92 = arith.cmpf oge, %90, %91 : vector<24x32xf32>
    %cst_48 = arith.constant 1.000000e+00 : f32
    %cst_49 = arith.constant -1.000000e+00 : f32
    %93 = vector.broadcast %cst_48 : f32 to vector<24x32xf32>
    %94 = vector.broadcast %cst_49 : f32 to vector<24x32xf32>
    %95 = arith.select %92, %93, %94 : vector<24x32xi1>, vector<24x32xf32>
    %96 = math.absf %90 : vector<24x32xf32>
    %cst_50 = arith.constant 0.327591091 : f32
    %97 = vector.broadcast %cst_50 : f32 to vector<24x32xf32>
    %98 = arith.mulf %97, %96 : vector<24x32xf32>
    %cst_51 = arith.constant 1.000000e+00 : f32
    %99 = vector.broadcast %cst_51 : f32 to vector<24x32xf32>
    %100 = arith.addf %99, %98 : vector<24x32xf32>
    %cst_52 = arith.constant 1.000000e+00 : f32
    %101 = vector.broadcast %cst_52 : f32 to vector<24x32xf32>
    %102 = arith.divf %101, %100 : vector<24x32xf32>
    %cst_53 = arith.constant 1.06140542 : f32
    %103 = vector.broadcast %cst_53 : f32 to vector<24x32xf32>
    %104 = arith.mulf %103, %102 : vector<24x32xf32>
    %cst_54 = arith.constant -1.45315206 : f32
    %105 = vector.broadcast %cst_54 : f32 to vector<24x32xf32>
    %106 = arith.addf %104, %105 : vector<24x32xf32>
    %107 = arith.mulf %106, %102 : vector<24x32xf32>
    %cst_55 = arith.constant 1.42141378 : f32
    %108 = vector.broadcast %cst_55 : f32 to vector<24x32xf32>
    %109 = arith.addf %107, %108 : vector<24x32xf32>
    %110 = arith.mulf %109, %102 : vector<24x32xf32>
    %cst_56 = arith.constant -0.284496725 : f32
    %111 = vector.broadcast %cst_56 : f32 to vector<24x32xf32>
    %112 = arith.addf %110, %111 : vector<24x32xf32>
    %113 = arith.mulf %112, %102 : vector<24x32xf32>
    %cst_57 = arith.constant 0.254829586 : f32
    %114 = vector.broadcast %cst_57 : f32 to vector<24x32xf32>
    %115 = arith.addf %113, %114 : vector<24x32xf32>
    %116 = arith.mulf %115, %102 : vector<24x32xf32>
    %cst_58 = arith.constant 0.000000e+00 : f32
    %117 = vector.broadcast %cst_58 : f32 to vector<24x32xf32>
    %118 = arith.subf %117, %96 : vector<24x32xf32>
    %119 = arith.mulf %118, %96 : vector<24x32xf32>
    %120 = math.exp %119 : vector<24x32xf32>
    %121 = arith.mulf %116, %120 : vector<24x32xf32>
    %cst_59 = arith.constant 1.000000e+00 : f32
    %122 = vector.broadcast %cst_59 : f32 to vector<24x32xf32>
    %123 = arith.subf %122, %121 : vector<24x32xf32>
    %124 = arith.mulf %95, %123 : vector<24x32xf32>
    %cst_60 = arith.constant 1.000000e+00 : f32
    %125 = vector.broadcast %cst_60 : f32 to vector<24x32xf32>
    %126 = arith.addf %125, %124 : vector<24x32xf32>
    %127 = arith.mulf %88, %126 : vector<24x32xf32>
    %128 = arith.truncf %127 : vector<24x32xf32> to vector<24x32xbf16>
    %c0_61 = arith.constant 0 : index
    %c0_62 = arith.constant 0 : index
    %129 = vector.load %arg15[%c0_61, %c0_62] : memref<32x32xbf16, #tpu.memory_space<vmem>>, vector<32x32xbf16>
    %cst_63 = arith.constant dense<0.000000e+00> : vector<24x32xf32>
    %130 = tpu.matmul %128, %129, %cst_63 {dimension_numbers = #tpu.dot_dimension_numbers<[1], [0], [0], [1], [0, 0, 1, 1], [], []>} : vector<24x32xbf16>, vector<32x32xbf16>, vector<24x32xf32> -> vector<24x32xf32>
    %c0_64 = arith.constant 0 : index
    %c0_65 = arith.constant 0 : index
    %131 = vector.load %arg16[%c0_64, %c0_65] : memref<1x32xf32, #tpu.memory_space<vmem>>, vector<1x32xf32>
    %132 = vector.broadcast %131 : vector<1x32xf32> to vector<24x32xf32>
    %133 = arith.addf %130, %132 : vector<24x32xf32>
    %134 = arith.truncf %133 : vector<24x32xf32> to vector<24x32xbf16>
    %c0_66 = arith.constant 0 : index
    %c0_67 = arith.constant 0 : index
    %135 = vector.load %arg17[%c0_66, %c0_67] : memref<32x32xbf16, #tpu.memory_space<vmem>>, vector<32x32xbf16>
    %cst_68 = arith.constant dense<0.000000e+00> : vector<24x32xf32>
    %136 = tpu.matmul %134, %135, %cst_68 {dimension_numbers = #tpu.dot_dimension_numbers<[1], [0], [0], [1], [0, 0, 1, 1], [], []>} : vector<24x32xbf16>, vector<32x32xbf16>, vector<24x32xf32> -> vector<24x32xf32>
    %c0_69 = arith.constant 0 : index
    %c0_70 = arith.constant 0 : index
    %137 = vector.load %arg18[%c0_69, %c0_70] : memref<1x32xf32, #tpu.memory_space<vmem>>, vector<1x32xf32>
    %138 = vector.broadcast %137 : vector<1x32xf32> to vector<24x32xf32>
    %139 = arith.addf %136, %138 : vector<24x32xf32>
    %cst_71 = arith.constant 5.000000e-01 : f32
    %140 = vector.broadcast %cst_71 : f32 to vector<24x32xf32>
    %141 = arith.mulf %140, %139 : vector<24x32xf32>
    %cst_72 = arith.constant 0.707106769 : f32
    %142 = vector.broadcast %cst_72 : f32 to vector<24x32xf32>
    %143 = arith.mulf %139, %142 : vector<24x32xf32>
    %cst_73 = arith.constant 0.000000e+00 : f32
    %144 = vector.broadcast %cst_73 : f32 to vector<24x32xf32>
    %145 = arith.cmpf oge, %143, %144 : vector<24x32xf32>
    %cst_74 = arith.constant 1.000000e+00 : f32
    %cst_75 = arith.constant -1.000000e+00 : f32
    %146 = vector.broadcast %cst_74 : f32 to vector<24x32xf32>
    %147 = vector.broadcast %cst_75 : f32 to vector<24x32xf32>
    %148 = arith.select %145, %146, %147 : vector<24x32xi1>, vector<24x32xf32>
    %149 = math.absf %143 : vector<24x32xf32>
    %cst_76 = arith.constant 0.327591091 : f32
    %150 = vector.broadcast %cst_76 : f32 to vector<24x32xf32>
    %151 = arith.mulf %150, %149 : vector<24x32xf32>
    %cst_77 = arith.constant 1.000000e+00 : f32
    %152 = vector.broadcast %cst_77 : f32 to vector<24x32xf32>
    %153 = arith.addf %152, %151 : vector<24x32xf32>
    %cst_78 = arith.constant 1.000000e+00 : f32
    %154 = vector.broadcast %cst_78 : f32 to vector<24x32xf32>
    %155 = arith.divf %154, %153 : vector<24x32xf32>
    %cst_79 = arith.constant 1.06140542 : f32
    %156 = vector.broadcast %cst_79 : f32 to vector<24x32xf32>
    %157 = arith.mulf %156, %155 : vector<24x32xf32>
    %cst_80 = arith.constant -1.45315206 : f32
    %158 = vector.broadcast %cst_80 : f32 to vector<24x32xf32>
    %159 = arith.addf %157, %158 : vector<24x32xf32>
    %160 = arith.mulf %159, %155 : vector<24x32xf32>
    %cst_81 = arith.constant 1.42141378 : f32
    %161 = vector.broadcast %cst_81 : f32 to vector<24x32xf32>
    %162 = arith.addf %160, %161 : vector<24x32xf32>
    %163 = arith.mulf %162, %155 : vector<24x32xf32>
    %cst_82 = arith.constant -0.284496725 : f32
    %164 = vector.broadcast %cst_82 : f32 to vector<24x32xf32>
    %165 = arith.addf %163, %164 : vector<24x32xf32>
    %166 = arith.mulf %165, %155 : vector<24x32xf32>
    %cst_83 = arith.constant 0.254829586 : f32
    %167 = vector.broadcast %cst_83 : f32 to vector<24x32xf32>
    %168 = arith.addf %166, %167 : vector<24x32xf32>
    %169 = arith.mulf %168, %155 : vector<24x32xf32>
    %cst_84 = arith.constant 0.000000e+00 : f32
    %170 = vector.broadcast %cst_84 : f32 to vector<24x32xf32>
    %171 = arith.subf %170, %149 : vector<24x32xf32>
    %172 = arith.mulf %171, %149 : vector<24x32xf32>
    %173 = math.exp %172 : vector<24x32xf32>
    %174 = arith.mulf %169, %173 : vector<24x32xf32>
    %cst_85 = arith.constant 1.000000e+00 : f32
    %175 = vector.broadcast %cst_85 : f32 to vector<24x32xf32>
    %176 = arith.subf %175, %174 : vector<24x32xf32>
    %177 = arith.mulf %148, %176 : vector<24x32xf32>
    %cst_86 = arith.constant 1.000000e+00 : f32
    %178 = vector.broadcast %cst_86 : f32 to vector<24x32xf32>
    %179 = arith.addf %178, %177 : vector<24x32xf32>
    %180 = arith.mulf %141, %179 : vector<24x32xf32>
    %181 = arith.truncf %180 : vector<24x32xf32> to vector<24x32xbf16>
    %c0_87 = arith.constant 0 : index
    %c0_88 = arith.constant 0 : index
    %182 = vector.load %arg19[%c0_87, %c0_88] : memref<32x32xbf16, #tpu.memory_space<vmem>>, vector<32x32xbf16>
    %cst_89 = arith.constant dense<0.000000e+00> : vector<24x32xf32>
    %183 = tpu.matmul %181, %182, %cst_89 {dimension_numbers = #tpu.dot_dimension_numbers<[1], [0], [0], [1], [0, 0, 1, 1], [], []>} : vector<24x32xbf16>, vector<32x32xbf16>, vector<24x32xf32> -> vector<24x32xf32>
    %c0_90 = arith.constant 0 : index
    %c0_91 = arith.constant 0 : index
    %184 = vector.load %arg20[%c0_90, %c0_91] : memref<1x32xf32, #tpu.memory_space<vmem>>, vector<1x32xf32>
    %185 = vector.broadcast %184 : vector<1x32xf32> to vector<24x32xf32>
    %186 = arith.addf %183, %185 : vector<24x32xf32>
    %187 = arith.addf %80, %186 : vector<24x32xf32>
    %cst_92 = arith.constant dense<0.000000e+00> : vector<24xf32>
    %188 = vector.multi_reduction <add>, %187, %cst_92 [1] : vector<24x32xf32> to vector<24xf32>
    %189 = vector.shape_cast %188 : vector<24xf32> to vector<24x1xf32>
    %cst_93 = arith.constant 3.200000e+01 : f32
    %190 = vector.broadcast %cst_93 : f32 to vector<24x1xf32>
    %191 = arith.divf %189, %190 : vector<24x1xf32>
    %192 = vector.broadcast %191 : vector<24x1xf32> to vector<24x32xf32>
    %193 = arith.subf %187, %192 : vector<24x32xf32>
    %194 = arith.mulf %193, %193 : vector<24x32xf32>
    %cst_94 = arith.constant dense<0.000000e+00> : vector<24xf32>
    %195 = vector.multi_reduction <add>, %194, %cst_94 [1] : vector<24x32xf32> to vector<24xf32>
    %196 = vector.shape_cast %195 : vector<24xf32> to vector<24x1xf32>
    %cst_95 = arith.constant 3.200000e+01 : f32
    %197 = vector.broadcast %cst_95 : f32 to vector<24x1xf32>
    %198 = arith.divf %196, %197 : vector<24x1xf32>
    %199 = vector.broadcast %191 : vector<24x1xf32> to vector<24x32xf32>
    %200 = arith.subf %187, %199 : vector<24x32xf32>
    %cst_96 = arith.constant 9.99999974E-6 : f32
    %201 = vector.broadcast %cst_96 : f32 to vector<24x1xf32>
    %202 = arith.addf %198, %201 : vector<24x1xf32>
    %203 = math.rsqrt %202 : vector<24x1xf32>
    %204 = vector.broadcast %203 : vector<24x1xf32> to vector<24x32xf32>
    %205 = arith.mulf %200, %204 : vector<24x32xf32>
    %c0_97 = arith.constant 0 : index
    %c0_98 = arith.constant 0 : index
    %206 = vector.load %arg21[%c0_97, %c0_98] : memref<1x32xf32, #tpu.memory_space<vmem>>, vector<1x32xf32>
    %207 = vector.broadcast %206 : vector<1x32xf32> to vector<24x32xf32>
    %208 = arith.mulf %205, %207 : vector<24x32xf32>
    %c0_99 = arith.constant 0 : index
    %c0_100 = arith.constant 0 : index
    %209 = vector.load %arg22[%c0_99, %c0_100] : memref<1x32xf32, #tpu.memory_space<vmem>>, vector<1x32xf32>
    %210 = vector.broadcast %209 : vector<1x32xf32> to vector<24x32xf32>
    %211 = arith.addf %208, %210 : vector<24x32xf32>
    %212 = arith.truncf %211 : vector<24x32xf32> to vector<24x32xbf16>
    %c0_101 = arith.constant 0 : index
    %c0_102 = arith.constant 0 : index
    %213 = vector.load %arg13[%c0_101, %c0_102] : memref<32x32xbf16, #tpu.memory_space<vmem>>, vector<32x32xbf16>
    %cst_103 = arith.constant dense<0.000000e+00> : vector<24x32xf32>
    %214 = tpu.matmul %212, %213, %cst_103 {dimension_numbers = #tpu.dot_dimension_numbers<[1], [0], [0], [1], [0, 0, 1, 1], [], []>} : vector<24x32xbf16>, vector<32x32xbf16>, vector<24x32xf32> -> vector<24x32xf32>
    %c0_104 = arith.constant 0 : index
    %c0_105 = arith.constant 0 : index
    %215 = vector.load %arg14[%c0_104, %c0_105] : memref<1x32xf32, #tpu.memory_space<vmem>>, vector<1x32xf32>
    %216 = vector.broadcast %215 : vector<1x32xf32> to vector<24x32xf32>
    %217 = arith.addf %214, %216 : vector<24x32xf32>
    %cst_106 = arith.constant 5.000000e-01 : f32
    %218 = vector.broadcast %cst_106 : f32 to vector<24x32xf32>
    %219 = arith.mulf %218, %217 : vector<24x32xf32>
    %cst_107 = arith.constant 0.707106769 : f32
    %220 = vector.broadcast %cst_107 : f32 to vector<24x32xf32>
    %221 = arith.mulf %217, %220 : vector<24x32xf32>
    %cst_108 = arith.constant 0.000000e+00 : f32
    %222 = vector.broadcast %cst_108 : f32 to vector<24x32xf32>
    %223 = arith.cmpf oge, %221, %222 : vector<24x32xf32>
    %cst_109 = arith.constant 1.000000e+00 : f32
    %cst_110 = arith.constant -1.000000e+00 : f32
    %224 = vector.broadcast %cst_109 : f32 to vector<24x32xf32>
    %225 = vector.broadcast %cst_110 : f32 to vector<24x32xf32>
    %226 = arith.select %223, %224, %225 : vector<24x32xi1>, vector<24x32xf32>
    %227 = math.absf %221 : vector<24x32xf32>
    %cst_111 = arith.constant 0.327591091 : f32
    %228 = vector.broadcast %cst_111 : f32 to vector<24x32xf32>
    %229 = arith.mulf %228, %227 : vector<24x32xf32>
    %cst_112 = arith.constant 1.000000e+00 : f32
    %230 = vector.broadcast %cst_112 : f32 to vector<24x32xf32>
    %231 = arith.addf %230, %229 : vector<24x32xf32>
    %cst_113 = arith.constant 1.000000e+00 : f32
    %232 = vector.broadcast %cst_113 : f32 to vector<24x32xf32>
    %233 = arith.divf %232, %231 : vector<24x32xf32>
    %cst_114 = arith.constant 1.06140542 : f32
    %234 = vector.broadcast %cst_114 : f32 to vector<24x32xf32>
    %235 = arith.mulf %234, %233 : vector<24x32xf32>
    %cst_115 = arith.constant -1.45315206 : f32
    %236 = vector.broadcast %cst_115 : f32 to vector<24x32xf32>
    %237 = arith.addf %235, %236 : vector<24x32xf32>
    %238 = arith.mulf %237, %233 : vector<24x32xf32>
    %cst_116 = arith.constant 1.42141378 : f32
    %239 = vector.broadcast %cst_116 : f32 to vector<24x32xf32>
    %240 = arith.addf %238, %239 : vector<24x32xf32>
    %241 = arith.mulf %240, %233 : vector<24x32xf32>
    %cst_117 = arith.constant -0.284496725 : f32
    %242 = vector.broadcast %cst_117 : f32 to vector<24x32xf32>
    %243 = arith.addf %241, %242 : vector<24x32xf32>
    %244 = arith.mulf %243, %233 : vector<24x32xf32>
    %cst_118 = arith.constant 0.254829586 : f32
    %245 = vector.broadcast %cst_118 : f32 to vector<24x32xf32>
    %246 = arith.addf %244, %245 : vector<24x32xf32>
    %247 = arith.mulf %246, %233 : vector<24x32xf32>
    %cst_119 = arith.constant 0.000000e+00 : f32
    %248 = vector.broadcast %cst_119 : f32 to vector<24x32xf32>
    %249 = arith.subf %248, %227 : vector<24x32xf32>
    %250 = arith.mulf %249, %227 : vector<24x32xf32>
    %251 = math.exp %250 : vector<24x32xf32>
    %252 = arith.mulf %247, %251 : vector<24x32xf32>
    %cst_120 = arith.constant 1.000000e+00 : f32
    %253 = vector.broadcast %cst_120 : f32 to vector<24x32xf32>
    %254 = arith.subf %253, %252 : vector<24x32xf32>
    %255 = arith.mulf %226, %254 : vector<24x32xf32>
    %cst_121 = arith.constant 1.000000e+00 : f32
    %256 = vector.broadcast %cst_121 : f32 to vector<24x32xf32>
    %257 = arith.addf %256, %255 : vector<24x32xf32>
    %258 = arith.mulf %219, %257 : vector<24x32xf32>
    %259 = arith.truncf %258 : vector<24x32xf32> to vector<24x32xbf16>
    %c0_122 = arith.constant 0 : index
    %c0_123 = arith.constant 0 : index
    %260 = vector.load %arg15[%c0_122, %c0_123] : memref<32x32xbf16, #tpu.memory_space<vmem>>, vector<32x32xbf16>
    %cst_124 = arith.constant dense<0.000000e+00> : vector<24x32xf32>
    %261 = tpu.matmul %259, %260, %cst_124 {dimension_numbers = #tpu.dot_dimension_numbers<[1], [0], [0], [1], [0, 0, 1, 1], [], []>} : vector<24x32xbf16>, vector<32x32xbf16>, vector<24x32xf32> -> vector<24x32xf32>
    %c0_125 = arith.constant 0 : index
    %c0_126 = arith.constant 0 : index
    %262 = vector.load %arg16[%c0_125, %c0_126] : memref<1x32xf32, #tpu.memory_space<vmem>>, vector<1x32xf32>
    %263 = vector.broadcast %262 : vector<1x32xf32> to vector<24x32xf32>
    %264 = arith.addf %261, %263 : vector<24x32xf32>
    %265 = arith.truncf %264 : vector<24x32xf32> to vector<24x32xbf16>
    %c0_127 = arith.constant 0 : index
    %c0_128 = arith.constant 0 : index
    %266 = vector.load %arg17[%c0_127, %c0_128] : memref<32x32xbf16, #tpu.memory_space<vmem>>, vector<32x32xbf16>
    %cst_129 = arith.constant dense<0.000000e+00> : vector<24x32xf32>
    %267 = tpu.matmul %265, %266, %cst_129 {dimension_numbers = #tpu.dot_dimension_numbers<[1], [0], [0], [1], [0, 0, 1, 1], [], []>} : vector<24x32xbf16>, vector<32x32xbf16>, vector<24x32xf32> -> vector<24x32xf32>
    %c0_130 = arith.constant 0 : index
    %c0_131 = arith.constant 0 : index
    %268 = vector.load %arg18[%c0_130, %c0_131] : memref<1x32xf32, #tpu.memory_space<vmem>>, vector<1x32xf32>
    %269 = vector.broadcast %268 : vector<1x32xf32> to vector<24x32xf32>
    %270 = arith.addf %267, %269 : vector<24x32xf32>
    %cst_132 = arith.constant 5.000000e-01 : f32
    %271 = vector.broadcast %cst_132 : f32 to vector<24x32xf32>
    %272 = arith.mulf %271, %270 : vector<24x32xf32>
    %cst_133 = arith.constant 0.707106769 : f32
    %273 = vector.broadcast %cst_133 : f32 to vector<24x32xf32>
    %274 = arith.mulf %270, %273 : vector<24x32xf32>
    %cst_134 = arith.constant 0.000000e+00 : f32
    %275 = vector.broadcast %cst_134 : f32 to vector<24x32xf32>
    %276 = arith.cmpf oge, %274, %275 : vector<24x32xf32>
    %cst_135 = arith.constant 1.000000e+00 : f32
    %cst_136 = arith.constant -1.000000e+00 : f32
    %277 = vector.broadcast %cst_135 : f32 to vector<24x32xf32>
    %278 = vector.broadcast %cst_136 : f32 to vector<24x32xf32>
    %279 = arith.select %276, %277, %278 : vector<24x32xi1>, vector<24x32xf32>
    %280 = math.absf %274 : vector<24x32xf32>
    %cst_137 = arith.constant 0.327591091 : f32
    %281 = vector.broadcast %cst_137 : f32 to vector<24x32xf32>
    %282 = arith.mulf %281, %280 : vector<24x32xf32>
    %cst_138 = arith.constant 1.000000e+00 : f32
    %283 = vector.broadcast %cst_138 : f32 to vector<24x32xf32>
    %284 = arith.addf %283, %282 : vector<24x32xf32>
    %cst_139 = arith.constant 1.000000e+00 : f32
    %285 = vector.broadcast %cst_139 : f32 to vector<24x32xf32>
    %286 = arith.divf %285, %284 : vector<24x32xf32>
    %cst_140 = arith.constant 1.06140542 : f32
    %287 = vector.broadcast %cst_140 : f32 to vector<24x32xf32>
    %288 = arith.mulf %287, %286 : vector<24x32xf32>
    %cst_141 = arith.constant -1.45315206 : f32
    %289 = vector.broadcast %cst_141 : f32 to vector<24x32xf32>
    %290 = arith.addf %288, %289 : vector<24x32xf32>
    %291 = arith.mulf %290, %286 : vector<24x32xf32>
    %cst_142 = arith.constant 1.42141378 : f32
    %292 = vector.broadcast %cst_142 : f32 to vector<24x32xf32>
    %293 = arith.addf %291, %292 : vector<24x32xf32>
    %294 = arith.mulf %293, %286 : vector<24x32xf32>
    %cst_143 = arith.constant -0.284496725 : f32
    %295 = vector.broadcast %cst_143 : f32 to vector<24x32xf32>
    %296 = arith.addf %294, %295 : vector<24x32xf32>
    %297 = arith.mulf %296, %286 : vector<24x32xf32>
    %cst_144 = arith.constant 0.254829586 : f32
    %298 = vector.broadcast %cst_144 : f32 to vector<24x32xf32>
    %299 = arith.addf %297, %298 : vector<24x32xf32>
    %300 = arith.mulf %299, %286 : vector<24x32xf32>
    %cst_145 = arith.constant 0.000000e+00 : f32
    %301 = vector.broadcast %cst_145 : f32 to vector<24x32xf32>
    %302 = arith.subf %301, %280 : vector<24x32xf32>
    %303 = arith.mulf %302, %280 : vector<24x32xf32>
    %304 = math.exp %303 : vector<24x32xf32>
    %305 = arith.mulf %300, %304 : vector<24x32xf32>
    %cst_146 = arith.constant 1.000000e+00 : f32
    %306 = vector.broadcast %cst_146 : f32 to vector<24x32xf32>
    %307 = arith.subf %306, %305 : vector<24x32xf32>
    %308 = arith.mulf %279, %307 : vector<24x32xf32>
    %cst_147 = arith.constant 1.000000e+00 : f32
    %309 = vector.broadcast %cst_147 : f32 to vector<24x32xf32>
    %310 = arith.addf %309, %308 : vector<24x32xf32>
    %311 = arith.mulf %272, %310 : vector<24x32xf32>
    %312 = arith.truncf %311 : vector<24x32xf32> to vector<24x32xbf16>
    %c0_148 = arith.constant 0 : index
    %c0_149 = arith.constant 0 : index
    %313 = vector.load %arg19[%c0_148, %c0_149] : memref<32x32xbf16, #tpu.memory_space<vmem>>, vector<32x32xbf16>
    %cst_150 = arith.constant dense<0.000000e+00> : vector<24x32xf32>
    %314 = tpu.matmul %312, %313, %cst_150 {dimension_numbers = #tpu.dot_dimension_numbers<[1], [0], [0], [1], [0, 0, 1, 1], [], []>} : vector<24x32xbf16>, vector<32x32xbf16>, vector<24x32xf32> -> vector<24x32xf32>
    %c0_151 = arith.constant 0 : index
    %c0_152 = arith.constant 0 : index
    %315 = vector.load %arg20[%c0_151, %c0_152] : memref<1x32xf32, #tpu.memory_space<vmem>>, vector<1x32xf32>
    %316 = vector.broadcast %315 : vector<1x32xf32> to vector<24x32xf32>
    %317 = arith.addf %314, %316 : vector<24x32xf32>
    %318 = arith.addf %211, %317 : vector<24x32xf32>
    %cst_153 = arith.constant dense<0.000000e+00> : vector<24xf32>
    %319 = vector.multi_reduction <add>, %318, %cst_153 [1] : vector<24x32xf32> to vector<24xf32>
    %320 = vector.shape_cast %319 : vector<24xf32> to vector<24x1xf32>
    %cst_154 = arith.constant 3.200000e+01 : f32
    %321 = vector.broadcast %cst_154 : f32 to vector<24x1xf32>
    %322 = arith.divf %320, %321 : vector<24x1xf32>
    %323 = vector.broadcast %322 : vector<24x1xf32> to vector<24x32xf32>
    %324 = arith.subf %318, %323 : vector<24x32xf32>
    %325 = arith.mulf %324, %324 : vector<24x32xf32>
    %cst_155 = arith.constant dense<0.000000e+00> : vector<24xf32>
    %326 = vector.multi_reduction <add>, %325, %cst_155 [1] : vector<24x32xf32> to vector<24xf32>
    %327 = vector.shape_cast %326 : vector<24xf32> to vector<24x1xf32>
    %cst_156 = arith.constant 3.200000e+01 : f32
    %328 = vector.broadcast %cst_156 : f32 to vector<24x1xf32>
    %329 = arith.divf %327, %328 : vector<24x1xf32>
    %330 = vector.broadcast %322 : vector<24x1xf32> to vector<24x32xf32>
    %331 = arith.subf %318, %330 : vector<24x32xf32>
    %cst_157 = arith.constant 9.99999974E-6 : f32
    %332 = vector.broadcast %cst_157 : f32 to vector<24x1xf32>
    %333 = arith.addf %329, %332 : vector<24x1xf32>
    %334 = math.rsqrt %333 : vector<24x1xf32>
    %335 = vector.broadcast %334 : vector<24x1xf32> to vector<24x32xf32>
    %336 = arith.mulf %331, %335 : vector<24x32xf32>
    %c0_158 = arith.constant 0 : index
    %c0_159 = arith.constant 0 : index
    %337 = vector.load %arg23[%c0_158, %c0_159] : memref<1x32xf32, #tpu.memory_space<vmem>>, vector<1x32xf32>
    %338 = vector.broadcast %337 : vector<1x32xf32> to vector<24x32xf32>
    %339 = arith.mulf %336, %338 : vector<24x32xf32>
    %c0_160 = arith.constant 0 : index
    %c0_161 = arith.constant 0 : index
    %340 = vector.load %arg24[%c0_160, %c0_161] : memref<1x32xf32, #tpu.memory_space<vmem>>, vector<1x32xf32>
    %341 = vector.broadcast %340 : vector<1x32xf32> to vector<24x32xf32>
    %342 = arith.addf %339, %341 : vector<24x32xf32>
    %c0_162 = arith.constant 0 : index
    %c0_163 = arith.constant 0 : index
    %c0_164 = arith.constant 0 : index
    %343 = vector.load %arg27[%c0_162, %c0_163, %c0_164] : memref<1x24x32xf32, #tpu.memory_space<vmem>>, vector<1x24x32xf32>
    %344 = vector.shape_cast %343 : vector<1x24x32xf32> to vector<24x32xf32>
    %345 = vector.shape_cast %342 : vector<24x32xf32> to vector<1x24x32xf32>
    tpu.vector_store %arg27[%c0_162, %c0_163, %c0_164], %345 {strides = array<i32>} : memref<1x24x32xf32, #tpu.memory_space<vmem>>, vector<1x24x32xf32>,
    %346 = arith.truncf %342 : vector<24x32xf32> to vector<24x32xbf16>
    %c0_165 = arith.constant 0 : index
    %c0_166 = arith.constant 0 : index
    %347 = vector.load %arg25[%c0_165, %c0_166] : memref<32x8xbf16, #tpu.memory_space<vmem>>, vector<32x8xbf16>
    %cst_167 = arith.constant dense<0.000000e+00> : vector<24x8xf32>
    %348 = tpu.matmul %346, %347, %cst_167 {dimension_numbers = #tpu.dot_dimension_numbers<[1], [0], [0], [1], [0, 0, 1, 1], [], []>} : vector<24x32xbf16>, vector<32x8xbf16>, vector<24x8xf32> -> vector<24x8xf32>
    %c0_168 = arith.constant 0 : index
    %c0_169 = arith.constant 0 : index
    %349 = vector.load %arg26[%c0_168, %c0_169] : memref<1x8xf32, #tpu.memory_space<vmem>>, vector<1x8xf32>
    %350 = vector.broadcast %349 : vector<1x8xf32> to vector<24x8xf32>
    %351 = arith.addf %348, %350 : vector<24x8xf32>
    %c0_170 = arith.constant 0 : index
    %c0_171 = arith.constant 0 : index
    %c0_172 = arith.constant 0 : index
    %352 = vector.load %arg28[%c0_170, %c0_171, %c0_172] : memref<1x24x8xf32, #tpu.memory_space<vmem>>, vector<1x24x8xf32>
    %353 = vector.shape_cast %352 : vector<1x24x8xf32> to vector<24x8xf32>
    %354 = vector.shape_cast %351 : vector<24x8xf32> to vector<1x24x8xf32>
    tpu.vector_store %arg28[%c0_170, %c0_171, %c0_172], %354 {strides = array<i32>} : memref<1x24x8xf32, #tpu.memory_space<vmem>>, vector<1x24x8xf32>,
    return
  }
  func.func @transform_0(%arg0: i32) -> (i32, i32, i32) {
    %c0_i32 = arith.constant 0 : i32
    %c0_i32_0 = arith.constant 0 : i32
    %c0_i32_1 = arith.constant 0 : i32
    return %arg0, %c0_i32, %c0_i32_0 : i32, i32, i32
  }
  func.func @transform_1(%arg0: i32) -> (i32, i32, i32) {
    %c0_i32 = arith.constant 0 : i32
    %c0_i32_0 = arith.constant 0 : i32
    %c0_i32_1 = arith.constant 0 : i32
    return %arg0, %c0_i32, %c0_i32_0 : i32, i32, i32
  }
  func.func @transform_2(%arg0: i32) -> (i32, i32) {
    %c0_i32 = arith.constant 0 : i32
    %c0_i32_0 = arith.constant 0 : i32
    %c0_i32_1 = arith.constant 0 : i32
    return %c0_i32, %c0_i32_0 : i32, i32
  }
  func.func @transform_3(%arg0: i32) -> (i32, i32) {
    %c0_i32 = arith.constant 0 : i32
    %c0_i32_0 = arith.constant 0 : i32
    %c0_i32_1 = arith.constant 0 : i32
    return %c0_i32, %c0_i32_0 : i32, i32
  }
  func.func @transform_4(%arg0: i32) -> (i32, i32) {
    %c0_i32 = arith.constant 0 : i32
    %c0_i32_0 = arith.constant 0 : i32
    %c0_i32_1 = arith.constant 0 : i32
    return %c0_i32, %c0_i32_0 : i32, i32
  }
  func.func @transform_5(%arg0: i32) -> (i32, i32) {
    %c0_i32 = arith.constant 0 : i32
    %c0_i32_0 = arith.constant 0 : i32
    %c0_i32_1 = arith.constant 0 : i32
    return %c0_i32, %c0_i32_0 : i32, i32
  }
  func.func @transform_6(%arg0: i32) -> (i32, i32) {
    %c0_i32 = arith.constant 0 : i32
    %c0_i32_0 = arith.constant 0 : i32
    %c0_i32_1 = arith.constant 0 : i32
    return %c0_i32, %c0_i32_0 : i32, i32
  }
  func.func @transform_7(%arg0: i32) -> (i32, i32) {
    %c0_i32 = arith.constant 0 : i32
    %c0_i32_0 = arith.constant 0 : i32
    %c0_i32_1 = arith.constant 0 : i32
    return %c0_i32, %c0_i32_0 : i32, i32
  }
  func.func @transform_8(%arg0: i32) -> (i32, i32) {
    %c0_i32 = arith.constant 0 : i32
    %c0_i32_0 = arith.constant 0 : i32
    %c0_i32_1 = arith.constant 0 : i32
    return %c0_i32, %c0_i32_0 : i32, i32
  }
  func.func @transform_9(%arg0: i32) -> (i32, i32) {
    %c0_i32 = arith.constant 0 : i32
    %c0_i32_0 = arith.constant 0 : i32
    %c0_i32_1 = arith.constant 0 : i32
    return %c0_i32, %c0_i32_0 : i32, i32
  }
  func.func @transform_10(%arg0: i32) -> (i32, i32) {
    %c0_i32 = arith.constant 0 : i32
    %c0_i32_0 = arith.constant 0 : i32
    %c0_i32_1 = arith.constant 0 : i32
    return %c0_i32, %c0_i32_0 : i32, i32
  }
  func.func @transform_11(%arg0: i32) -> (i32, i32) {
    %c0_i32 = arith.constant 0 : i32
    %c0_i32_0 = arith.constant 0 : i32
    %c0_i32_1 = arith.constant 0 : i32
    return %c0_i32, %c0_i32_0 : i32, i32
  }
  func.func @transform_12(%arg0: i32) -> (i32, i32) {
    %c0_i32 = arith.constant 0 : i32
    %c0_i32_0 = arith.constant 0 : i32
    %c0_i32_1 = arith.constant 0 : i32
    return %c0_i32, %c0_i32_0 : i32, i32
  }
  func.func @transform_13(%arg0: i32) -> (i32, i32) {
    %c0_i32 = arith.constant 0 : i32
    %c0_i32_0 = arith.constant 0 : i32
    %c0_i32_1 = arith.constant 0 : i32
    return %c0_i32, %c0_i32_0 : i32, i32
  }
  func.func @transform_14(%arg0: i32) -> (i32, i32) {
    %c0_i32 = arith.constant 0 : i32
    %c0_i32_0 = arith.constant 0 : i32
    %c0_i32_1 = arith.constant 0 : i32
    return %c0_i32, %c0_i32_0 : i32, i32
  }
  func.func @transform_15(%arg0: i32) -> (i32, i32) {
    %c0_i32 = arith.constant 0 : i32
    %c0_i32_0 = arith.constant 0 : i32
    %c0_i32_1 = arith.constant 0 : i32
    return %c0_i32, %c0_i32_0 : i32, i32
  }
  func.func @transform_16(%arg0: i32) -> (i32, i32) {
    %c0_i32 = arith.constant 0 : i32
    %c0_i32_0 = arith.constant 0 : i32
    %c0_i32_1 = arith.constant 0 : i32
    return %c0_i32, %c0_i32_0 : i32, i32
  }
  func.func @transform_17(%arg0: i32) -> (i32, i32) {
    %c0_i32 = arith.constant 0 : i32
    %c0_i32_0 = arith.constant 0 : i32
    %c0_i32_1 = arith.constant 0 : i32
    return %c0_i32, %c0_i32_0 : i32, i32
  }
  func.func @transform_18(%arg0: i32) -> (i32, i32) {
    %c0_i32 = arith.constant 0 : i32
    %c0_i32_0 = arith.constant 0 : i32
    %c0_i32_1 = arith.constant 0 : i32
    return %c0_i32, %c0_i32_0 : i32, i32
  }
  func.func @transform_19(%arg0: i32) -> (i32, i32) {
    %c0_i32 = arith.constant 0 : i32
    %c0_i32_0 = arith.constant 0 : i32
    %c0_i32_1 = arith.constant 0 : i32
    return %c0_i32, %c0_i32_0 : i32, i32
  }
  func.func @transform_20(%arg0: i32) -> (i32, i32) {
    %c0_i32 = arith.constant 0 : i32
    %c0_i32_0 = arith.constant 0 : i32
    %c0_i32_1 = arith.constant 0 : i32
    return %c0_i32, %c0_i32_0 : i32, i32
  }
  func.func @transform_21(%arg0: i32) -> (i32, i32) {
    %c0_i32 = arith.constant 0 : i32
    %c0_i32_0 = arith.constant 0 : i32
    %c0_i32_1 = arith.constant 0 : i32
    return %c0_i32, %c0_i32_0 : i32, i32
  }
  func.func @transform_22(%arg0: i32) -> (i32, i32) {
    %c0_i32 = arith.constant 0 : i32
    %c0_i32_0 = arith.constant 0 : i32
    %c0_i32_1 = arith.constant 0 : i32
    return %c0_i32, %c0_i32_0 : i32, i32
  }
  func.func @transform_23(%arg0: i32) -> (i32, i32) {
    %c0_i32 = arith.constant 0 : i32
    %c0_i32_0 = arith.constant 0 : i32
    %c0_i32_1 = arith.constant 0 : i32
    return %c0_i32, %c0_i32_0 : i32, i32
  }
  func.func @transform_24(%arg0: i32) -> (i32, i32) {
    %c0_i32 = arith.constant 0 : i32
    %c0_i32_0 = arith.constant 0 : i32
    %c0_i32_1 = arith.constant 0 : i32
    return %c0_i32, %c0_i32_0 : i32, i32
  }
  func.func @transform_25(%arg0: i32) -> (i32, i32) {
    %c0_i32 = arith.constant 0 : i32
    %c0_i32_0 = arith.constant 0 : i32
    %c0_i32_1 = arith.constant 0 : i32
    return %c0_i32, %c0_i32_0 : i32, i32
  }
  func.func @transform_26(%arg0: i32) -> (i32, i32, i32) {
    %c0_i32 = arith.constant 0 : i32
    %c0_i32_0 = arith.constant 0 : i32
    %c0_i32_1 = arith.constant 0 : i32
    return %arg0, %c0_i32, %c0_i32_0 : i32, i32, i32
  }
  func.func @transform_27(%arg0: i32) -> (i32, i32, i32) {
    %c0_i32 = arith.constant 0 : i32
    %c0_i32_0 = arith.constant 0 : i32
    %c0_i32_1 = arith.constant 0 : i32
    return %arg0, %c0_i32, %c0_i32_0 : i32, i32, i32
  }
}

</mosaic_0001>

<bundles_post_ra>
// kernel: decoder_layer_forward.3
= control target key start
LH: loop header
LB: loop body
LE: loop exit
PB: predicated region body
PF: predicated region fallthrough
CT: control target
= control target key end

     0   :  { %s1797_s0 = inlined_call_operand.vmem [shape: f32[1,24,32], index: 0, kind: input, shape index: {}]   ;;  %s1798_s1 = inlined_call_operand.vmem [shape: s32[24,1], index: 1, kind: input, shape index: {}]   ;;  %s1799_s2 = inlined_call_operand.vmem [shape: s32[1,24], index: 2, kind: input, shape index: {}]   ;;  %s1800_s3 = inlined_call_operand.vmem [shape: bf16[32,32], index: 3, kind: input, shape index: {}]   ;;  %s1801_s4 = inlined_call_operand.vmem [shape: f32[1,32], index: 4, kind: input, shape index: {}]   ;;  %s1802_s5 = inlined_call_operand.vmem [shape: bf16[32,32], index: 5, kind: input, shape index: {}]   ;;  %s1803_s6 = inlined_call_operand.vmem [shape: f32[1,32], index: 6, kind: input, shape index: {}]   ;;  %s1804_s7 = inlined_call_operand.vmem [shape: bf16[32,32], index: 7, kind: input, shape index: {}]   ;;  %s1805_s8 = inlined_call_operand.hbm [shape: f32[1,32], index: 8, kind: input, shape index: {}]   ;;  %s1806_s9 = inlined_call_operand.vmem [shape: bf16[32,32], index: 9, kind: input, shape index: {}]   ;;  %s1807_s10 = inlined_call_operand.vmem [shape: f32[1,32], index: 10, kind: input, shape index: {}]   ;;  %s1808_s11 = inlined_call_operand.vmem [shape: f32[1,32], index: 11, kind: input, shape index: {}]   ;;  %s1809_s12 = inlined_call_operand.vmem [shape: f32[1,32], index: 12, kind: input, shape index: {}]   ;;  %s1810_s13 = inlined_call_operand.vmem [shape: bf16[32,64], index: 13, kind: input, shape index: {}]   ;;  %s1811_s14 = inlined_call_operand.vmem [shape: f32[1,64], index: 14, kind: input, shape index: {}]   ;;  %s1812_s15 = inlined_call_operand.vmem [shape: bf16[64,32], index: 15, kind: input, shape index: {}]   ;;  %s1813_s16 = inlined_call_operand.vmem [shape: f32[1,32], index: 16, kind: input, shape index: {}]   ;;  %s1814_s17 = inlined_call_operand.vmem [shape: f32[1,32], index: 17, kind: input, shape index: {}]   ;;  %s1815_s18 = inlined_call_operand.vmem [shape: f32[1,32], index: 18, kind: input, shape index: {}]   ;;  %s1816_s19 = inlined_call_operand.vmem [shape: f32[1,24,32], index: 19, kind: output, shape index: {}]  }
   0x1   :  { %1820 = sst [smem:[#allocation5_spill]] %s1797_s0 }
   0x2   :  { %1821 = sst [smem:[#allocation6_spill]] %s1798_s1 }
   0x3   :  { %1822 = sst [smem:[#allocation7_spill]] %s1799_s2 }
   0x4   :  { %1823 = sst [smem:[#allocation8_spill]] %s1800_s3 }
   0x5   :  { %24 = vsyncpa [#allocation3], 0  ;;  %s1424_s0 = smov [#allocation2]  }
   0x6   :  { %s47_s30 = sshll.u32 %s1424_s0, 4  ;;  %s48_s30 = int_to_ptr.vmem [resolvable:$true] %s47_s30 }
   0x7   :  { %s1410_s20 = scalar_lea.vmem %s48_s30, 16  ;;  %s1414_s21 = scalar_lea.vmem %s48_s30, 32 }
   0x8   :  { %p1411_p0 = scmp.ne.s32.totalorder %s48_s30, %s1410_s20  ;;  %p1415_p1 = scmp.lt.s32.totalorder %s48_s30, %s48_s30 }
   0x9   :  { %p1416_p2 = scmp.lt.s32.totalorder %s1414_s21, %s1410_s20 }
   0xb   :  { %p1417_p3 = por %p1416_p2, %p1415_p1 }
   0xd   :  { %p1418_p4 = pnand %p1417_p3, %p1411_p0 }
   0xf   :  { %1421 = shalt.err (!%p1418_p4)
}
  0x10   :  { %50 = dma.hbm_to_vmem [thread:$0]  %s1805_s8, 16, %s48_s30, [#allocation3]  }
  0x11   :  { %1422 = dma.done.wait [#allocation3], 16  }
  0x12   :  { %1423 = vsyncadd [#allocation3], 4294967280  ;;  %v1340_v0 = vld [vmem:[%s1802_s5 + $0x8] sm:$0xff]   ;;  %s1824_s3 = sld [smem:[#allocation8_spill]]  ;;  %v1342_v2 = vld [vmem:[%s1802_s5] sm:$0xff]   ;;  %vm126_vm0 = vcmask 261120  }
  0x13   :  { %1245 = vmatprep.subr.bf16.mxu1 %v1340_v0  ;;  %s1825_s30 = sld [smem:[#allocation5_spill]]  ;;  %v1425_v11 = vmov 0   ;;  %v1156_v13 = vld [vmem:[%s1803_s6] ss:$0 sm:$0xff]  ;;  %vm327_vm1 = vcmask 130048   ;;  %v1344_v35 = vld [vmem:[%s1804_s7 + $0x8] sm:$0xff]  }
  0x14   :  { %1246 = vmatpush3.bf16.msra.mxu1 %v1340_v0  ;;  %s1826_s23 = sld [smem:[#allocation6_spill]]  ;;  %1333 = vset.pattern.permute.xlu0 %v1425_v11  ;;  %v1151_v19 = vld [vmem:[%s1801_s4] ss:$0 sm:$0xff]  ;;  %v1426_v41 = vmov -1e+30   ;;  %vm394_vm5 = vcmask 195584  }
  0x15   :  { %1247 = vmatprep.subr.bf16.mxu1 %v1342_v2  ;;  %1334 = vset.pattern.permute.xlu1 %v1425_v11  ;;  %v1345_v36 = vld [vmem:[%s1804_s7] sm:$0xff]   ;;  %s1827_s5 = sld [smem:[#allocation7_spill]]  ;;  %vm438_vm6 = vcmask 1043456   ;;  %s1427_s7 = smov 112   ;;  %vm1025_vm10 = vcmask 523264  }
  0x16   :  { %v1161_v11 = vld [vmem:[#allocation2] ss:$0 sm:$0xff]  ;;  %s1428_s24 = smov 16  }
  0x18   :  { %v1341_v1 = vld [vmem:[%s1824_s3 + $0x8] sm:$0xff]   ;;  %v1343_v3 = vld [vmem:[%s1824_s3] sm:$0xff]   ;;  %1248 = vmatpush3.bf16.msra.mxu1 %v1342_v2 }
  0x19   :  { %1237 = vmatprep.subr.bf16.mxu0 %v1341_v1  ;;  %v1548_v4 = vld [vmem:[%s1825_s30] sm:$0xff]  ;;  %v1553_v5 = vld [vmem:[%s1825_s30 + $0x8] sm:$0xff]  ;;  %v1558_v6 = vld [vmem:[%s1825_s30 + $0x10] sm:$0xff] }
  0x1a   :  { %1238 = vmatpush3.bf16.msra.mxu0 %v1341_v1  ;;  %v101_v7 = vpack.c.bf16 %v1553_v5, %v1548_v4  ;;  %v102_v8 = vpack.c.bf16 %v1558_v6, %v1558_v6  ;;  %v78_v9 = vld [vmem:[%s1826_s23] sm:$0xff]  ;;  %v80_v10 = vld [vmem:[%s1826_s23 + $0x10] sm:$0xff]  ;;  %v79_v12 = vld [vmem:[%s1826_s23 + $0x8] sm:$0xff] }
  0x1b   :  { %1239 = vmatprep.subr.bf16.mxu0 %v1343_v3  ;;  %83 = vperm.xlu0 %1333, %v78_v9   ;;  %v1150_v38 = vld [vmem:[%s1827_s5] ss:$0 sm:$0xff] }
  0x1c   :  { %1249 = vmatprep.mubr.msk.bf16.mxu1 %vm126_vm0, %v101_v7  ;;  %1241 = vmatprep.mubr.msk.bf16.mxu0 %vm126_vm0, %v101_v7 }
  0x1d   :  { %1250 = vmatmul.mubr.msk.bf16.vlgmr.msra.gmra.mxu1 %vm126_vm0, %v102_v8  ;;  %89 = vperm.xlu1 %1334, %v80_v10  }
  0x1e   :  { %1240 = vmatpush3.bf16.msra.mxu0 %v1343_v3 }
  0x1f   :  { %86 = vperm.xlu0 %1333, %v79_v12   ;;  %1253 = vmatprep.subr.bf16.mxu0 %v1344_v35 }
  0x21   :  { %1242 = vmatmul.mubr.msk.bf16.vlgmr.msra.gmra.mxu0 %vm126_vm0, %v102_v8 }
  0x22   :  { %1257 = vmatprep.mubr.msk.bf16.mxu0 %vm126_vm0, %v101_v7  ;;  %1254 = vmatpush3.bf16.msra.mxu0 %v1344_v35 }
  0x23   :  { %1255 = vmatprep.subr.bf16.mxu0 %v1345_v36 }
  0x26   :  { %1256 = vmatpush3.bf16.msra.mxu0 %v1345_v36 }
  0x29   :  { %1258 = vmatmul.mubr.msk.bf16.vlgmr.msra.gmra.mxu0 %vm126_vm0, %v102_v8 }
  0x96   :  { %v84_v37 = vpop.permute.xlu0 %83 }
  0x97   :  { %vm95_vm2 = vcmp.eq.s32.totalorder %v84_v37, %v1150_v38 }
  0x98   :  { %v90_v40 = vpop.permute.xlu1 %89  ;;  %v1614_v42 = vsel %vm95_vm2, 0.0, %v1426_v41 }
  0x99   :  { %vm97_vm3 = vcmp.eq.s32.totalorder %v90_v40, %v1150_v38 }
  0x9a   :  { %v87_v43 = vpop.permute.xlu0 %86  ;;  %v1618_v52 = vsel %vm97_vm3, 0.0, %v1426_v41 }
  0x9b   :  { %vm96_vm4 = vcmp.eq.s32.totalorder %v87_v43, %v1150_v38 }
  0x9c   :  { %v1620_v53 = vsel %vm96_vm4, 0.0, %v1426_v41 }
  0xdd   :  { %v1251_v14 = vpop.f32.mrf.mxu1 }
  0xde   :  { %v247_v15 = vadd.f32 %v1251_v14, %v1156_v13 }
  0xdf   :  { %v238_v17 = vpop.f32.mrf.mxu1 }
  0xe0   :  { %v1581_v18 = vpack.c.bf16 %v247_v15, %v247_v15  ;;  %v239_v26 = vadd.f32 %v1156_v13, %v238_v17 }
  0xe1   :  { %v1243_v16 = vpop.f32.mrf.mxu0  ;;  %v1252_v21 = vpop.f32.mrf.mxu1 }
  0xe2   :  { %1321 = vmatprep.subr.msk.bf16.mxu1 %vm327_vm1, %v1581_v18  ;;  %v338_v22 = vsel %vm327_vm1, %v1581_v18, 0  ;;  %v176_v33 = vadd.f32 %v1243_v16, %v1151_v19 }
  0xe3   :  { %v167_v20 = vpop.f32.mrf.mxu0  ;;  %v241_v25 = vpop.f32.mrf.mxu1  ;;  %1262 = vmatpush3.bf16.xpose.msra.mxu1 %v338_v22 }
  0xe4   :  { %v168_v24 = vadd.f32 %v1151_v19, %v167_v20  ;;  %v242_v27 = vadd.f32 %v1156_v13, %v241_v25  ;;  %v1600_v34 = vpack.c.bf16 %v176_v33, %v176_v33 }
  0xe5   :  { %v1244_v23 = vpop.f32.mrf.mxu0 }
  0xe6   :  { %v1590_v30 = vpack.c.bf16 %v242_v27, %v239_v26 }
  0xe7   :  { %v170_v28 = vpop.f32.mrf.mxu0 }
  0xe8   :  { %v171_v29 = vadd.f32 %v1151_v19, %v170_v28  ;;  %1322 = vmatprep.subr.msk.bf16.mxu1 %vm327_vm1, %v1590_v30  ;;  %v335_v32 = vsel %vm327_vm1, %v1590_v30, 0 }
  0xe9   :  { %v1259_v58 = vpop.f32.mrf.mxu0 }
  0xea   :  { %v1592_v31 = vpack.c.bf16 %v171_v29, %v168_v24  ;;  %v318_v14 = vadd.f32 %v1259_v58, %v1161_v11 }
  0xeb   :  { %1264 = vmatpush3.bf16.xpose.msra.mxu1 %v335_v32  ;;  %v309_v59 = vpop.f32.mrf.mxu0 }
  0xec   :  { %1265 = vmatprep.mubr.msk.bf16.mxu1 %vm327_vm1, %v1592_v31  ;;  %v1629_v17 = vpack.c.bf16 %v318_v14, %v318_v14  ;;  %v310_v19 = vadd.f32 %v1161_v11, %v309_v59 }
  0xed   :  { %v1260_v60 = vpop.f32.mrf.mxu0 }
  0xee   :  { %1323 = vmatprep.subr.msk.bf16.mxu0 %vm438_vm6, %v1629_v17  ;;  %v440_v22 = vsel %vm438_vm6, %v1629_v17, 0 }
  0xef   :  { %v312_v20 = vpop.f32.mrf.mxu0  ;;  %1270 = vmatpush3.bf16.msra.mxu0 %v440_v22 }
  0xf0   :  { %v313_v21 = vadd.f32 %v1161_v11, %v312_v20 }
  0xf2   :  { %1266 = vmatmul.mubr.msk.bf16.vlgmr.msra.gmra.mxu1 %vm327_vm1, %v1600_v34  ;;  %v1635_v23 = vpack.c.bf16 %v313_v21, %v310_v19 }
  0xf4   :  { %1271 = vmatprep.subr.bf16.mxu0 %v1635_v23 }
  0xf5   :  { %1272 = vmatpush3.bf16.msra.mxu0 %v1635_v23 }
 0x1b2   :  { %v1267_v39 = vpop.f32.mrf.mxu1 }
 0x1b3   :  { %v390_v49 = vmul.f32 0.25, %v1267_v39 }
 0x1b4   :  { %v374_v44 = vpop.f32.mrf.mxu1 }
 0x1b5   :  { %v388_v45 = vmul.f32 0.25, %v374_v44  ;;  %v393_v56 = vadd.f32 %v390_v49, %v1618_v52 }
 0x1b6   :  { %v1268_v46 = vpop.f32.mrf.mxu1 }
 0x1b7   :  { %v391_v47 = vadd.f32 %v388_v45, %v1614_v42  ;;  %v401_v57 = vsel %vm394_vm5, %v393_v56, -inf }
 0x1b8   :  { %v377_v48 = vpop.f32.mrf.mxu1 }
 0x1b9   :  { %v389_v50 = vmul.f32 0.25, %v377_v48  ;;  %v395_v51 = vsel %vm394_vm5, %v391_v47, -inf }
 0x1ba   :  { %396 = vmax.xlane.f32.xlu1 %v395_v51 }
 0x1bb   :  { %v392_v54 = vadd.f32 %v389_v50, %v1620_v53 }
 0x1bd   :  { %v398_v55 = vsel %vm394_vm5, %v392_v54, -inf }
 0x1be   :  { %399 = vmax.xlane.f32.xlu0 %v398_v55 }
 0x1c2   :  { %402 = vmax.xlane.f32.xlu0 %v401_v57 }
 0x243   :  { %v397_v61 = vpop.xlane.xlu1 %396 }
 0x244   :  { %v404_v62 = vsub.f32 %v391_v47, %v397_v61 }
 0x246   :  { %v407_v63 = vmul.f32 1.442695, %v404_v62 }
 0x247   :  { %v400_v0 = vpop.xlane.xlu0 %399 }
 0x248   :  { %1354 = vpow2.f32 %v407_v63  ;;  %v405_v1 = vsub.f32 %v392_v54, %v400_v0 }
 0x24a   :  { %v409_v2 = vmul.f32 1.442695, %v405_v1 }
 0x24b   :  { %v403_v3 = vpop.xlane.xlu0 %402 }
 0x24c   :  { %1356 = vpow2.f32 %v409_v2  ;;  %v406_v7 = vsub.f32 %v393_v56, %v403_v3 }
 0x24e   :  { %v411_v8 = vmul.f32 1.442695, %v406_v7 }
 0x250   :  { %1358 = vpow2.f32 %v411_v8 }
 0x255   :  { %v1355_v9 = vpop.eup %1354 }
 0x256   :  { %v413_v10 = vsel %vm394_vm5, %v1355_v9, 0.0 }
 0x257   :  { %414 = vadd.xlane.f32.xlu1 %v413_v10 }
 0x259   :  { %v1357_v12 = vpop.eup %1356 }
 0x25a   :  { %v416_v13 = vsel %vm394_vm5, %v1357_v12, 0.0 }
 0x25b   :  { %417 = vadd.xlane.f32.xlu0 %v416_v13 }
 0x25d   :  { %v1359_v15 = vpop.eup %1358 }
 0x25e   :  { %v419_v16 = vsel %vm394_vm5, %v1359_v15, 0.0 }
 0x25f   :  { %420 = vadd.xlane.f32.xlu1 %v419_v16 }
 0x270   :  { %498 = vrot.lane.b32.xlu1 %v1590_v30, %s1427_s7 }
 0x271   :  { %500 = vrot.lane.b32.xlu0 %v1581_v18, %s1427_s7 }
 0x274   :  { %492 = vrot.lane.b32.xlu1 %v1592_v31, %s1427_s7 }
 0x275   :  { %494 = vrot.lane.b32.xlu0 %v1600_v34, %s1427_s7 }
 0x2e0   :  { %v415_v24 = vpop.xlane.xlu1 %414 }
 0x2e1   :  { %1360 = vrcp.f32 %v415_v24 }
 0x2e4   :  { %v418_v25 = vpop.xlane.xlu0 %417 }
 0x2e5   :  { %1362 = vrcp.f32 %v418_v25 }
 0x2e8   :  { %v421_v26 = vpop.xlane.xlu1 %420  ;;  %v501_v27 = vpop.permute.xlu0 %500 }
 0x2e9   :  { %1364 = vrcp.f32 %v421_v26  ;;  %1324 = vmatprep.subr.msk.bf16.mxu0 %vm327_vm1, %v501_v27  ;;  %v512_v36 = vsel %vm327_vm1, %v501_v27, 0  ;;  %v1346_v26 = vld [vmem:[%s1806_s9 + $0x8] sm:$0xff]   ;;  %v1347_v27 = vld [vmem:[%s1806_s9] sm:$0xff]  }
 0x2ec   :  { %v499_v18 = vpop.permute.xlu1 %498  ;;  %v495_v39 = vpop.permute.xlu0 %494 }
 0x2ed   :  { %v509_v38 = vsel %vm327_vm1, %v499_v18, 0 }
 0x2ee   :  { %v1361_v28 = vpop.eup %1360 }
 0x2ef   :  { %v425_v30 = vmul.f32 %v1361_v28, %v1355_v9 }
 0x2f0   :  { %v493_v37 = vpop.permute.xlu1 %492 }
 0x2f2   :  { %v1363_v29 = vpop.eup %1362 }
 0x2f3   :  { %v426_v32 = vmul.f32 %v1363_v29, %v1357_v12 }
 0x2f5   :  { %v428_v33 = vpack.c.bf16 %v426_v32, %v425_v30 }
 0x2f6   :  { %v1365_v35 = vpop.eup %1364 }
 0x2f7   :  { %1273 = vmatprep.mubr.msk.bf16.mxu0 %vm394_vm5, %v428_v33  ;;  %v427_v31 = vmul.f32 %v1365_v35, %v1359_v15 }
 0x2f9   :  { %v429_v34 = vpack.c.bf16 %v427_v31, %v427_v31 }
 0x2fb   :  { %1274 = vmatmul.mubr.msk.bf16.vlgmr.msra.gmra.mxu0 %vm394_vm5, %v429_v34 }
 0x2fc   :  { %1278 = vmatpush3.bf16.xpose.msra.mxu0 %v512_v36  ;;  %1281 = vmatprep.mubr.msk.bf16.mxu0 %vm327_vm1, %v493_v37 }
 0x2fd   :  { %1325 = vmatprep.subr.msk.bf16.mxu0 %vm327_vm1, %v499_v18 }
 0x304   :  { %1280 = vmatpush3.bf16.xpose.msra.mxu0 %v509_v38 }
 0x30b   :  { %1282 = vmatmul.mubr.msk.bf16.vlgmr.msra.gmra.mxu0 %vm327_vm1, %v495_v39 }
 0x3bb   :  { %v1655_v40 = vpop.f32.mrf.mxu0 }
 0x3bd   :  { %v1657_v41 = vpop.f32.mrf.mxu0 }
 0x3bf   :  { %v1276_v43 = vpop.f32.mrf.mxu0 }
 0x3c1   :  { %v1659_v44 = vpop.f32.mrf.mxu0 }
 0x3cb   :  { %v1283_v45 = vpop.f32.mrf.mxu0 }
 0x3cc   :  { %v564_v51 = vmul.f32 0.25, %v1283_v45 }
 0x3cd   :  { %v548_v46 = vpop.f32.mrf.mxu0 }
 0x3ce   :  { %v562_v47 = vmul.f32 0.25, %v548_v46  ;;  %v567_v58 = vadd.f32 %v564_v51, %v1618_v52  ;;  %v1174_v46 = vld [vmem:[%s1807_s10] ss:$0 sm:$0xff] }
 0x3cf   :  { %v1284_v48 = vpop.f32.mrf.mxu0 }
 0x3d0   :  { %v565_v49 = vadd.f32 %v562_v47, %v1614_v42  ;;  %v574_v59 = vsel %vm394_vm5, %v567_v58, -inf }
 0x3d1   :  { %v551_v50 = vpop.f32.mrf.mxu0 }
 0x3d2   :  { %v563_v54 = vmul.f32 0.25, %v551_v50  ;;  %v568_v55 = vsel %vm394_vm5, %v565_v49, -inf }
 0x3d3   :  { %569 = vmax.xlane.f32.xlu1 %v568_v55 }
 0x3d4   :  { %v566_v56 = vadd.f32 %v563_v54, %v1620_v53 }
 0x3d6   :  { %v571_v57 = vsel %vm394_vm5, %v566_v56, -inf }
 0x3d7   :  { %572 = vmax.xlane.f32.xlu0 %v571_v57 }
 0x3db   :  { %575 = vmax.xlane.f32.xlu0 %v574_v59 }
 0x45c   :  { %v570_v60 = vpop.xlane.xlu1 %569 }
 0x45d   :  { %v577_v42 = vsub.f32 %v565_v49, %v570_v60 }
 0x45f   :  { %v580_v2 = vmul.f32 1.442695, %v577_v42 }
 0x460   :  { %v573_v61 = vpop.xlane.xlu0 %572 }
 0x461   :  { %v578_v62 = vsub.f32 %v566_v56, %v573_v61 }
 0x463   :  { %v582_v63 = vmul.f32 1.442695, %v578_v62 }
 0x464   :  { %v576_v0 = vpop.xlane.xlu0 %575 }
 0x465   :  { %1366 = vpow2.f32 %v582_v63  ;;  %v579_v1 = vsub.f32 %v567_v58, %v576_v0 }
 0x467   :  { %v584_v3 = vmul.f32 1.442695, %v579_v1 }
 0x469   :  { %1368 = vpow2.f32 %v584_v3 }
 0x46a   :  { %1370 = vpow2.f32 %v580_v2 }
 0x472   :  { %v1367_v53 = vpop.eup %1366 }
 0x473   :  { %v589_v7 = vsel %vm394_vm5, %v1367_v53, 0.0 }
 0x474   :  { %590 = vadd.xlane.f32.xlu0 %v589_v7  ;;  %v1348_v7 = vld [vmem:[%s1810_s13 + $0x8] sm:$0xff]  }
 0x475   :  { %1301 = vmatprep.subr.bf16.mxu0 %v1348_v7 }
 0x476   :  { %v1369_v52 = vpop.eup %1368  ;;  %1302 = vmatpush3.bf16.msra.mxu0 %v1348_v7 }
 0x477   :  { %v592_v8 = vsel %vm394_vm5, %v1369_v52, 0.0  ;;  %v1371_v9 = vpop.eup %1370 }
 0x478   :  { %593 = vadd.xlane.f32.xlu1 %v592_v8  ;;  %v586_v10 = vsel %vm394_vm5, %v1371_v9, 0.0 }
 0x47c   :  { %587 = vadd.xlane.f32.xlu1 %v586_v10 }
 0x48a   :  { %607 = vrot.lane.b32.xlu0 %v1629_v17, %s1427_s7 }
 0x48d   :  { %605 = vrot.lane.b32.xlu1 %v1635_v23, %s1427_s7 }
 0x4fd   :  { %v591_v11 = vpop.xlane.xlu0 %590 }
 0x501   :  { %v594_v12 = vpop.xlane.xlu1 %593  ;;  %v608_v13 = vpop.permute.xlu0 %607 }
 0x502   :  { %v617_v14 = vsel %vm438_vm6, %v608_v13, 0  ;;  %1326 = vmatprep.subr.msk.bf16.mxu1 %vm438_vm6, %v608_v13  ;;  %1372 = vrcp.f32 %v594_v12 }
 0x503   :  { %1286 = vmatpush3.bf16.msra.mxu1 %v617_v14  ;;  %1374 = vrcp.f32 %v591_v11 }
 0x505   :  { %v588_v15 = vpop.xlane.xlu1 %587 }
 0x506   :  { %1376 = vrcp.f32 %v588_v15 }
 0x509   :  { %v606_v16 = vpop.permute.xlu1 %605 }
 0x50a   :  { %1287 = vmatprep.subr.bf16.mxu1 %v606_v16 }
 0x50b   :  { %1288 = vmatpush3.bf16.msra.mxu1 %v606_v16 }
 0x50c   :  { %1293 = vmatprep.subr.bf16.mxu1 %v1346_v26 }
 0x50f   :  { %v1373_v19 = vpop.eup %1372 }
 0x510   :  { %v1375_v17 = vpop.eup %1374  ;;  %v600_v21 = vmul.f32 %v1373_v19, %v1369_v52  ;;  %v1349_v52 = vld [vmem:[%s1810_s13] sm:$0xff]  }
 0x511   :  { %v599_v23 = vmul.f32 %v1375_v17, %v1367_v53  ;;  %1303 = vmatprep.subr.bf16.mxu0 %v1349_v52 }
 0x512   :  { %v602_v25 = vpack.c.bf16 %v600_v21, %v600_v21  ;;  %1304 = vmatpush3.bf16.msra.mxu0 %v1349_v52 }
 0x513   :  { %v1377_v20 = vpop.eup %1376 }
 0x514   :  { %v598_v22 = vmul.f32 %v1377_v20, %v1371_v9  ;;  %v1179_v20 = vld [vmem:[%s1808_s11] ss:$0 sm:$0xff] }
 0x516   :  { %v601_v24 = vpack.c.bf16 %v599_v23, %v598_v22 }
 0x518   :  { %1289 = vmatprep.mubr.msk.bf16.mxu1 %vm394_vm5, %v601_v24  ;;  %v1180_v24 = vld [vmem:[%s1809_s12] ss:$0 sm:$0xff] }
 0x519   :  { %1290 = vmatmul.mubr.msk.bf16.vlgmr.msra.gmra.mxu1 %vm394_vm5, %v602_v25 }
 0x51a   :  { %1294 = vmatpush3.bf16.msra.mxu1 %v1346_v26 }
 0x51b   :  { %1295 = vmatprep.subr.bf16.mxu1 %v1347_v27 }
 0x51e   :  { %1296 = vmatpush3.bf16.msra.mxu1 %v1347_v27 }
 0x5d9   :  { %v1291_v28 = vpop.f32.mrf.mxu1 }
 0x5da   :  { %674 = vrot.lane.b32.xlu0 %v1291_v28, %s1428_s24 }
 0x5db   :  { %v653_v29 = vpop.f32.mrf.mxu1 }
 0x5dd   :  { %v1292_v30 = vpop.f32.mrf.mxu1 }
 0x5df   :  { %v656_v32 = vpop.f32.mrf.mxu1 }
 0x5e0   :  { %v1335_v18 = vpack.i.bf16 %v656_v32, %v653_v29 }
 0x5e2   :  { %1336 = vrot.lane.b32.xlu1 %v1335_v18, %s1428_s24 }
 0x64c   :  { %v675_v33 = vpop.permute.xlu0 %674 }
 0x64d   :  { %v681_v36 = vsel %vm327_vm1, %v1655_v40, %v675_v33 }
 0x64e   :  { %v683_v43 = vpack.c.bf16 %v681_v36, %v681_v36  ;;  %v1353_v36 = vld [vmem:[%s1812_s15] sm:$0xff]  }
 0x654   :  { %v1337_v35 = vpop.permute.xlu1 %1336 }
 0x655   :  { %v1339_v31 = vunpack.i.h.bf16 %v1337_v35  ;;  %v1338_v34 = vunpack.i.l.bf16 %v1337_v35  ;;  %v1350_v35 = vld [vmem:[%s1812_s15 + $0x18] sm:$0xff]  }
 0x656   :  { %1309 = vmatprep.subr.bf16.mxu1 %v1350_v35 }
 0x657   :  { %v680_v37 = vsel %vm327_vm1, %v1659_v44, %v1339_v31  ;;  %v679_v38 = vsel %vm327_vm1, %v1657_v41, %v1338_v34  ;;  %v1351_v31 = vld [vmem:[%s1812_s15 + $0x10] sm:$0xff]   ;;  %v1352_v34 = vld [vmem:[%s1812_s15 + $0x8] sm:$0xff]  }
 0x658   :  { %v682_v39 = vpack.c.bf16 %v680_v37, %v679_v38  ;;  %v1181_v37 = vld [vmem:[%s1811_s14] ss:$0 sm:$0xff] }
 0x65a   :  { %1297 = vmatprep.mubr.msk.bf16.mxu1 %vm126_vm0, %v682_v39 }
 0x65b   :  { %1298 = vmatmul.mubr.msk.bf16.vlgmr.msra.gmra.mxu1 %vm126_vm0, %v683_v43 }
 0x65c   :  { %1310 = vmatpush3.bf16.msra.mxu1 %v1350_v35 }
 0x65d   :  { %1311 = vmatprep.subr.bf16.mxu1 %v1351_v31 }
 0x660   :  { %1312 = vmatpush3.bf16.msra.mxu1 %v1351_v31 }
 0x661   :  { %1313 = vmatprep.subr.bf16.mxu1 %v1352_v34 }
 0x664   :  { %1314 = vmatpush3.bf16.msra.mxu1 %v1352_v34 }
 0x665   :  { %1315 = vmatprep.subr.bf16.mxu1 %v1353_v36 }
 0x668   :  { %1316 = vmatpush3.bf16.msra.mxu1 %v1353_v36 }
 0x71b   :  { %v1299_v45 = vpop.f32.mrf.mxu1 }
 0x71c   :  { %v756_v50 = vadd.f32 %v1299_v45, %v1174_v46 }
 0x71d   :  { %v747_v47 = vpop.f32.mrf.mxu1 }
 0x71e   :  { %v748_v48 = vadd.f32 %v1174_v46, %v747_v47  ;;  %v763_v56 = vadd.f32 %v756_v50, %v1558_v6 }
 0x71f   :  { %v1300_v40 = vpop.f32.mrf.mxu1 }
 0x720   :  { %v761_v49 = vadd.f32 %v748_v48, %v1548_v4  ;;  %v770_v57 = vsel %vm126_vm0, %v763_v56, 0.0 }
 0x721   :  { %v750_v44 = vpop.f32.mrf.mxu1 }
 0x722   :  { %v751_v51 = vadd.f32 %v1174_v46, %v750_v44  ;;  %v764_v41 = vsel %vm126_vm0, %v761_v49, 0.0 }
 0x723   :  { %765 = vadd.xlane.f32.xlu1 %v764_v41 }
 0x724   :  { %v762_v54 = vadd.f32 %v751_v51, %v1553_v5 }
 0x726   :  { %v767_v55 = vsel %vm126_vm0, %v762_v54, 0.0 }
 0x727   :  { %768 = vadd.xlane.f32.xlu0 %v767_v55 }
 0x72b   :  { %771 = vadd.xlane.f32.xlu0 %v770_v57 }
 0x7ac   :  { %v766_v58 = vpop.xlane.xlu1 %765 }
 0x7ad   :  { %v774_v59 = vmul.f32 0.03125, %v766_v58 }
 0x7af   :  { %v777_v60 = vsub.f32 %v761_v49, %v774_v59 }
 0x7b0   :  { %v769_v4 = vpop.xlane.xlu0 %768 }
 0x7b1   :  { %v775_v61 = vmul.f32 0.03125, %v769_v4  ;;  %v780_v62 = vmul.f32 %v777_v60, %v777_v60 }
 0x7b3   :  { %v778_v42 = vsub.f32 %v762_v54, %v775_v61  ;;  %v783_v63 = vsel %vm126_vm0, %v780_v62, 0.0 }
 0x7b4   :  { %v772_v0 = vpop.xlane.xlu0 %771  ;;  %784 = vadd.xlane.f32.xlu1 %v783_v63 }
 0x7b5   :  { %v776_v5 = vmul.f32 0.03125, %v772_v0  ;;  %v781_v1 = vmul.f32 %v778_v42, %v778_v42 }
 0x7b7   :  { %v779_v2 = vsub.f32 %v763_v56, %v776_v5  ;;  %v786_v6 = vsel %vm126_vm0, %v781_v1, 0.0 }
 0x7b8   :  { %787 = vadd.xlane.f32.xlu0 %v786_v6 }
 0x7b9   :  { %v782_v3 = vmul.f32 %v779_v2, %v779_v2 }
 0x7bb   :  { %v789_v53 = vsel %vm126_vm0, %v782_v3, 0.0 }
 0x7bc   :  { %790 = vadd.xlane.f32.xlu1 %v789_v53 }
 0x83d   :  { %v785_v8 = vpop.xlane.xlu1 %784 }
 0x83e   :  { %v792_v9 = vmul.f32 0.03125, %v785_v8 }
 0x840   :  { %v795_v10 = vadd.f32 1e-05, %v792_v9 }
 0x841   :  { %v788_v11 = vpop.xlane.xlu0 %787 }
 0x842   :  { %1378 = vrsqrt.f32 %v795_v10  ;;  %v793_v12 = vmul.f32 0.03125, %v788_v11 }
 0x844   :  { %v796_v13 = vadd.f32 1e-05, %v793_v12 }
 0x845   :  { %v791_v14 = vpop.xlane.xlu1 %790 }
 0x846   :  { %1380 = vrsqrt.f32 %v796_v13  ;;  %v794_v15 = vmul.f32 0.03125, %v791_v14 }
 0x848   :  { %v797_v16 = vadd.f32 1e-05, %v794_v15 }
 0x84a   :  { %1382 = vrsqrt.f32 %v797_v16 }
 0x84f   :  { %v1379_v19 = vpop.eup %1378 }
 0x850   :  { %v801_v17 = vmul.f32 %v1379_v19, %v777_v60 }
 0x852   :  { %v811_v23 = vmul.f32 %v1179_v20, %v801_v17 }
 0x853   :  { %v1381_v21 = vpop.eup %1380 }
 0x854   :  { %v802_v22 = vmul.f32 %v1381_v21, %v778_v42  ;;  %v1716_v28 = vadd.f32 %v1180_v24, %v811_v23 }
 0x856   :  { %v812_v25 = vmul.f32 %v1179_v20, %v802_v22 }
 0x857   :  { %v1383_v26 = vpop.eup %1382 }
 0x858   :  { %v803_v27 = vmul.f32 %v1383_v26, %v779_v2  ;;  %v1718_v29 = vadd.f32 %v1180_v24, %v812_v25 }
 0x85a   :  { %v824_v30 = vpack.c.bf16 %v1718_v29, %v1716_v28  ;;  %v813_v32 = vmul.f32 %v1179_v20, %v803_v27 }
 0x85c   :  { %1305 = vmatprep.mubr.msk.bf16.mxu0 %vm126_vm0, %v824_v30  ;;  %v1723_v18 = vadd.f32 %v1180_v24, %v813_v32 }
 0x85e   :  { %v825_v33 = vpack.c.bf16 %v1723_v18, %v1723_v18 }
 0x860   :  { %1306 = vmatmul.mubr.msk.bf16.vlgmr.msra.gmra.mxu0 %vm126_vm0, %v825_v33 }
 0x920   :  { %v1307_v38 = vpop.f32.mrf.mxu0 }
 0x921   :  { %v1743_v39 = vadd.f32 %v1307_v38, %v1181_v37 }
 0x922   :  { %v889_v43 = vpop.f32.mrf.mxu0 }
 0x923   :  { %v1746_v45 = vmul.f32 0.70710677, %v1743_v39  ;;  %v1748_v46 = vadd.f32 %v1181_v37, %v889_v43  ;;  %v1429_v43 = vmov -1.0  }
 0x924   :  { %v1308_v47 = vpop.f32.mrf.mxu0 }
 0x925   :  { %v917_v48 = vand.u32 2147483647, %v1746_v45  ;;  %v1752_v40 = vmul.f32 0.70710677, %v1748_v46  ;;  %vm911_vm7 = vcmp.ge.f32.partialorder %v1746_v45, 0.0 }
 0x926   :  { %v892_v49 = vpop.f32.mrf.mxu0  ;;  %v914_v47 = vsel %vm911_vm7, 1.0, %v1429_v43 }
 0x927   :  { %v920_v44 = vmul.f32 0.3275911, %v917_v48  ;;  %v915_v50 = vand.u32 2147483647, %v1752_v40  ;;  %v1755_v51 = vadd.f32 %v1181_v37, %v892_v49  ;;  %v959_v60 = vsub.f32 0.0, %v917_v48 }
 0x928   :  { %vm909_vm8 = vcmp.ge.f32.partialorder %v1752_v40, 0.0  ;;  %v905_v40 = vmul.f32 0.5, %v1743_v39 }
 0x929   :  { %v923_v41 = vadd.f32 1.0, %v920_v44  ;;  %v918_v54 = vmul.f32 0.3275911, %v915_v50  ;;  %v1758_v55 = vmul.f32 0.70710677, %v1755_v51  ;;  %v957_v4 = vsub.f32 0.0, %v915_v50 }
 0x92a   :  { %v962_v61 = vmul.f32 %v959_v60, %v917_v48 }
 0x92b   :  { %1384 = vrcp.f32 %v923_v41  ;;  %v921_v56 = vadd.f32 1.0, %v918_v54  ;;  %v916_v57 = vand.u32 2147483647, %v1758_v55  ;;  %v960_v42 = vmul.f32 %v957_v4, %v915_v50 }
 0x92c   :  { %v967_v5 = vmul.f32 1.442695, %v962_v61  ;;  %v912_v41 = vsel %vm909_vm8, 1.0, %v1429_v43  ;;  %vm910_vm9 = vcmp.ge.f32.partialorder %v1758_v55, 0.0  ;;  %v903_v4 = vmul.f32 0.5, %v1748_v46 }
 0x92d   :  { %1386 = vrcp.f32 %v921_v56  ;;  %v919_v58 = vmul.f32 0.3275911, %v916_v57  ;;  %v958_v63 = vsub.f32 0.0, %v916_v57  ;;  %v963_v3 = vmul.f32 1.442695, %v960_v42 }
 0x92e   :  { %v904_v61 = vmul.f32 0.5, %v1755_v51 }
 0x92f   :  { %v922_v59 = vadd.f32 1.0, %v919_v58  ;;  %v961_v53 = vmul.f32 %v958_v63, %v916_v57 }
 0x931   :  { %1388 = vrcp.f32 %v922_v59  ;;  %v965_v12 = vmul.f32 1.442695, %v961_v53  ;;  %v913_v59 = vsel %vm910_vm9, 1.0, %v1429_v43  ;;  %v1194_v43 = vld [vmem:[%s1815_s18] ss:$0 sm:$0xff] }
 0x932   :  { %1390 = vpow2.f32 %v967_v5 }
 0x933   :  { %1392 = vpow2.f32 %v963_v3 }
 0x934   :  { %1394 = vpow2.f32 %v965_v12 }
 0x938   :  { %v1385_v62 = vpop.eup %1384 }
 0x939   :  { %v932_v0 = vmul.f32 1.0614054, %v1385_v62 }
 0x93a   :  { %v1387_v1 = vpop.eup %1386 }
 0x93b   :  { %v935_v2 = vadd.f32 -1.4531521, %v932_v0  ;;  %v930_v6 = vmul.f32 1.0614054, %v1387_v1 }
 0x93d   :  { %v938_v7 = vmul.f32 %v1385_v62, %v935_v2  ;;  %v933_v52 = vadd.f32 -1.4531521, %v930_v6  ;;  %v1186_v2 = vld [vmem:[%s1813_s16] ss:$0 sm:$0xff] }
 0x93e   :  { %v1389_v8 = vpop.eup %1388 }
 0x93f   :  { %v941_v9 = vadd.f32 1.4214138, %v938_v7  ;;  %v936_v10 = vmul.f32 %v1387_v1, %v933_v52  ;;  %v931_v11 = vmul.f32 1.0614054, %v1389_v8  ;;  %v1391_v27 = vpop.eup %1390 }
 0x940   :  { %v1393_v34 = vpop.eup %1392 }
 0x941   :  { %v944_v13 = vmul.f32 %v1385_v62, %v941_v9  ;;  %v939_v14 = vadd.f32 1.4214138, %v936_v10  ;;  %v934_v15 = vadd.f32 -1.4531521, %v931_v11  ;;  %v1395_v44 = vpop.eup %1394 }
 0x943   :  { %v947_v16 = vadd.f32 -0.28449672, %v944_v13  ;;  %v942_v19 = vmul.f32 %v1387_v1, %v939_v14  ;;  %v937_v17 = vmul.f32 %v1389_v8, %v934_v15 }
 0x945   :  { %v950_v20 = vmul.f32 %v1385_v62, %v947_v16  ;;  %v945_v21 = vadd.f32 -0.28449672, %v942_v19  ;;  %v940_v22 = vadd.f32 1.4214138, %v937_v17 }
 0x947   :  { %v953_v23 = vadd.f32 0.2548296, %v950_v20  ;;  %v948_v24 = vmul.f32 %v1387_v1, %v945_v21  ;;  %v943_v25 = vmul.f32 %v1389_v8, %v940_v22 }
 0x949   :  { %v956_v26 = vmul.f32 %v1385_v62, %v953_v23  ;;  %v951_v30 = vadd.f32 0.2548296, %v948_v24  ;;  %v946_v32 = vadd.f32 -0.28449672, %v943_v25 }
 0x94b   :  { %v971_v33 = vmul.f32 %v1391_v27, %v956_v26  ;;  %v954_v35 = vmul.f32 %v1387_v1, %v951_v30  ;;  %v949_v31 = vmul.f32 %v1389_v8, %v946_v32 }
 0x94d   :  { %v974_v36 = vsub.f32 1.0, %v971_v33  ;;  %v969_v37 = vmul.f32 %v1393_v34, %v954_v35  ;;  %v952_v38 = vadd.f32 0.2548296, %v949_v31 }
 0x94f   :  { %v972_v48 = vsub.f32 1.0, %v969_v37  ;;  %v955_v49 = vmul.f32 %v1389_v8, %v952_v38  ;;  %v977_v50 = vmul.f32 %v974_v36, %v914_v47  ;;  %v1193_v37 = vld [vmem:[%s1814_s17] ss:$0 sm:$0xff] }
 0x951   :  { %v975_v54 = vmul.f32 %v972_v48, %v912_v41  ;;  %v970_v56 = vmul.f32 %v1395_v44, %v955_v49  ;;  %v980_v58 = vadd.f32 1.0, %v977_v50 }
 0x953   :  { %v973_v57 = vsub.f32 1.0, %v970_v56  ;;  %v978_v45 = vadd.f32 1.0, %v975_v54  ;;  %v983_v42 = vmul.f32 %v980_v58, %v905_v40 }
 0x955   :  { %v976_v60 = vmul.f32 %v973_v57, %v913_v59  ;;  %v981_v63 = vmul.f32 %v978_v45, %v903_v4  ;;  %v985_v1 = vpack.c.bf16 %v983_v42, %v983_v42 }
 0x957   :  { %v979_v62 = vadd.f32 1.0, %v976_v60 }
 0x959   :  { %v982_v0 = vmul.f32 %v979_v62, %v904_v61 }
 0x95b   :  { %v984_v5 = vpack.c.bf16 %v982_v0, %v981_v63 }
 0x95d   :  { %1317 = vmatprep.mubr.msk.bf16.mxu1 %vm1025_vm10, %v984_v5 }
 0x95e   :  { %1318 = vmatmul.mubr.msk.bf16.vlgmr.msra.gmra.mxu1 %vm1025_vm10, %v985_v1 }
 0xa1e   :  { %v1319_v55 = vpop.f32.mrf.mxu1 }
 0xa1f   :  { %v1075_v39 = vadd.f32 %v1319_v55, %v1186_v2 }
 0xa20   :  { %v1066_v6 = vpop.f32.mrf.mxu1 }
 0xa21   :  { %v1067_v3 = vadd.f32 %v1186_v2, %v1066_v6  ;;  %v1082_v8 = vadd.f32 %v1075_v39, %v1723_v18 }
 0xa22   :  { %v1320_v46 = vpop.f32.mrf.mxu1 }
 0xa23   :  { %v1080_v51 = vadd.f32 %v1067_v3, %v1716_v28  ;;  %v1089_v11 = vsel %vm126_vm0, %v1082_v8, 0.0 }
 0xa24   :  { %v1069_v53 = vpop.f32.mrf.mxu1 }
 0xa25   :  { %v1070_v7 = vadd.f32 %v1186_v2, %v1069_v53  ;;  %v1083_v52 = vsel %vm126_vm0, %v1080_v51, 0.0 }
 0xa26   :  { %1084 = vadd.xlane.f32.xlu0 %v1083_v52 }
 0xa27   :  { %v1081_v9 = vadd.f32 %v1070_v7, %v1718_v29 }
 0xa29   :  { %v1086_v10 = vsel %vm126_vm0, %v1081_v9, 0.0 }
 0xa2a   :  { %1087 = vadd.xlane.f32.xlu1 %v1086_v10  ;;  %1090 = vadd.xlane.f32.xlu0 %v1089_v11 }
 0xaaf   :  { %v1085_v12 = vpop.xlane.xlu0 %1084 }
 0xab0   :  { %v1092_v13 = vmul.f32 0.03125, %v1085_v12 }
 0xab2   :  { %v1095_v14 = vsub.f32 %v1080_v51, %v1092_v13 }
 0xab3   :  { %v1088_v15 = vpop.xlane.xlu1 %1087  ;;  %v1091_v28 = vpop.xlane.xlu0 %1090 }
 0xab4   :  { %v1093_v16 = vmul.f32 0.03125, %v1088_v15  ;;  %v1094_v19 = vmul.f32 0.03125, %v1091_v28  ;;  %v1098_v17 = vmul.f32 %v1095_v14, %v1095_v14 }
 0xab6   :  { %v1096_v20 = vsub.f32 %v1081_v9, %v1093_v16  ;;  %v1097_v21 = vsub.f32 %v1082_v8, %v1094_v19  ;;  %v1101_v18 = vsel %vm126_vm0, %v1098_v17, 0.0 }
 0xab7   :  { %1102 = vadd.xlane.f32.xlu1 %v1101_v18 }
 0xab8   :  { %v1099_v29 = vmul.f32 %v1096_v20, %v1096_v20  ;;  %v1100_v22 = vmul.f32 %v1097_v21, %v1097_v21 }
 0xaba   :  { %v1104_v23 = vsel %vm126_vm0, %v1099_v29, 0.0  ;;  %v1107_v24 = vsel %vm126_vm0, %v1100_v22, 0.0 }
 0xabb   :  { %1105 = vadd.xlane.f32.xlu0 %v1104_v23  ;;  %1108 = vadd.xlane.f32.xlu1 %v1107_v24 }
 0xb40   :  { %v1103_v25 = vpop.xlane.xlu1 %1102 }
 0xb41   :  { %v1110_v26 = vmul.f32 0.03125, %v1103_v25 }
 0xb43   :  { %v1113_v27 = vadd.f32 1e-05, %v1110_v26 }
 0xb44   :  { %v1109_v30 = vpop.xlane.xlu1 %1108  ;;  %v1106_v32 = vpop.xlane.xlu0 %1105 }
 0xb45   :  { %1396 = vrsqrt.f32 %v1113_v27  ;;  %v1112_v33 = vmul.f32 0.03125, %v1109_v30  ;;  %v1111_v35 = vmul.f32 0.03125, %v1106_v32 }
 0xb47   :  { %v1115_v31 = vadd.f32 1e-05, %v1112_v33  ;;  %v1114_v34 = vadd.f32 1e-05, %v1111_v35 }
 0xb49   :  { %1398 = vrsqrt.f32 %v1115_v31 }
 0xb4a   :  { %1400 = vrsqrt.f32 %v1114_v34 }
 0xb52   :  { %v1397_v36 = vpop.eup %1396 }
 0xb53   :  { %v1119_v38 = vmul.f32 %v1397_v36, %v1095_v14 }
 0xb55   :  { %v1129_v47 = vmul.f32 %v1193_v37, %v1119_v38 }
 0xb56   :  { %v1399_v48 = vpop.eup %1398 }
 0xb57   :  { %v1401_v49 = vpop.eup %1400  ;;  %v1139_v44 = vadd.f32 %v1194_v43, %v1129_v47  ;;  %v1121_v50 = vmul.f32 %v1399_v48, %v1097_v21 }
 0xb58   :  { %v1120_v41 = vmul.f32 %v1401_v49, %v1096_v20 }
 0xb59   :  { %1142 = vst.msk [vmem:[%s1816_s19] sm:$0xff] %vm126_vm0, %v1139_v44  ;;  %v1131_v54 = vmul.f32 %v1193_v37, %v1121_v50 }
 0xb5a   :  { %v1130_v56 = vmul.f32 %v1193_v37, %v1120_v41 }
 0xb5b   :  { %v1141_v57 = vadd.f32 %v1194_v43, %v1131_v54 }
 0xb5c   :  { %v1140_v58 = vadd.f32 %v1194_v43, %v1130_v56 }
 0xb5d   :  { %1144 = vst.msk [vmem:[%s1816_s19 + $0x10] sm:$0xff] %vm126_vm0, %v1141_v57 }
 0xb5e   :  { %1143 = vst.msk [vmem:[%s1816_s19 + $0x8] sm:$0xff] %vm126_vm0, %v1140_v58 }
 0xb5f   :  { %1149 = vsyncpa [#allocation3], 1 }

// kernel: decoder_layer_forward.4
= control target key start
LH: loop header
LB: loop body
LE: loop exit
PB: predicated region body
PF: predicated region fallthrough
CT: control target
= control target key end

     0   :  { %s2989_s6 = smov 1   ;;  %s2990_s10 = smov 2   ;;  %s3420_s0 = inlined_call_operand.smem [shape: u32[31], index: -1, kind: input, shape index: {}] }
   0x1   :  { %s3034_s5 = sld [smem:[%s3420_s0]]   ;;  %s2991_s14 = smov 3  }
   0x2   :  { %s3039_s9 = sld [smem:[%s3420_s0 + %s2989_s6]]   ;;  %s2992_s18 = smov 4  }
   0x3   :  { %s3044_s13 = sld [smem:[%s3420_s0 + %s2990_s10]]   ;;  %s2993_s22 = smov 5  }
   0x4   :  { %s3049_s17 = sld [smem:[%s3420_s0 + %s2991_s14]]   ;;  %s2994_s26 = smov 6  }
   0x5   :  { %s3054_s21 = sld [smem:[%s3420_s0 + %s2992_s18]]   ;;  %s2995_s30 = smov 7  }
   0x6   :  { %s3059_s25 = sld [smem:[%s3420_s0 + %s2993_s22]]   ;;  %s2996_s4 = smov 8  }
   0x7   :  { %s3064_s29 = sld [smem:[%s3420_s0 + %s2994_s26]]   ;;  %s2997_s10 = smov 9  }
   0x8   :  { %s3069_s3 = sld [smem:[%s3420_s0 + %s2995_s30]]   ;;  %s2998_s15 = smov 10  }
   0x9   :  { %s3074_s8 = sld [smem:[%s3420_s0 + %s2996_s4]]   ;;  %s2999_s20 = smov 11  }
   0xa   :  { %s3079_s14 = sld [smem:[%s3420_s0 + %s2997_s10]]   ;;  %s3000_s26 = smov 12  }
   0xb   :  { %s3084_s19 = sld [smem:[%s3420_s0 + %s2998_s15]]   ;;  %s3001_s1 = smov 13  }
   0xc   :  { %3425 = sst [smem:[#allocation2_spill]] %s3059_s25  ;;  %s3002_s7 = smov 14  }
   0xd   :  { %s3089_s24 = sld [smem:[%s3420_s0 + %s2999_s20]]   ;;  %s3003_s15 = smov 15  }
   0xe   :  { %s3094_s30 = sld [smem:[%s3420_s0 + %s3000_s26]]   ;;  %s3004_s22 = smov 16  }
   0xf   :  { %s3099_s6 = sld [smem:[%s3420_s0 + %s3001_s1]]   ;;  %s3005_s28 = smov 17  }
  0x10   :  { %s3104_s12 = sld [smem:[%s3420_s0 + %s3002_s7]]   ;;  %s3006_s7 = smov 18  }
  0x11   :  { %s3109_s20 = sld [smem:[%s3420_s0 + %s3003_s15]]   ;;  %s3007_s15 = smov 19  }
  0x12   :  { %s3114_s27 = sld [smem:[%s3420_s0 + %s3004_s22]]   ;;  %s3008_s22 = smov 20  }
  0x13   :  { %s3119_s4 = sld [smem:[%s3420_s0 + %s3005_s28]]   ;;  %s3009_s28 = smov 21  }
  0x14   :  { %s3124_s25 = sld [smem:[%s3420_s0 + %s3006_s7]]   ;;  %s3010_s7 = smov 22  }
  0x15   :  { %3426 = sst [smem:[#allocation3_spill]] %s3099_s6 }
  0x16   :  { %s3134_s6 = sld [smem:[%s3420_s0 + %s3008_s22]]   ;;  %s3012_s22 = smov 24  }
  0x17   :  { %3427 = sst [smem:[#allocation4_spill]] %s3109_s20 }
  0x18   :  { %s3129_s20 = sld [smem:[%s3420_s0 + %s3007_s15]]   ;;  %s3011_s15 = smov 23  }
  0x19   :  { %3428 = sst [smem:[#allocation5_spill]] %s3119_s4 }
  0x1a   :  { %3429 = sst [smem:[#allocation6_spill]] %s3124_s25 }
  0x1b   :  { %s3139_s4 = sld [smem:[%s3420_s0 + %s3009_s28]]   ;;  %s3013_s28 = smov 25  }
  0x1c   :  { %3431 = sst [smem:[#allocation8_spill]] %s3134_s6 }
  0x1d   :  { %s3144_s25 = sld [smem:[%s3420_s0 + %s3010_s7]]   ;;  %s3014_s7 = smov 26  }
  0x1e   :  { %3430 = sst [smem:[#allocation7_spill]] %s3129_s20 }
  0x1f   :  { %s3149_s20 = sld [smem:[%s3420_s0 + %s3011_s15]]   ;;  %s3015_s15 = smov 27  }
  0x20   :  { %s3154_s6 = sld [smem:[%s3420_s0 + %s3012_s22]]   ;;  %s3016_s22 = smov 28  }
  0x21   :  { %3432 = sst [smem:[#allocation9_spill]] %s3139_s4 }
  0x22   :  { %s3159_s4 = sld [smem:[%s3420_s0 + %s3013_s28]]   ;;  %s3017_s28 = smov 29  }
  0x23   :  { %3433 = sst [smem:[#allocation10_spill]] %s3144_s25 }
  0x24   :  { %s3164_s25 = sld [smem:[%s3420_s0 + %s3014_s7]]   ;;  %s3018_s7 = smov 30  }
  0x25   :  { %3434 = sst [smem:[#allocation11_spill]] %s3149_s20 }
  0x26   :  { %3435 = sst [smem:[#allocation12_spill]] %s3154_s6 }
  0x27   :  { %s3169_s20 = sld [smem:[%s3420_s0 + %s3015_s15]]   ;;  %s3186_s15 = smov 0  }
  0x28   :  { %3436 = sst [smem:[#allocation13_spill]] %s3159_s4 }
  0x29   :  { %s3174_s6 = sld [smem:[%s3420_s0 + %s3016_s22]]  }
  0x2a   :  { %3437 = sst [smem:[#allocation14_spill]] %s3164_s25 }
  0x2b   :  { %s3179_s4 = sld [smem:[%s3420_s0 + %s3017_s28]]  }
  0x2c   :  { %s3184_s25 = sld [smem:[%s3420_s0 + %s3018_s7]]  }
  0x2d LB: > { %s2565_s16 = sadd.s32 4294967295, %s2987_s15   ;;  %p2569_p0 = scmp.ge.s32.totalorder %s2987_s15, 1  ;;  %s2987_s15 = sphi %s3186_s15, %s71_s15  }
  0x2e   : > { %p843_p1 = scmp.lt.s32.totalorder %s2987_s15, 3 }
  0x30   : > { %p844_p2 = pnand %p2569_p0, %p843_p1 }
  0x31   : > { %p921_p3 = scmp.lt.s32.totalorder (!%p844_p2), %s2565_s16, 1  ;;  %s3022_s22 = smov (!%p844_p2), 112  }
  0x32   : > { %847 = sbr.rel (%p844_p2) target bundleno = 4284 (0x10bc), region = 140  ;;  %s3024_s23 = smov (!%p844_p2), 16  }
  0x33   : > { %s3438_s26 = sld [smem:[#allocation6_spill]] (!%p844_p2) }
  0x34   : > { %s3439_s28 = sld [smem:[#allocation3_spill]] (!%p844_p2) }
  0x35   : > { %s3440_s1 = sld [smem:[#allocation4_spill]] (!%p844_p2) }
  0x36   : > { %s3441_s2 = sld [smem:[#allocation5_spill]] (!%p844_p2) }
  0x37   : > { %v2903_v0 = vld [vmem:[%s3064_s29 + $0x8] sm:$0xff]   ;;  %v3019_v1 = vmov 0.0   ;;  %v2905_v3 = vld [vmem:[%s3064_s29] sm:$0xff]   ;;  %vm3020_vm0 = vmmov 0   ;;  %v936_v7 = vld [vmem:[%s3039_s9 + $0x10] sm:$0xf] }
  0x38   : > { %2710 = vmatprep.subr.bf16.mxu1 %v3019_v1  ;;  %v2904_v2 = vld [vmem:[%s3074_s8 + $0x8] sm:$0xff]   ;;  %2702 = vmatprep.subr.bf16.mxu0 %v2903_v0  ;;  %v2906_v4 = vld [vmem:[%s3074_s8] sm:$0xff]   ;;  %vm986_vm1 = vcmask 261120   ;;  %s3452_s16 = smov (!%p921_p3, %s2565_s16), 1  ;;  %v961_v9 = vpack.c.bf16 %v936_v7, %v936_v7  ;;  %v3021_v13 = vmov 0   ;;  %vm1175_vm2 = vcmask 130048  }
  0x39   : > { %2714 = vmatprep.mubr.msk.bf16.mxu1 %vm3020_vm0, %v3019_v1  ;;  %2711 = vmatpush3.bf16.msra.mxu1 %v2904_v2  ;;  %v934_v5 = vld [vmem:[%s3039_s9] sm:$0xff]  ;;  %v935_v6 = vld [vmem:[%s3039_s9 + $0x8] sm:$0xff]  ;;  %s2640_s0 = sshll.u32 %s3452_s16, 4  ;;  %v939_v33 = vld [vmem:[%s3044_s13 + $0x10] sm:$0xf]  ;;  %vm1239_vm5 = vcmask 97280  }
  0x3a   : > { %2703 = vmatpush3.bf16.msra.mxu0 %v2903_v0  ;;  %2712 = vmatprep.subr.bf16.mxu1 %v3019_v1  ;;  %v960_v8 = vpack.c.bf16 %v935_v6, %v934_v5  ;;  %s925_s18 = scalar_lea.vmem %s3034_s5, %s2640_s0  ;;  %v2575_v14 = vld [vmem:[%s3069_s3] ss:$0 sm:$0xff]  ;;  %v938_v35 = vld [vmem:[%s3044_s13 + $0x8] sm:$0xff]  ;;  %v3023_v46 = vmov -1e+30   ;;  %vm1246_vm7 = vcmask 93184  }
  0x3b   : > { %2704 = vmatprep.subr.bf16.mxu0 %v2905_v3  ;;  %v3213_v10 = vld [vmem:[%s925_s18] sm:$0xff]  ;;  %v3215_v11 = vld [vmem:[%s925_s18 + $0x8] sm:$0xf]  ;;  %2891 = vset.pattern.permute.xlu1 %v3021_v13  ;;  %vm1283_vm8 = vcmask 1045504   ;;  %s3442_s7 = sld [smem:[#allocation7_spill]]  ;;  %vm1914_vm9 = vcmask 1041408  }
  0x3c   : > { %2706 = vmatprep.mubr.msk.bf16.mxu0 %vm986_vm1, %v960_v8  ;;  %v3219_v12 = vpack.c.bf16 %v3215_v11, %v3213_v10  ;;  %2892 = vset.pattern.permute.xlu0 %v3021_v13  ;;  %v2580_v20 = vld [vmem:[%s3079_s14] ss:$0 sm:$0xff]  ;;  %v2907_v36 = vld [vmem:[%s3084_s19 + $0x8] sm:$0xff]   ;;  %s3443_s10 = sld [smem:[#allocation2_spill]]  ;;  %vm1884_vm11 = vcmask 162816   ;;  %vm1888_vm13 = vcmask 158720  }
  0x3d   : > { %2713 = vmatpush3.bf16.msra.mxu1 %v2906_v4  ;;  %v937_v25 = vld [vmem:[%s3044_s13] sm:$0xff]  ;;  %s3444_s11 = sld [smem:[#allocation8_spill]]  ;;  %vm2182_vm14 = vcmask 257024  }
  0x3e   : > { %2705 = vmatpush3.bf16.msra.mxu0 %v2905_v3  ;;  %v2908_v37 = vld [vmem:[%s3084_s19] sm:$0xff]   ;;  %s3445_s18 = sld [smem:[#allocation9_spill]] }
  0x3f   : > { %2718 = vmatprep.subr.bf16.mxu0 %v3019_v1  ;;  %v2574_v43 = vld [vmem:[%s3049_s17] ss:$0 sm:$0xff] }
  0x40   : > { %2715 = vmatmul.mubr.msk.bf16.vlgmr.msra.gmra.mxu1 %vm986_vm1, %v3219_v12 }
  0x41   : > { %2707 = vmatmul.mubr.msk.bf16.vlgmr.msra.gmra.mxu0 %vm986_vm1, %v961_v9 }
  0x42   : > { %2722 = vmatprep.mubr.msk.bf16.mxu0 %vm3020_vm0, %v3019_v1  ;;  %2719 = vmatpush3.bf16.msra.mxu0 %v2907_v36 }
  0x43   : > { %2720 = vmatprep.subr.bf16.mxu0 %v3019_v1 }
  0x46   : > { %2721 = vmatpush3.bf16.msra.mxu0 %v2908_v37 }
  0x49   : > { %2723 = vmatmul.mubr.msk.bf16.vlgmr.msra.gmra.mxu0 %vm986_vm1, %v3219_v12 }
 0x100   : > { %v1101_v17 = vpop.f32.mrf.mxu1 }
 0x101   : > { %v2708_v15 = vpop.f32.mrf.mxu0  ;;  %v1102_v26 = vadd.f32 %v2580_v20, %v1101_v17 }
 0x102   : > { %v1036_v16 = vadd.f32 %v2708_v15, %v2575_v14  ;;  %v2716_v21 = vpop.f32.mrf.mxu1 }
 0x103   : > { %v1027_v18 = vpop.f32.mrf.mxu0 }
 0x104   : > { %v1173_v19 = vpack.c.bf16 %v1036_v16, %v1036_v16  ;;  %v1104_v23 = vpop.f32.mrf.mxu1  ;;  %v1028_v27 = vadd.f32 %v2575_v14, %v1027_v18 }
 0x105   : > { %v2709_v22 = vpop.f32.mrf.mxu0  ;;  %v1105_v28 = vadd.f32 %v2580_v20, %v1104_v23 }
 0x106   : > { %1339 = vrot.lane.b32.xlu1 %v1173_v19, %s3022_s22  ;;  %v2717_v30 = vpop.f32.mrf.mxu1 }
 0x107   : > { %v1030_v24 = vpop.f32.mrf.mxu0  ;;  %v1174_v31 = vpack.c.bf16 %v1105_v28, %v1102_v26 }
 0x108   : > { %v1031_v29 = vadd.f32 %v2575_v14, %v1030_v24 }
 0x109   : > { %1342 = vrot.lane.b32.xlu0 %v1174_v31, %s3022_s22  ;;  %2842 = vmatprep.subr.msk.bf16.mxu1 %vm1175_vm2, %v1174_v31  ;;  %v1183_v34 = vsel %vm1175_vm2, %v1174_v31, 0 }
 0x10a   : > { %v1172_v32 = vpack.c.bf16 %v1031_v29, %v1028_v27  ;;  %942 = vperm.xlu1 %2891, %v937_v25   ;;  %2727 = vmatpush3.bf16.xpose.msra.mxu1 %v1183_v34  ;;  %v1165_v25 = vpop.f32.mrf.mxu0 }
 0x10c   : > { %2728 = vmatprep.mubr.msk.bf16.mxu1 %vm1175_vm2, %v1172_v32  ;;  %v2724_v26 = vpop.f32.mrf.mxu0 }
 0x10d   : > { %1337 = vrot.lane.b32.xlu0 %v1172_v32, %s3022_s22 }
 0x10e   : > { %948 = vperm.xlu1 %2891, %v939_v33   ;;  %v1168_v27 = vpop.f32.mrf.mxu0 }
 0x110   : > { %v2725_v29 = vpop.f32.mrf.mxu0 }
 0x111   : > { %2729 = vmatmul.mubr.msk.bf16.vlgmr.msra.gmra.mxu1 %vm1175_vm2, %v1173_v19  ;;  %945 = vperm.xlu0 %2892, %v938_v35   ;;  %v2584_v35 = vld [vmem:[%s3089_s24] ss:$0 sm:$0xff] }
 0x112   : > { %v1166_v36 = vadd.f32 %v2584_v35, %v1165_v25  ;;  %v1169_v37 = vadd.f32 %v2584_v35, %v1168_v27  ;;  %v2910_v25 = vld [vmem:[%s3094_s30] sm:$0xff]  }
 0x178   : > { %v1340_v41 = vpop.permute.xlu1 %1339 }
 0x17b   : > { %v1343_v38 = vpop.permute.xlu0 %1342 }
 0x17c   : > { %v1351_v39 = vsel %vm1175_vm2, %v1343_v38, 0  ;;  %2844 = vmatprep.subr.msk.bf16.mxu1 %vm1175_vm2, %v1343_v38  ;;  %v1276_v38 = vpack.c.bf16 %v1169_v37, %v1166_v36 }
 0x17d   : > { %2739 = vmatpush3.bf16.xpose.msra.mxu1 %v1351_v39 }
 0x17e   : > { %2843 = vmatprep.subr.msk.bf16.mxu0 %vm1283_vm8, %v1276_v38  ;;  %v1285_v39 = vsel %vm1283_vm8, %v1276_v38, 0 }
 0x17f   : > { %v1338_v40 = vpop.permute.xlu0 %1337  ;;  %2733 = vmatpush3.bf16.msra.mxu0 %v1285_v39 }
 0x180   : > { %2740 = vmatprep.mubr.msk.bf16.mxu1 %vm1175_vm2, %v1338_v40 }
 0x184   : > { %2741 = vmatmul.mubr.msk.bf16.vlgmr.msra.gmra.mxu1 %vm1175_vm2, %v1340_v41 }
 0x185   : > { %v943_v42 = vpop.permute.xlu1 %942 }
 0x186   : > { %vm954_vm3 = vcmp.eq.s32.totalorder %v943_v42, %v2574_v43 }
 0x187   : > { %v957_v47 = vsel %vm954_vm3, 0.0, %v3023_v46 }
 0x189   : > { %v949_v48 = vpop.permute.xlu1 %948 }
 0x18a   : > { %vm956_vm6 = vcmp.eq.s32.totalorder %v949_v48, %v2574_v43 }
 0x18b   : > { %v959_v58 = vsel %vm956_vm6, 0.0, %v3023_v46 }
 0x18c   : > { %v946_v45 = vpop.permute.xlu0 %945 }
 0x18d   : > { %vm955_vm4 = vcmp.eq.s32.totalorder %v946_v45, %v2574_v43 }
 0x18e   : > { %v958_v53 = vsel %vm955_vm4, 0.0, %v3023_v46 }
 0x1d1   : > { %v2730_v44 = vpop.f32.mrf.mxu1 }
 0x1d2   : > { %v1235_v55 = vmul.f32 0.25, %v2730_v44 }
 0x1d3   : > { %v1219_v49 = vpop.f32.mrf.mxu1 }
 0x1d4   : > { %v1233_v50 = vmul.f32 0.25, %v1219_v49  ;;  %v1238_v61 = vadd.f32 %v1235_v55, %v959_v58 }
 0x1d5   : > { %v2731_v51 = vpop.f32.mrf.mxu1 }
 0x1d6   : > { %v1236_v52 = vadd.f32 %v1233_v50, %v957_v47  ;;  %v1247_v62 = vsel %vm1246_vm7, %v1238_v61, -inf }
 0x1d7   : > { %v1222_v54 = vpop.f32.mrf.mxu1 }
 0x1d8   : > { %v1234_v56 = vmul.f32 0.25, %v1222_v54  ;;  %v1240_v57 = vsel %vm1239_vm5, %v1236_v52, -inf }
 0x1d9   : > { %1241 = vmax.xlane.f32.xlu1 %v1240_v57 }
 0x1da   : > { %v1237_v59 = vadd.f32 %v1234_v56, %v958_v53 }
 0x1dc   : > { %v1243_v60 = vsel %vm1239_vm5, %v1237_v59, -inf }
 0x1dd   : > { %1244 = vmax.xlane.f32.xlu0 %v1243_v60 }
 0x1e1   : > { %1248 = vmax.xlane.f32.xlu0 %v1247_v62 }
 0x244   : > { %v2742_v63 = vpop.f32.mrf.mxu1 }
 0x245   : > { %v1403_v2 = vmul.f32 0.25, %v2742_v63 }
 0x246   : > { %v1387_v0 = vpop.f32.mrf.mxu1 }
 0x247   : > { %v1401_v3 = vmul.f32 0.25, %v1387_v0  ;;  %v1406_v9 = vadd.f32 %v1403_v2, %v959_v58  ;;  %v1596_v58 = vld [vmem:[%s3054_s21] sm:$0xff] }
 0x248   : > { %v2743_v4 = vpop.f32.mrf.mxu1 }
 0x249   : > { %v1404_v5 = vadd.f32 %v1401_v3, %v957_v47  ;;  %v1413_v14 = vsel %vm1246_vm7, %v1406_v9, -inf }
 0x24a   : > { %v1390_v6 = vpop.f32.mrf.mxu1 }
 0x24b   : > { %v1402_v7 = vmul.f32 0.25, %v1390_v6  ;;  %v1407_v8 = vsel %vm1239_vm5, %v1404_v5, -inf }
 0x24c   : > { %1408 = vmax.xlane.f32.xlu1 %v1407_v8 }
 0x24d   : > { %v1405_v13 = vadd.f32 %v1402_v7, %v958_v53 }
 0x24f   : > { %v1410_v15 = vsel %vm1239_vm5, %v1405_v13, -inf }
 0x250   : > { %1414 = vmax.xlane.f32.xlu1 %v1413_v14  ;;  %1411 = vmax.xlane.f32.xlu0 %v1410_v15 }
 0x262   : > { %v1242_v16 = vpop.xlane.xlu1 %1241 }
 0x263   : > { %v1250_v17 = vsub.f32 %v1236_v52, %v1242_v16 }
 0x265   : > { %v1253_v18 = vmul.f32 1.442695, %v1250_v17 }
 0x266   : > { %v1245_v19 = vpop.xlane.xlu0 %1244 }
 0x267   : > { %2925 = vpow2.f32 %v1253_v18  ;;  %v1251_v20 = vsub.f32 %v1237_v59, %v1245_v19 }
 0x269   : > { %v1255_v21 = vmul.f32 1.442695, %v1251_v20 }
 0x26a   : > { %v1249_v22 = vpop.xlane.xlu0 %1248 }
 0x26b   : > { %2927 = vpow2.f32 %v1255_v21  ;;  %v1252_v23 = vsub.f32 %v1238_v61, %v1249_v22 }
 0x26d   : > { %v1257_v24 = vmul.f32 1.442695, %v1252_v23  ;;  %v2909_v23 = vld [vmem:[%s3094_s30 + $0x8] sm:$0xff]  }
 0x26e   : > { %2750 = vmatprep.subr.bf16.mxu1 %v2909_v23 }
 0x26f   : > { %2929 = vpow2.f32 %v1257_v24  ;;  %2751 = vmatpush3.bf16.msra.mxu1 %v2909_v23 }
 0x270   : > { %2752 = vmatprep.subr.bf16.mxu1 %v2910_v25 }
 0x273   : > { %2753 = vmatpush3.bf16.msra.mxu1 %v2910_v25 }
 0x274   : > { %v2926_v28 = vpop.eup %2925 }
 0x275   : > { %v1259_v30 = vsel %vm1239_vm5, %v2926_v28, 0.0 }
 0x276   : > { %1260 = vadd.xlane.f32.xlu0 %v1259_v30 }
 0x278   : > { %v2928_v31 = vpop.eup %2927 }
 0x279   : > { %v1262_v32 = vsel %vm1239_vm5, %v2928_v31, 0.0 }
 0x27a   : > { %1263 = vadd.xlane.f32.xlu1 %v1262_v32  ;;  %v1597_v32 = vld [vmem:[%s3054_s21 + $0x8] sm:$0xf] }
 0x27c   : > { %v2930_v33 = vpop.eup %2929 }
 0x27d   : > { %v1265_v34 = vsel %vm1246_vm7, %v2930_v33, 0.0 }
 0x27e   : > { %1266 = vadd.xlane.f32.xlu0 %v1265_v34 }
 0x2d5   : > { %v1409_v40 = vpop.xlane.xlu1 %1408 }
 0x2d6   : > { %v1416_v41 = vsub.f32 %v1404_v5, %v1409_v40 }
 0x2d8   : > { %v1419_v42 = vmul.f32 1.442695, %v1416_v41 }
 0x2d9   : > { %v1415_v43 = vpop.xlane.xlu1 %1414  ;;  %v1412_v44 = vpop.xlane.xlu0 %1411 }
 0x2da   : > { %2931 = vpow2.f32 %v1419_v42  ;;  %v1418_v45 = vsub.f32 %v1406_v9, %v1415_v43  ;;  %v1417_v47 = vsub.f32 %v1405_v13, %v1412_v44  ;;  %v2912_v43 = vld [vmem:[%s3104_s12] sm:$0xff]   ;;  %v2913_v44 = vld [vmem:[%s3114_s27 + $0x8] sm:$0xff]  }
 0x2db   : > { %2766 = vmatprep.subr.bf16.mxu1 %v2913_v44 }
 0x2dc   : > { %v1423_v48 = vmul.f32 1.442695, %v1418_v45  ;;  %v1421_v49 = vmul.f32 1.442695, %v1417_v47  ;;  %v2914_v45 = vld [vmem:[%s3438_s26 + $0x8] sm:$0xff]   ;;  %v2915_v47 = vld [vmem:[%s3114_s27] sm:$0xff]  }
 0x2de   : > { %2933 = vpow2.f32 %v1423_v48  ;;  %v2916_v48 = vld [vmem:[%s3438_s26] sm:$0xff]  }
 0x2df   : > { %2935 = vpow2.f32 %v1421_v49 }
 0x2e7   : > { %v2932_v50 = vpop.eup %2931 }
 0x2e8   : > { %v1425_v51 = vsel %vm1239_vm5, %v2932_v50, 0.0 }
 0x2e9   : > { %1426 = vadd.xlane.f32.xlu1 %v1425_v51  ;;  %v2596_v51 = vld [vmem:[%s3439_s28] ss:$0 sm:$0xff]  ;;  %s3448_s28 = sld [smem:[#allocation11_spill]] }
 0x2eb   : > { %v2934_v52 = vpop.eup %2933 }
 0x2ec   : > { %v2936_v53 = vpop.eup %2935  ;;  %v1431_v54 = vsel %vm1246_vm7, %v2934_v52, 0.0 }
 0x2ed   : > { %1432 = vadd.xlane.f32.xlu1 %v1431_v54  ;;  %v1428_v55 = vsel %vm1239_vm5, %v2936_v53, 0.0 }
 0x2ee   : > { %1429 = vadd.xlane.f32.xlu0 %v1428_v55 }
 0x2ff   : > { %v1261_v56 = vpop.xlane.xlu0 %1260 }
 0x300   : > { %2937 = vrcp.f32 %v1261_v56 }
 0x303   : > { %v1264_v57 = vpop.xlane.xlu1 %1263 }
 0x304   : > { %2939 = vrcp.f32 %v1264_v57  ;;  %1443 = vrot.lane.b32.xlu0 %v1276_v38, %s3022_s22 }
 0x307   : > { %v1267_v59 = vpop.xlane.xlu0 %1266 }
 0x308   : > { %1600 = vperm.xlu0 %2892, %v1596_v58   ;;  %2941 = vrcp.f32 %v1267_v59  ;;  %v2602_v58 = vld [vmem:[%s3440_s1] ss:$0 sm:$0xff]  ;;  %s3449_s1 = sld [smem:[#allocation14_spill]] }
 0x30d   : > { %v2938_v60 = vpop.eup %2937 }
 0x30e   : > { %v1271_v62 = vmul.f32 %v2938_v60, %v2926_v28 }
 0x311   : > { %v2940_v61 = vpop.eup %2939 }
 0x312   : > { %v1272_v63 = vmul.f32 %v2940_v61, %v2928_v31 }
 0x314   : > { %v1274_v0 = vpack.c.bf16 %v1272_v63, %v1271_v62 }
 0x315   : > { %v2942_v2 = vpop.eup %2941 }
 0x316   : > { %2734 = vmatprep.mubr.msk.bf16.mxu0 %vm1239_vm5, %v1274_v0  ;;  %v1273_v3 = vmul.f32 %v2942_v2, %v2930_v33  ;;  %v2911_v33 = vld [vmem:[%s3104_s12 + $0x8] sm:$0xff]  }
 0x318   : > { %v1275_v4 = vpack.c.bf16 %v1273_v3, %v1273_v3  ;;  %v2606_v3 = vld [vmem:[%s3441_s2] ss:$0 sm:$0xff]  ;;  %s3450_s2 = sld [smem:[#allocation13_spill]] }
 0x31a   : > { %2735 = vmatmul.mubr.msk.bf16.vlgmr.msra.gmra.mxu0 %vm1239_vm5, %v1275_v4  ;;  %v2611_v4 = vld [vmem:[%s3442_s7] ss:$0 sm:$0xff]  ;;  %s930_s7 = scalar_lea.vmem %s3184_s25, %s2640_s0 }
 0x372   : > { %v1427_v5 = vpop.xlane.xlu1 %1426 }
 0x373   : > { %2943 = vrcp.f32 %v1427_v5 }
 0x376   : > { %v1433_v6 = vpop.xlane.xlu1 %1432 }
 0x377   : > { %2945 = vrcp.f32 %v1433_v6  ;;  %v1430_v7 = vpop.xlane.xlu0 %1429 }
 0x378   : > { %2947 = vrcp.f32 %v1430_v7 }
 0x37b   : > { %v1444_v8 = vpop.permute.xlu0 %1443 }
 0x37c   : > { %v1452_v9 = vsel %vm1283_vm8, %v1444_v8, 0  ;;  %2845 = vmatprep.subr.msk.bf16.mxu0 %vm1283_vm8, %v1444_v8 }
 0x37d   : > { %2745 = vmatpush3.bf16.msra.mxu0 %v1452_v9 }
 0x37e   : > { %2758 = vmatprep.subr.bf16.mxu0 %v3019_v1 }
 0x380   : > { %v2944_v13 = vpop.eup %2943 }
 0x381   : > { %v1437_v17 = vmul.f32 %v2944_v13, %v2932_v50 }
 0x384   : > { %v2946_v14 = vpop.eup %2945 }
 0x385   : > { %v2948_v15 = vpop.eup %2947  ;;  %v1439_v16 = vmul.f32 %v2946_v14, %v2934_v52 }
 0x386   : > { %v1438_v18 = vmul.f32 %v2948_v15, %v2936_v53 }
 0x387   : > { %v1441_v19 = vpack.c.bf16 %v1439_v16, %v1439_v16 }
 0x388   : > { %v1440_v20 = vpack.c.bf16 %v1438_v18, %v1437_v17 }
 0x38a   : > { %2746 = vmatprep.mubr.msk.bf16.mxu0 %vm1239_vm5, %v1440_v20 }
 0x38b   : > { %2747 = vmatmul.mubr.msk.bf16.vlgmr.msra.gmra.mxu0 %vm1239_vm5, %v1441_v19 }
 0x38c   : > { %2762 = vmatprep.mubr.msk.bf16.mxu0 %vm3020_vm0, %v3019_v1  ;;  %2759 = vmatpush3.bf16.msra.mxu0 %v2911_v33 }
 0x38d   : > { %2760 = vmatprep.subr.bf16.mxu0 %v3019_v1 }
 0x390   : > { %2761 = vmatpush3.bf16.msra.mxu0 %v2912_v43 }
 0x391   : > { %2774 = vmatprep.subr.bf16.mxu0 %v2914_v45 }
 0x393   : > { %2763 = vmatmul.mubr.msk.bf16.vlgmr.msra.gmra.mxu0 %vm986_vm1, %v3219_v12 }
 0x394   : > { %2775 = vmatpush3.bf16.msra.mxu0 %v2914_v45 }
 0x395   : > { %2776 = vmatprep.subr.bf16.mxu0 %v2916_v48 }
 0x398   : > { %2777 = vmatpush3.bf16.msra.mxu0 %v2916_v48 }
 0x399   : > { %2790 = vmatprep.subr.bf16.mxu0 %v3019_v1 }
 0x3da   : > { %v2736_v21 = vpop.f32.mrf.mxu0 }
 0x3dc   : > { %v1321_v22 = vpop.f32.mrf.mxu0 }
 0x3de   : > { %v2737_v24 = vpop.f32.mrf.mxu0 }
 0x3e0   : > { %v1324_v26 = vpop.f32.mrf.mxu0 }
 0x44b   : > { %v2748_v27 = vpop.f32.mrf.mxu0 }
 0x44d   : > { %v1488_v28 = vpop.f32.mrf.mxu0 }
 0x44f   : > { %v2749_v29 = vpop.f32.mrf.mxu0 }
 0x450   : > { %v2601_v29 = vld [vmem:[%s3443_s10] ss:$0 sm:$0xff] }
 0x451   : > { %v1491_v30 = vpop.f32.mrf.mxu0 }
 0x452   : > { %v2893_v31 = vpack.i.bf16 %v1491_v30, %v1488_v28  ;;  %v1601_v30 = vpop.permute.xlu0 %1600 }
 0x453   : > { %v1672_v59 = vpop.f32.mrf.mxu0  ;;  %vm1609_vm10 = vcmp.eq.s32.totalorder %v1601_v30, %v2601_v29 }
 0x454   : > { %2894 = vrot.lane.b32.xlu1 %v2893_v31, %s3024_s23  ;;  %v1673_v61 = vadd.f32 %v2602_v58, %v1672_v59 }
 0x455   : > { %v2764_v60 = vpop.f32.mrf.mxu0 }
 0x457   : > { %v1675_v62 = vpop.f32.mrf.mxu0 }
 0x458   : > { %1509 = vrot.lane.b32.xlu1 %v2748_v27, %s3024_s23  ;;  %v1676_v63 = vadd.f32 %v2602_v58, %v1675_v62 }
 0x459   : > { %v2765_v0 = vpop.f32.mrf.mxu0 }
 0x45a   : > { %v1827_v2 = vpack.c.bf16 %v1676_v63, %v1673_v61 }
 0x45c   : > { %1603 = vperm.xlu1 %2891, %v1597_v32  }
 0x4c6   : > { %v2895_v34 = vpop.permute.xlu1 %2894 }
 0x4c7   : > { %v2897_v35 = vunpack.i.h.bf16 %v2895_v34  ;;  %v2896_v36 = vunpack.i.l.bf16 %v2895_v34  ;;  %v1611_v34 = vsel %vm1609_vm10, 0.0, %v3023_v46 }
 0x4c9   : > { %v1515_v37 = vsel %vm1175_vm2, %v1324_v26, %v2897_v35  ;;  %v1514_v38 = vsel %vm1175_vm2, %v1321_v22, %v2896_v36 }
 0x4ca   : > { %v1517_v39 = vpack.c.bf16 %v1515_v37, %v1514_v38  ;;  %v1510_v40 = vpop.permute.xlu1 %1509 }
 0x4cb   : > { %v1516_v41 = vsel %vm1175_vm2, %v2736_v21, %v1510_v40 }
 0x4cc   : > { %v1518_v42 = vpack.c.bf16 %v1516_v41, %v1516_v41  ;;  %2754 = vmatprep.mubr.msk.bf16.mxu1 %vm986_vm1, %v1517_v39 }
 0x4ce   : > { %2755 = vmatmul.mubr.msk.bf16.vlgmr.msra.gmra.mxu1 %vm986_vm1, %v1518_v42 }
 0x4cf   : > { %2767 = vmatpush3.bf16.msra.mxu1 %v2913_v44 }
 0x4d0   : > { %2768 = vmatprep.subr.bf16.mxu1 %v2915_v47 }
 0x4d3   : > { %2769 = vmatpush3.bf16.msra.mxu1 %v2915_v47 }
 0x4d4   : > { %2782 = vmatprep.subr.bf16.mxu1 %v3019_v1 }
 0x4d7   : > { %v1604_v31 = vpop.permute.xlu1 %1603 }
 0x4d8   : > { %vm1610_vm12 = vcmp.eq.s32.totalorder %v1604_v31, %v2601_v29 }
 0x4d9   : > { %v1612_v40 = vsel %vm1610_vm12, 0.0, %v3023_v46 }
 0x58e   : > { %v2756_v49 = vpop.f32.mrf.mxu1 }
 0x58f   : > { %v1591_v12 = vadd.f32 %v2756_v49, %v2596_v51 }
 0x590   : > { %v1582_v50 = vpop.f32.mrf.mxu1 }
 0x591   : > { %v1583_v54 = vadd.f32 %v2596_v51, %v1582_v50  ;;  %v1614_v57 = vpack.c.bf16 %v1591_v12, %v1591_v12 }
 0x592   : > { %v2757_v52 = vpop.f32.mrf.mxu1 }
 0x594   : > { %v1585_v53 = vpop.f32.mrf.mxu1 }
 0x595   : > { %v1586_v55 = vadd.f32 %v2596_v51, %v1585_v53 }
 0x597   : > { %v1613_v56 = vpack.c.bf16 %v1586_v55, %v1583_v54 }
 0x599   : > { %2770 = vmatprep.mubr.msk.bf16.mxu1 %vm986_vm1, %v1613_v56  ;;  %2778 = vmatprep.mubr.msk.bf16.mxu0 %vm986_vm1, %v1613_v56 }
 0x59a   : > { %2771 = vmatmul.mubr.msk.bf16.vlgmr.msra.gmra.mxu1 %vm986_vm1, %v1614_v57  ;;  %2779 = vmatmul.mubr.msk.bf16.vlgmr.msra.gmra.mxu0 %vm986_vm1, %v1614_v57 }
 0x59b   : > { %2786 = vmatprep.mubr.msk.bf16.mxu1 %vm3020_vm0, %v3019_v1  ;;  %2794 = vmatprep.mubr.msk.bf16.mxu0 %vm3020_vm0, %v3019_v1 }
 0x65a   : > { %v2772_v5 = vpop.f32.mrf.mxu1  ;;  %v2780_v6 = vpop.f32.mrf.mxu0 }
 0x65b   : > { %v1751_v7 = vadd.f32 %v2772_v5, %v2606_v3  ;;  %v1822_v8 = vadd.f32 %v2780_v6, %v2611_v4 }
 0x65c   : > { %v1742_v9 = vpop.f32.mrf.mxu1  ;;  %v1813_v13 = vpop.f32.mrf.mxu0 }
 0x65d   : > { %v1829_v14 = vpack.c.bf16 %v1751_v7, %v1751_v7  ;;  %v3310_v15 = vpack.c.bf16 %v1822_v8, %v1822_v8  ;;  %v1743_v20 = vadd.f32 %v2606_v3, %v1742_v9  ;;  %v1814_v23 = vadd.f32 %v2611_v4, %v1813_v13 }
 0x65e   : > { %v2773_v16 = vpop.f32.mrf.mxu1  ;;  %v2781_v17 = vpop.f32.mrf.mxu0 }
 0x65f   : > { %v1837_v18 = vsel %vm1175_vm2, %v1829_v14, 0  ;;  %v1916_v19 = vsel %vm1914_vm9, %v3310_v15, 0 }
 0x660   : > { %v1745_v21 = vpop.f32.mrf.mxu1  ;;  %v1816_v22 = vpop.f32.mrf.mxu0  ;;  %2783 = vmatpush3.bf16.xpose.msra.mxu1 %v1837_v18  ;;  %2791 = vmatpush3.bf16.msra.mxu0 %v1916_v19 }
 0x661   : > { %v1746_v24 = vadd.f32 %v2606_v3, %v1745_v21  ;;  %v1817_v25 = vadd.f32 %v2611_v4, %v1816_v22  ;;  %2792 = vmatprep.subr.bf16.mxu0 %v3019_v1  ;;  %2784 = vmatprep.subr.bf16.mxu1 %v3019_v1 }
 0x663   : > { %v1828_v26 = vpack.c.bf16 %v1746_v24, %v1743_v20  ;;  %v3317_v27 = vpack.c.bf16 %v1817_v25, %v1814_v23 }
 0x665   : > { %2793 = vmatpush3.bf16.msra.mxu0 %v3317_v27  ;;  %v1834_v28 = vsel %vm1175_vm2, %v1828_v26, 0 }
 0x666   : > { %2798 = vmatprep.subr.bf16.mxu0 %v3019_v1 }
 0x668   : > { %2785 = vmatpush3.bf16.xpose.msra.mxu1 %v1834_v28 }
 0x669   : > { %2806 = vmatprep.subr.bf16.mxu1 %v3019_v1 }
 0x66f   : > { %2787 = vmatmul.mubr.msk.bf16.vlgmr.msra.gmra.mxu1 %vm1175_vm2, %v1827_v2 }
 0x670   : > { %2810 = vmatprep.mubr.msk.bf16.mxu1 %vm3020_vm0, %v3019_v1 }
 0x72f   : > { %v1873_v32 = vpop.f32.mrf.mxu1 }
 0x730   : > { %v1880_v33 = vmul.f32 0.25, %v1873_v32 }
 0x731   : > { %v2788_v35 = vpop.f32.mrf.mxu1 }
 0x732   : > { %v1882_v36 = vadd.f32 %v1880_v33, %v1611_v34 }
 0x733   : > { %v1876_v37 = vpop.f32.mrf.mxu1 }
 0x734   : > { %v1881_v38 = vmul.f32 0.25, %v1876_v37  ;;  %v1885_v39 = vsel %vm1884_vm11, %v1882_v36, -inf }
 0x735   : > { %v2789_v41 = vpop.f32.mrf.mxu1  ;;  %1886 = vmax.xlane.f32.xlu0 %v1885_v39  ;;  %v2917_v39 = vld [vmem:[%s3444_s11 + $0x8] sm:$0xff]  }
 0x736   : > { %v1883_v42 = vadd.f32 %v1881_v38, %v1612_v40 }
 0x738   : > { %v1889_v43 = vsel %vm1888_vm13, %v1883_v42, -inf }
 0x739   : > { %1890 = vmax.xlane.f32.xlu1 %v1889_v43 }
 0x74a   : > { %1966 = vrot.lane.b32.xlu1 %v1829_v14, %s3022_s22 }
 0x74e   : > { %1960 = vrot.lane.b32.xlu1 %v1827_v2, %s3022_s22 }
 0x7be   : > { %v1887_v44 = vpop.xlane.xlu0 %1886 }
 0x7bf   : > { %v1892_v45 = vsub.f32 %v1882_v36, %v1887_v44 }
 0x7c1   : > { %v1894_v47 = vmul.f32 1.442695, %v1892_v45 }
 0x7c2   : > { %v1891_v48 = vpop.xlane.xlu1 %1890 }
 0x7c3   : > { %2949 = vpow2.f32 %v1894_v47  ;;  %v1893_v49 = vsub.f32 %v1883_v42, %v1891_v48 }
 0x7c5   : > { %v1896_v50 = vmul.f32 1.442695, %v1893_v49 }
 0x7c6   : > { %v1967_v59 = vpop.permute.xlu1 %1966 }
 0x7c7   : > { %2951 = vpow2.f32 %v1896_v50  ;;  %v1975_v61 = vsel %vm1175_vm2, %v1967_v59, 0 }
 0x7ca   : > { %v1961_v0 = vpop.permute.xlu1 %1960 }
 0x7d0   : > { %v2950_v46 = vpop.eup %2949 }
 0x7d1   : > { %v1898_v51 = vsel %vm1884_vm11, %v2950_v46, 0.0 }
 0x7d2   : > { %1899 = vadd.xlane.f32.xlu0 %v1898_v51 }
 0x7d4   : > { %v2952_v52 = vpop.eup %2951 }
 0x7d5   : > { %v1901_v12 = vsel %vm1888_vm13, %v2952_v52, 0.0 }
 0x7d6   : > { %1902 = vadd.xlane.f32.xlu0 %v1901_v12 }
 0x7ec   : > { %1964 = vrot.lane.b32.xlu0 %v1828_v26, %s3022_s22 }
 0x85b   : > { %v1900_v53 = vpop.xlane.xlu0 %1899 }
 0x85c   : > { %2953 = vrcp.f32 %v1900_v53 }
 0x85f   : > { %v1903_v54 = vpop.xlane.xlu0 %1902 }
 0x860   : > { %2955 = vrcp.f32 %v1903_v54 }
 0x863   : > { %v1965_v62 = vpop.permute.xlu0 %1964 }
 0x864   : > { %v1972_v63 = vsel %vm1175_vm2, %v1965_v62, 0 }
 0x869   : > { %v2954_v55 = vpop.eup %2953 }
 0x86a   : > { %v1906_v57 = vmul.f32 %v2954_v55, %v2950_v46 }
 0x86d   : > { %v2956_v56 = vpop.eup %2955 }
 0x86e   : > { %v1907_v58 = vmul.f32 %v2956_v56, %v2952_v52  ;;  %v2620_v52 = vld [vmem:[%s3445_s18] ss:$0 sm:$0xff] }
 0x870   : > { %v1908_v60 = vpack.c.bf16 %v1907_v58, %v1906_v57 }
 0x872   : > { %2795 = vmatmul.mubr.msk.bf16.vlgmr.msra.gmra.mxu0 %vm1884_vm11, %v1908_v60 }
 0x873   : > { %2799 = vmatpush3.bf16.xpose.msra.mxu0 %v1975_v61  ;;  %2802 = vmatprep.mubr.msk.bf16.mxu0 %vm3020_vm0, %v3019_v1 }
 0x874   : > { %2800 = vmatprep.subr.bf16.mxu0 %v3019_v1 }
 0x87b   : > { %2801 = vmatpush3.bf16.xpose.msra.mxu0 %v1972_v63 }
 0x87c   : > { %2822 = vmatprep.subr.bf16.mxu0 %v3019_v1 }
 0x882   : > { %2803 = vmatmul.mubr.msk.bf16.vlgmr.msra.gmra.mxu0 %vm1175_vm2, %v1961_v0 }
 0x883   : > { %2826 = vmatprep.mubr.msk.bf16.mxu0 %vm3020_vm0, %v3019_v1 }
 0x932   : > { %v3346_v2 = vpop.f32.mrf.mxu0 }
 0x934   : > { %v2796_v3 = vpop.f32.mrf.mxu0 }
 0x936   : > { %v3348_v4 = vpop.f32.mrf.mxu0 }
 0x938   : > { %v2797_v5 = vpop.f32.mrf.mxu0 }
 0x942   : > { %v2011_v6 = vpop.f32.mrf.mxu0 }
 0x943   : > { %v2018_v7 = vmul.f32 0.25, %v2011_v6 }
 0x944   : > { %v2804_v8 = vpop.f32.mrf.mxu0 }
 0x945   : > { %v2020_v9 = vadd.f32 %v2018_v7, %v1611_v34 }
 0x946   : > { %v2014_v13 = vpop.f32.mrf.mxu0 }
 0x947   : > { %v2019_v14 = vmul.f32 0.25, %v2014_v13  ;;  %v2022_v16 = vsel %vm1884_vm11, %v2020_v9, -inf }
 0x948   : > { %2023 = vmax.xlane.f32.xlu1 %v2022_v16  ;;  %v2805_v17 = vpop.f32.mrf.mxu0 }
 0x949   : > { %v2021_v18 = vadd.f32 %v2019_v14, %v1612_v40  ;;  %v2918_v40 = vld [vmem:[%s3444_s11] sm:$0xff]  }
 0x94b   : > { %v2025_v19 = vsel %vm1888_vm13, %v2021_v18, -inf }
 0x94c   : > { %2026 = vmax.xlane.f32.xlu0 %v2025_v19 }
 0x9d1   : > { %v2024_v20 = vpop.xlane.xlu1 %2023 }
 0x9d2   : > { %v2028_v21 = vsub.f32 %v2020_v9, %v2024_v20 }
 0x9d4   : > { %v2030_v22 = vmul.f32 1.442695, %v2028_v21 }
 0x9d5   : > { %v2027_v23 = vpop.xlane.xlu0 %2026 }
 0x9d6   : > { %2957 = vpow2.f32 %v2030_v22  ;;  %v2029_v24 = vsub.f32 %v2021_v18, %v2027_v23 }
 0x9d8   : > { %v2032_v25 = vmul.f32 1.442695, %v2029_v24 }
 0x9da   : > { %2959 = vpow2.f32 %v2032_v25  ;;  %v2625_v25 = vld [vmem:[%s3448_s28] ss:$0 sm:$0xff] }
 0x9e3   : > { %v2958_v26 = vpop.eup %2957 }
 0x9e4   : > { %v2034_v28 = vsel %vm1884_vm11, %v2958_v26, 0.0 }
 0x9e5   : > { %2035 = vadd.xlane.f32.xlu0 %v2034_v28 }
 0x9e7   : > { %v2960_v29 = vpop.eup %2959 }
 0x9e8   : > { %v2037_v30 = vsel %vm1888_vm13, %v2960_v29, 0.0 }
 0x9e9   : > { %2038 = vadd.xlane.f32.xlu1 %v2037_v30 }
 0x9fa   : > { %2047 = vrot.lane.b32.xlu1 %v3317_v27, %s3022_s22 }
 0x9fb   : > { %2049 = vrot.lane.b32.xlu0 %v3310_v15, %s3022_s22  ;;  %s3446_s22 = sld [smem:[#allocation12_spill]] }
 0xa01   : > { %v2920_v8 = vld [vmem:[%s3446_s22] sm:$0xff]  }
 0xa6e   : > { %v2036_v31 = vpop.xlane.xlu0 %2035 }
 0xa6f   : > { %2961 = vrcp.f32 %v2036_v31  ;;  %v2921_v31 = vld [vmem:[%s3449_s1 + $0x18] sm:$0xff]  }
 0xa72   : > { %v2039_v32 = vpop.xlane.xlu1 %2038  ;;  %v2050_v33 = vpop.permute.xlu0 %2049 }
 0xa73   : > { %2963 = vrcp.f32 %v2039_v32  ;;  %v2056_v34 = vsel %vm1914_vm9, %v2050_v33, 0  ;;  %v2922_v32 = vld [vmem:[%s3449_s1 + $0x10] sm:$0xff]   ;;  %v2923_v33 = vld [vmem:[%s3449_s1 + $0x8] sm:$0xff]  }
 0xa74   : > { %2807 = vmatpush3.bf16.msra.mxu1 %v2056_v34  ;;  %v2924_v34 = vld [vmem:[%s3449_s1] sm:$0xff]  }
 0xa75   : > { %2808 = vmatprep.subr.bf16.mxu1 %v3019_v1 }
 0xa76   : > { %v2048_v35 = vpop.permute.xlu1 %2047 }
 0xa78   : > { %2809 = vmatpush3.bf16.msra.mxu1 %v2048_v35  ;;  %v2626_v35 = vld [vmem:[%s3450_s2] ss:$0 sm:$0xff] }
 0xa79   : > { %2814 = vmatprep.subr.bf16.mxu1 %v3019_v1 }
 0xa7c   : > { %v2962_v27 = vpop.eup %2961 }
 0xa7d   : > { %v2042_v37 = vmul.f32 %v2962_v27, %v2958_v26 }
 0xa80   : > { %v2964_v36 = vpop.eup %2963 }
 0xa81   : > { %v2043_v15 = vmul.f32 %v2964_v36, %v2960_v29 }
 0xa83   : > { %v2044_v38 = vpack.c.bf16 %v2043_v15, %v2042_v37 }
 0xa85   : > { %2811 = vmatmul.mubr.msk.bf16.vlgmr.msra.gmra.mxu1 %vm1884_vm11, %v2044_v38 }
 0xa86   : > { %2818 = vmatprep.mubr.msk.bf16.mxu1 %vm3020_vm0, %v3019_v1  ;;  %2815 = vmatpush3.bf16.msra.mxu1 %v2917_v39 }
 0xa87   : > { %2816 = vmatprep.subr.bf16.mxu1 %v3019_v1 }
 0xa8a   : > { %2817 = vmatpush3.bf16.msra.mxu1 %v2918_v40 }
 0xa8b   : > { %2830 = vmatprep.subr.bf16.mxu1 %v3019_v1 }
 0xb45   : > { %v2092_v41 = vpop.f32.mrf.mxu1 }
 0xb47   : > { %v2812_v42 = vpop.f32.mrf.mxu1 }
 0xb49   : > { %v2095_v43 = vpop.f32.mrf.mxu1 }
 0xb4a   : > { %v2898_v44 = vpack.i.bf16 %v2095_v43, %v2092_v41 }
 0xb4b   : > { %v2813_v45 = vpop.f32.mrf.mxu1 }
 0xb4c   : > { %2899 = vrot.lane.b32.xlu1 %v2898_v44, %s3024_s23  ;;  %s3447_s23 = sld [smem:[#allocation10_spill]] }
 0xb52   : > { %v2624_v21 = vld [vmem:[%s3447_s23] ss:$0 sm:$0xff] }
 0xbbe   : > { %v2900_v47 = vpop.permute.xlu1 %2899 }
 0xbbf   : > { %v2902_v48 = vunpack.i.h.bf16 %v2900_v47  ;;  %v2901_v49 = vunpack.i.l.bf16 %v2900_v47 }
 0xbc1   : > { %v2108_v50 = vsel %vm1175_vm2, %v3348_v4, %v2902_v48  ;;  %v2107_v46 = vsel %vm1175_vm2, %v3346_v2, %v2901_v49  ;;  %vm2387_vm2 = vcmask 523264  }
 0xbc2   : > { %v2109_v51 = vpack.c.bf16 %v2108_v50, %v2107_v46 }
 0xbc4   : > { %2819 = vmatmul.mubr.msk.bf16.vlgmr.msra.gmra.mxu1 %vm986_vm1, %v2109_v51 }
 0xbc5   : > { %2838 = vmatprep.mubr.msk.bf16.mxu1 %vm3020_vm0, %v3019_v1  ;;  %2831 = vmatpush3.bf16.msra.mxu1 %v2921_v31 }
 0xbc6   : > { %2832 = vmatprep.subr.bf16.mxu1 %v3019_v1 }
 0xbc9   : > { %2833 = vmatpush3.bf16.msra.mxu1 %v2922_v32  ;;  %v2630_v32 = vld [vmem:[%s3169_s20] ss:$0 sm:$0xff] }
 0xbca   : > { %2834 = vmatprep.subr.bf16.mxu1 %v3019_v1 }
 0xbcd   : > { %2835 = vmatpush3.bf16.msra.mxu1 %v2923_v33 }
 0xbce   : > { %2836 = vmatprep.subr.bf16.mxu1 %v3019_v1 }
 0xbd1   : > { %2837 = vmatpush3.bf16.msra.mxu1 %v2924_v34 }
 0xc84   : > { %v2170_v12 = vpop.f32.mrf.mxu1 }
 0xc85   : > { %v2171_v53 = vadd.f32 %v2620_v52, %v2170_v12 }
 0xc86   : > { %v2820_v54 = vpop.f32.mrf.mxu1 }
 0xc87   : > { %v2177_v55 = vadd.f32 %v2171_v53, %v3213_v10 }
 0xc88   : > { %v2173_v56 = vpop.f32.mrf.mxu1 }
 0xc89   : > { %v2174_v57 = vadd.f32 %v2620_v52, %v2173_v56  ;;  %v2179_v58 = vsel %vm986_vm1, %v2177_v55, 0.0 }
 0xc8a   : > { %2180 = vadd.xlane.f32.xlu0 %v2179_v58  ;;  %v2821_v59 = vpop.f32.mrf.mxu1 }
 0xc8b   : > { %v2178_v60 = vadd.f32 %v2174_v57, %v3215_v11  ;;  %v2919_v11 = vld [vmem:[%s3446_s22 + $0x8] sm:$0xff]  }
 0xc8c   : > { %2823 = vmatpush3.bf16.msra.mxu0 %v2919_v11 }
 0xc8d   : > { %v2183_v61 = vsel %vm2182_vm14, %v2178_v60, 0.0  ;;  %2824 = vmatprep.subr.bf16.mxu0 %v3019_v1 }
 0xc8e   : > { %2184 = vadd.xlane.f32.xlu1 %v2183_v61 }
 0xc90   : > { %2825 = vmatpush3.bf16.msra.mxu0 %v2920_v8 }
 0xd13   : > { %v2181_v62 = vpop.xlane.xlu0 %2180 }
 0xd14   : > { %v2187_v63 = vmul.f32 0.03125, %v2181_v62 }
 0xd16   : > { %v2189_v0 = vsub.f32 %v2177_v55, %v2187_v63 }
 0xd17   : > { %v2185_v2 = vpop.xlane.xlu1 %2184 }
 0xd18   : > { %v2188_v3 = vmul.f32 0.03125, %v2185_v2  ;;  %v2191_v10 = vmul.f32 %v2189_v0, %v2189_v0 }
 0xd1a   : > { %v2190_v4 = vsub.f32 %v2178_v60, %v2188_v3  ;;  %v2193_v5 = vsel %vm986_vm1, %v2191_v10, 0.0 }
 0xd1b   : > { %2194 = vadd.xlane.f32.xlu0 %v2193_v5 }
 0xd1c   : > { %v2192_v6 = vmul.f32 %v2190_v4, %v2190_v4 }
 0xd1e   : > { %v2196_v7 = vsel %vm2182_vm14, %v2192_v6, 0.0 }
 0xd1f   : > { %2197 = vadd.xlane.f32.xlu0 %v2196_v7 }
 0xda4   : > { %v2195_v9 = vpop.xlane.xlu0 %2194 }
 0xda5   : > { %v2199_v13 = vmul.f32 0.03125, %v2195_v9 }
 0xda7   : > { %v2201_v14 = vadd.f32 1e-05, %v2199_v13 }
 0xda8   : > { %v2198_v16 = vpop.xlane.xlu0 %2197 }
 0xda9   : > { %2965 = vrsqrt.f32 %v2201_v14  ;;  %v2200_v17 = vmul.f32 0.03125, %v2198_v16  ;;  %v3025_v14 = vmov -1.0  }
 0xdab   : > { %v2202_v18 = vadd.f32 1e-05, %v2200_v17 }
 0xdad   : > { %2967 = vrsqrt.f32 %v2202_v18 }
 0xdb6   : > { %v2966_v19 = vpop.eup %2965 }
 0xdb7   : > { %v2205_v20 = vmul.f32 %v2966_v19, %v2189_v0 }
 0xdb9   : > { %v2214_v24 = vmul.f32 %v2624_v21, %v2205_v20 }
 0xdba   : > { %v2968_v22 = vpop.eup %2967 }
 0xdbb   : > { %v2206_v23 = vmul.f32 %v2968_v22, %v2190_v4  ;;  %v3388_v28 = vadd.f32 %v2625_v25, %v2214_v24 }
 0xdbd   : > { %v2215_v26 = vmul.f32 %v2624_v21, %v2206_v23 }
 0xdbf   : > { %v3390_v29 = vadd.f32 %v2625_v25, %v2215_v26 }
 0xdc1   : > { %v2225_v30 = vpack.c.bf16 %v3390_v29, %v3388_v28 }
 0xdc3   : > { %2827 = vmatmul.mubr.msk.bf16.vlgmr.msra.gmra.mxu0 %vm986_vm1, %v2225_v30 }
 0xe83   : > { %v2286_v27 = vpop.f32.mrf.mxu0 }
 0xe84   : > { %v2287_v36 = vadd.f32 %v2626_v35, %v2286_v27 }
 0xe85   : > { %v2828_v37 = vpop.f32.mrf.mxu0 }
 0xe86   : > { %v2295_v15 = vmul.f32 0.70710677, %v2287_v36  ;;  %v2293_v23 = vmul.f32 0.5, %v2287_v36 }
 0xe87   : > { %v2289_v38 = vpop.f32.mrf.mxu0 }
 0xe88   : > { %v2301_v39 = vand.u32 2147483647, %v2295_v15  ;;  %v2290_v40 = vadd.f32 %v2626_v35, %v2289_v38  ;;  %vm2297_vm15 = vcmp.ge.f32.partialorder %v2295_v15, 0.0 }
 0xe89   : > { %v2829_v41 = vpop.f32.mrf.mxu0  ;;  %v2299_v16 = vsel %vm2297_vm15, 1.0, %v3025_v14 }
 0xe8a   : > { %v2303_v42 = vmul.f32 0.3275911, %v2301_v39  ;;  %v2296_v43 = vmul.f32 0.70710677, %v2290_v40  ;;  %v2329_v1 = vsub.f32 0.0, %v2301_v39  ;;  %v2294_v24 = vmul.f32 0.5, %v2290_v40 }
 0xe8c   : > { %v2305_v44 = vadd.f32 1.0, %v2303_v42  ;;  %v2302_v45 = vand.u32 2147483647, %v2296_v43  ;;  %v2331_v49 = vmul.f32 %v2329_v1, %v2301_v39  ;;  %vm2298_vm0 = vcmp.ge.f32.partialorder %v2296_v43, 0.0 }
 0xe8d   : > { %v2300_v20 = vsel %vm2298_vm0, 1.0, %v3025_v14 }
 0xe8e   : > { %2969 = vrcp.f32 %v2305_v44  ;;  %v2304_v47 = vmul.f32 0.3275911, %v2302_v45  ;;  %v2330_v50 = vsub.f32 0.0, %v2302_v45  ;;  %v2333_v52 = vmul.f32 1.442695, %v2331_v49 }
 0xe90   : > { %v2306_v48 = vadd.f32 1.0, %v2304_v47  ;;  %v2332_v12 = vmul.f32 %v2330_v50, %v2302_v45 }
 0xe92   : > { %2971 = vrcp.f32 %v2306_v48  ;;  %v2335_v57 = vmul.f32 1.442695, %v2332_v12 }
 0xe93   : > { %2973 = vpow2.f32 %v2333_v52 }
 0xe94   : > { %2975 = vpow2.f32 %v2335_v57 }
 0xe9b   : > { %v2970_v46 = vpop.eup %2969 }
 0xe9c   : > { %v2311_v51 = vmul.f32 1.0614054, %v2970_v46 }
 0xe9e   : > { %v2313_v53 = vadd.f32 -1.4531521, %v2311_v51 }
 0xe9f   : > { %v2972_v54 = vpop.eup %2971 }
 0xea0   : > { %v2315_v55 = vmul.f32 %v2970_v46, %v2313_v53  ;;  %v2312_v56 = vmul.f32 1.0614054, %v2972_v54  ;;  %v2974_v6 = vpop.eup %2973 }
 0xea1   : > { %v2976_v13 = vpop.eup %2975 }
 0xea2   : > { %v2317_v58 = vadd.f32 1.4214138, %v2315_v55  ;;  %v2314_v59 = vadd.f32 -1.4531521, %v2312_v56  ;;  %v2637_v56 = vld [vmem:[%s3179_s4] ss:$0 sm:$0xff] }
 0xea4   : > { %v2319_v60 = vmul.f32 %v2970_v46, %v2317_v58  ;;  %v2316_v61 = vmul.f32 %v2972_v54, %v2314_v59 }
 0xea6   : > { %v2321_v62 = vadd.f32 -0.28449672, %v2319_v60  ;;  %v2318_v63 = vadd.f32 1.4214138, %v2316_v61 }
 0xea8   : > { %v2323_v0 = vmul.f32 %v2970_v46, %v2321_v62  ;;  %v2320_v2 = vmul.f32 %v2972_v54, %v2318_v63 }
 0xeaa   : > { %v2325_v3 = vadd.f32 0.2548296, %v2323_v0  ;;  %v2322_v10 = vadd.f32 -0.28449672, %v2320_v2 }
 0xeac   : > { %v2327_v4 = vmul.f32 %v2970_v46, %v2325_v3  ;;  %v2324_v5 = vmul.f32 %v2972_v54, %v2322_v10 }
 0xeae   : > { %v2337_v7 = vmul.f32 %v2974_v6, %v2327_v4  ;;  %v2326_v11 = vadd.f32 0.2548296, %v2324_v5 }
 0xeb0   : > { %v2339_v8 = vsub.f32 1.0, %v2337_v7  ;;  %v2328_v9 = vmul.f32 %v2972_v54, %v2326_v11  ;;  %v2636_v54 = vld [vmem:[%s3174_s6] ss:$0 sm:$0xff] }
 0xeb2   : > { %v2341_v17 = vmul.f32 %v2339_v8, %v2299_v16  ;;  %v2338_v18 = vmul.f32 %v2976_v13, %v2328_v9 }
 0xeb4   : > { %v2340_v19 = vsub.f32 1.0, %v2338_v18  ;;  %v2343_v21 = vadd.f32 1.0, %v2341_v17 }
 0xeb6   : > { %v2342_v22 = vmul.f32 %v2340_v19, %v2300_v20  ;;  %v2345_v26 = vmul.f32 %v2343_v21, %v2293_v23 }
 0xeb8   : > { %v2344_v25 = vadd.f32 1.0, %v2342_v22 }
 0xeba   : > { %v2346_v30 = vmul.f32 %v2344_v25, %v2294_v24 }
 0xebc   : > { %v2347_v31 = vpack.c.bf16 %v2346_v30, %v2345_v26 }
 0xebe   : > { %2839 = vmatmul.mubr.msk.bf16.vlgmr.msra.gmra.mxu1 %vm2387_vm2, %v2347_v31 }
 0xf7e   : > { %v2425_v33 = vpop.f32.mrf.mxu1 }
 0xf7f   : > { %v2426_v34 = vadd.f32 %v2630_v32, %v2425_v33 }
 0xf80   : > { %v2840_v35 = vpop.f32.mrf.mxu1 }
 0xf81   : > { %v2432_v27 = vadd.f32 %v2426_v34, %v3388_v28 }
 0xf82   : > { %v2428_v37 = vpop.f32.mrf.mxu1 }
 0xf83   : > { %v2429_v15 = vadd.f32 %v2630_v32, %v2428_v37  ;;  %v2434_v38 = vsel %vm986_vm1, %v2432_v27, 0.0 }
 0xf84   : > { %2435 = vadd.xlane.f32.xlu1 %v2434_v38  ;;  %v2841_v39 = vpop.f32.mrf.mxu1 }
 0xf85   : > { %v2433_v36 = vadd.f32 %v2429_v15, %v3390_v29 }
 0xf87   : > { %v2437_v40 = vsel %vm2182_vm14, %v2433_v36, 0.0 }
 0xf88   : > { %2438 = vadd.xlane.f32.xlu0 %v2437_v40 }
0x100d   : > { %v2436_v41 = vpop.xlane.xlu1 %2435 }
0x100e   : > { %v2440_v42 = vmul.f32 0.03125, %v2436_v41 }
0x1010   : > { %v2442_v43 = vsub.f32 %v2432_v27, %v2440_v42 }
0x1011   : > { %v2439_v44 = vpop.xlane.xlu0 %2438 }
0x1012   : > { %v2441_v45 = vmul.f32 0.03125, %v2439_v44  ;;  %v2444_v47 = vmul.f32 %v2442_v43, %v2442_v43 }
0x1014   : > { %v2443_v48 = vsub.f32 %v2433_v36, %v2441_v45  ;;  %v2446_v28 = vsel %vm986_vm1, %v2444_v47, 0.0 }
0x1015   : > { %2447 = vadd.xlane.f32.xlu1 %v2446_v28 }
0x1016   : > { %v2445_v1 = vmul.f32 %v2443_v48, %v2443_v48 }
0x1018   : > { %v2449_v49 = vsel %vm2182_vm14, %v2445_v1, 0.0 }
0x1019   : > { %2450 = vadd.xlane.f32.xlu0 %v2449_v49 }
0x109e   : > { %v2448_v29 = vpop.xlane.xlu1 %2447 }
0x109f   : > { %v2452_v50 = vmul.f32 0.03125, %v2448_v29 }
0x10a1   : > { %v2454_v46 = vadd.f32 1e-05, %v2452_v50 }
0x10a2   : > { %v2451_v51 = vpop.xlane.xlu0 %2450 }
0x10a3   : > { %2977 = vrsqrt.f32 %v2454_v46  ;;  %v2453_v52 = vmul.f32 0.03125, %v2451_v51 }
0x10a5   : > { %v2455_v12 = vadd.f32 1e-05, %v2453_v52 }
0x10a7   : > { %2979 = vrsqrt.f32 %v2455_v12 }
0x10b0   : > { %v2978_v53 = vpop.eup %2977 }
0x10b1   : > { %v2458_v55 = vmul.f32 %v2978_v53, %v2442_v43 }
0x10b3   : > { %v2467_v57 = vmul.f32 %v2636_v54, %v2458_v55 }
0x10b4   : > { %v2980_v58 = vpop.eup %2979 }
0x10b5   : > { %v2476_v59 = vadd.f32 %v2637_v56, %v2467_v57  ;;  %v2459_v60 = vmul.f32 %v2980_v58, %v2443_v48 }
0x10b7   : > { %2478 = vst.msk [vmem:[%s930_s7] sm:$0xff] %vm986_vm1, %v2476_v59  ;;  %v2468_v61 = vmul.f32 %v2636_v54, %v2459_v60 }
0x10b9   : > { %v2477_v62 = vadd.f32 %v2637_v56, %v2468_v61 }
0x10bb   : > { %2479 = vst.msk [vmem:[%s930_s7 + $0x8] sm:$0xf] %vm2182_vm14, %v2477_v62 }
0x10bc PF: > { %s71_s15 = sadd.s32 1, %s2987_s15  }
0x10bd   : > { %p68_p4 = scmp.ge.s32.totalorder %s71_s15, 4  }
0x10bf   :  { %70 = sbr.rel (!%p68_p4) target bundleno = 45 (0x2d), region = 200 }

// kernel: decoder_layer_forward.5
= control target key start
LH: loop header
LB: loop body
LE: loop exit
PB: predicated region body
PF: predicated region fallthrough
CT: control target
= control target key end

     0   :  { %s3018_s0 = inlined_call_operand.vmem [shape: f32[1,24,32], index: 0, kind: input, shape index: {}]   ;;  %s3019_s1 = inlined_call_operand.vmem [shape: f32[1,36,32], index: 1, kind: input, shape index: {}]   ;;  %s3020_s2 = inlined_call_operand.vmem [shape: s32[24,1], index: 2, kind: input, shape index: {}]   ;;  %s3021_s3 = inlined_call_operand.vmem [shape: s32[1,36], index: 3, kind: input, shape index: {}]   ;;  %s3022_s4 = inlined_call_operand.vmem [shape: bf16[32,32], index: 4, kind: input, shape index: {}]   ;;  %s3023_s5 = inlined_call_operand.vmem [shape: f32[1,32], index: 5, kind: input, shape index: {}]   ;;  %s3024_s6 = inlined_call_operand.vmem [shape: bf16[32,32], index: 6, kind: input, shape index: {}]   ;;  %s3025_s7 = inlined_call_operand.vmem [shape: f32[1,32], index: 7, kind: input, shape index: {}]   ;;  %s3026_s8 = inlined_call_operand.vmem [shape: bf16[32,32], index: 8, kind: input, shape index: {}]   ;;  %s3027_s9 = inlined_call_operand.vmem [shape: f32[1,32], index: 9, kind: input, shape index: {}]   ;;  %s3028_s10 = inlined_call_operand.vmem [shape: bf16[32,32], index: 10, kind: input, shape index: {}]   ;;  %s3029_s11 = inlined_call_operand.vmem [shape: f32[1,32], index: 11, kind: input, shape index: {}]   ;;  %s3030_s12 = inlined_call_operand.vmem [shape: bf16[32,32], index: 12, kind: input, shape index: {}]   ;;  %s3031_s13 = inlined_call_operand.vmem [shape: f32[1,32], index: 13, kind: input, shape index: {}]   ;;  %s3032_s14 = inlined_call_operand.vmem [shape: bf16[32,32], index: 14, kind: input, shape index: {}]   ;;  %s3033_s15 = inlined_call_operand.vmem [shape: f32[1,32], index: 15, kind: input, shape index: {}]   ;;  %s3034_s16 = inlined_call_operand.vmem [shape: bf16[32,32], index: 16, kind: input, shape index: {}]   ;;  %s3035_s17 = inlined_call_operand.vmem [shape: f32[1,32], index: 17, kind: input, shape index: {}]   ;;  %s3036_s18 = inlined_call_operand.vmem [shape: bf16[32,32], index: 18, kind: input, shape index: {}]   ;;  %s3037_s19 = inlined_call_operand.vmem [shape: f32[1,32], index: 19, kind: input, shape index: {}]   ;;  %s3038_s20 = inlined_call_operand.vmem [shape: f32[1,32], index: 20, kind: input, shape index: {}]   ;;  %s3039_s21 = inlined_call_operand.vmem [shape: f32[1,32], index: 21, kind: input, shape index: {}]   ;;  %s3040_s22 = inlined_call_operand.vmem [shape: f32[1,32], index: 22, kind: input, shape index: {}]   ;;  %s3041_s23 = inlined_call_operand.vmem [shape: f32[1,32], index: 23, kind: input, shape index: {}]   ;;  %s3042_s24 = inlined_call_operand.vmem [shape: bf16[32,8], index: 24, kind: input, shape index: {}]   ;;  %s3043_s25 = inlined_call_operand.vmem [shape: f32[1,8], index: 25, kind: input, shape index: {}]   ;;  %s3044_s26 = inlined_call_operand.hbm [shape: f32[1,24,32], index: 26, kind: output, shape index: {0}]   ;;  %s3045_s27 = inlined_call_operand.vmem [shape: f32[1,24,8], index: 27, kind: output, shape index: {1}]  }
   0x1   :  { %3053 = sst [smem:[#allocation5_spill]] %s3018_s0 }
   0x2   :  { %3054 = sst [smem:[#allocation6_spill]] %s3019_s1 }
   0x3   :  { %3055 = sst [smem:[#allocation7_spill]] %s3020_s2 }
   0x4   :  { %3056 = sst [smem:[#allocation8_spill]] %s3021_s3 }
   0x5   :  { %3057 = sst [smem:[#allocation9_spill]] %s3022_s4 }
   0x6   :  { %3058 = sst [smem:[#allocation10_spill]] %s3023_s5 }
   0x7   :  { %3059 = sst [smem:[#allocation11_spill]] %s3024_s6 }
   0x8   :  { %3060 = sst [smem:[#allocation12_spill]] %s3025_s7 }
   0x9   :  { %3061 = sst [smem:[#allocation13_spill]] %s3026_s8 }
   0xa   :  { %3062 = sst [smem:[#allocation14_spill]] %s3027_s9 }
   0xb   :  { %3063 = sst [smem:[#allocation15_spill]] %s3028_s10 }
   0xc   :  { %3064 = sst [smem:[#allocation16_spill]] %s3029_s11 }
   0xd   :  { %s3065_s8 = sld [smem:[#allocation11_spill]]  ;;  %v2370_v1 = vmov 0.0   ;;  %vm2371_vm0 = vmmov 0   ;;  %vm146_vm1 = vcmask 261120  }
   0xe   :  { %2069 = vmatprep.subr.bf16.mxu1 %v2370_v1  ;;  %2073 = vmatprep.mubr.msk.bf16.mxu1 %vm2371_vm0, %v2370_v1  ;;  %s3066_s0 = sld [smem:[#allocation6_spill]] }
   0xf   :  { %s3067_s11 = sld [smem:[#allocation9_spill]] }
  0x13   :  { %v2246_v0 = vld [vmem:[%s3065_s8 + $0x8] sm:$0xff]   ;;  %v2247_v2 = vld [vmem:[%s3065_s8] sm:$0xff]   ;;  %s3068_s8 = sld [smem:[#allocation5_spill]] }
  0x14   :  { %2070 = vmatpush3.bf16.msra.mxu1 %v2246_v0  ;;  %v90_v3 = vld [vmem:[%s3066_s0] sm:$0xff]  ;;  %v91_v4 = vld [vmem:[%s3066_s0 + $0x8] sm:$0xff]  ;;  %v92_v12 = vld [vmem:[%s3066_s0 + $0x10] sm:$0xff] }
  0x15   :  { %2071 = vmatprep.subr.bf16.mxu1 %v2370_v1  ;;  %v2248_v5 = vld [vmem:[%s3067_s11 + $0x8] sm:$0xff]   ;;  %v2539_v6 = vpack.c.bf16 %v91_v4, %v90_v3  ;;  %v2249_v7 = vld [vmem:[%s3067_s11] sm:$0xff]   ;;  %v93_v13 = vld [vmem:[%s3066_s0 + $0x18] sm:$0xff] }
  0x16   :  { %2061 = vmatprep.subr.bf16.mxu0 %v2248_v5  ;;  %v2575_v15 = vpack.c.bf16 %v93_v13, %v92_v12 }
  0x17   :  { %2062 = vmatpush3.bf16.msra.mxu0 %v2248_v5 }
  0x18   :  { %2072 = vmatpush3.bf16.msra.mxu1 %v2247_v2  ;;  %2063 = vmatprep.subr.bf16.mxu0 %v2249_v7 }
  0x19   :  { %v2547_v8 = vld [vmem:[%s3068_s8] sm:$0xff]  ;;  %v2552_v9 = vld [vmem:[%s3068_s8 + $0x8] sm:$0xff]  ;;  %v2557_v10 = vld [vmem:[%s3068_s8 + $0x10] sm:$0xff] }
  0x1a   :  { %v118_v11 = vpack.c.bf16 %v2552_v9, %v2547_v8  ;;  %v119_v14 = vpack.c.bf16 %v2557_v10, %v2557_v10 }
  0x1b   :  { %2074 = vmatmul.mubr.msk.bf16.vlgmr.msra.gmra.mxu1 %vm146_vm1, %v2539_v6  ;;  %2064 = vmatpush3.bf16.msra.mxu0 %v2249_v7 }
  0x1c   :  { %2065 = vmatprep.mubr.msk.bf16.mxu0 %vm146_vm1, %v118_v11  ;;  %2077 = vmatprep.mubr.msk.bf16.mxu1 %vm2371_vm0, %v2370_v1 }
  0x1d   :  { %2085 = vmatprep.subr.bf16.mxu0 %v2370_v1 }
  0x1e   :  { %2066 = vmatmul.mubr.msk.bf16.vlgmr.msra.gmra.mxu0 %vm146_vm1, %v119_v14 }
  0x1f   :  { %2089 = vmatprep.mubr.msk.bf16.mxu0 %vm2371_vm0, %v2370_v1 }
  0x20   :  { %33 = vsyncpa [#allocation3], 0  ;;  %v94_v16 = vld [vmem:[%s3066_s0 + $0x20] sm:$0xf]  ;;  %v2372_v18 = vmov 0   ;;  %s3069_s4 = sld [smem:[#allocation12_spill]] }
  0x21   :  { %v2587_v17 = vpack.c.bf16 %v94_v16, %v94_v16  ;;  %2239 = vset.pattern.permute.xlu1 %v2372_v18  ;;  %2240 = vset.pattern.permute.xlu0 %v2372_v18  ;;  %s3070_s30 = sld [smem:[#allocation10_spill]]  ;;  %s2373_s9 = smov 112   ;;  %vm373_vm2 = vcmask 130048   ;;  %vm443_vm6 = vcmask 293888   ;;  %vm488_vm7 = vcmask 1041408  }
  0x22   :  { %s3071_s10 = sld [smem:[#allocation7_spill]]  ;;  %s2375_s3 = smov 16  }
  0x23   :  { %2078 = vmatmul.mubr.msk.bf16.gmra.mxu1 %vm146_vm1, %v2575_v15  ;;  %s3072_s7 = sld [smem:[#allocation13_spill]] }
  0x24   :  { %2081 = vmatprep.mubr.msk.bf16.mxu1 %vm2371_vm0, %v2370_v1  ;;  %s3073_s5 = sld [smem:[#allocation8_spill]] }
  0x25   :  { %s3074_s29 = sld [smem:[#allocation14_spill]] }
  0x26   :  { %v1925_v20 = vld [vmem:[%s3069_s4] ss:$0 sm:$0xff]  ;;  %s3075_s6 = sld [smem:[#allocation15_spill]] }
  0x27   :  { %v1920_v28 = vld [vmem:[%s3070_s30] ss:$0 sm:$0xff]  ;;  %s3076_s28 = sld [smem:[#allocation16_spill]] }
  0x28   :  { %v95_v42 = vld [vmem:[%s3071_s10] sm:$0xff]  ;;  %v97_v50 = vld [vmem:[%s3071_s10 + $0x10] sm:$0xff]  ;;  %v96_v54 = vld [vmem:[%s3071_s10 + $0x8] sm:$0xff] }
  0x29   :  { %v2250_v56 = vld [vmem:[%s3072_s7 + $0x8] sm:$0xff]   ;;  %v2251_v58 = vld [vmem:[%s3072_s7] sm:$0xff]  }
  0x2a   :  { %2086 = vmatpush3.bf16.msra.mxu0 %v2250_v56  ;;  %v1919_v4 = vld [vmem:[%s3073_s5] ss:$0 sm:$0xff] }
  0x2b   :  { %2082 = vmatmul.mubr.msk.bf16.gmra.mxu1 %vm146_vm1, %v2587_v17  ;;  %2087 = vmatprep.subr.bf16.mxu0 %v2370_v1 }
  0x2e   :  { %2088 = vmatpush3.bf16.msra.mxu0 %v2251_v58 }
  0x31   :  { %2090 = vmatmul.mubr.msk.bf16.vlgmr.msra.gmra.mxu0 %vm146_vm1, %v2539_v6  ;;  %v2374_v6 = vmov -1e+30  }
  0x32   :  { %2093 = vmatprep.mubr.msk.bf16.mxu0 %vm2371_vm0, %v2370_v1 }
  0x39   :  { %2094 = vmatmul.mubr.msk.bf16.gmra.mxu0 %vm146_vm1, %v2575_v15 }
  0x3a   :  { %2097 = vmatprep.mubr.msk.bf16.mxu0 %vm2371_vm0, %v2370_v1 }
  0x41   :  { %2098 = vmatmul.mubr.msk.bf16.gmra.mxu0 %vm146_vm1, %v2587_v17 }
  0xdb   :  { %v267_v19 = vpop.f32.mrf.mxu1 }
  0xdc   :  { %v268_v23 = vadd.f32 %v1925_v20, %v267_v19 }
  0xdd   :  { %v2075_v21 = vpop.f32.mrf.mxu1 }
  0xde   :  { %v2067_v25 = vpop.f32.mrf.mxu0 }
  0xdf   :  { %v270_v22 = vpop.f32.mrf.mxu1  ;;  %v196_v49 = vadd.f32 %v2067_v25, %v1920_v28 }
  0xe0   :  { %v271_v24 = vadd.f32 %v1925_v20, %v270_v22  ;;  %v187_v29 = vpop.f32.mrf.mxu0 }
  0xe1   :  { %v2076_v26 = vpop.f32.mrf.mxu1  ;;  %v188_v33 = vadd.f32 %v1920_v28, %v187_v29  ;;  %v369_v52 = vpack.c.bf16 %v196_v49, %v196_v49 }
  0xe2   :  { %v370_v27 = vpack.c.bf16 %v271_v24, %v268_v23  ;;  %v2068_v31 = vpop.f32.mrf.mxu0 }
  0xe3   :  { %v275_v30 = vpop.f32.mrf.mxu1 }
  0xe4   :  { %549 = vrot.lane.b32.xlu1 %v370_v27, %s2373_s9  ;;  %v190_v34 = vpop.f32.mrf.mxu0  ;;  %v276_v44 = vadd.f32 %v1925_v20, %v275_v30  ;;  %v381_v55 = vsel %vm373_vm2, %v370_v27, 0 }
  0xe5   :  { %v2079_v32 = vpop.f32.mrf.mxu1  ;;  %v191_v36 = vadd.f32 %v1920_v28, %v190_v34 }
  0xe7   :  { %v278_v35 = vpop.f32.mrf.mxu1  ;;  %v368_v38 = vpack.c.bf16 %v191_v36, %v188_v33 }
  0xe8   :  { %v279_v40 = vadd.f32 %v1925_v20, %v278_v35 }
  0xe9   :  { %v2080_v37 = vpop.f32.mrf.mxu1  ;;  %542 = vrot.lane.b32.xlu1 %v368_v38, %s2373_s9  ;;  %2107 = vmatprep.mubr.msk.bf16.mxu1 %vm373_vm2, %v368_v38 }
  0xea   :  { %v371_v47 = vpack.c.bf16 %v279_v40, %v276_v44 }
  0xeb   :  { %v283_v39 = vpop.f32.mrf.mxu1 }
  0xec   :  { %v284_v41 = vadd.f32 %v1925_v20, %v283_v39  ;;  %v384_v53 = vsel %vm373_vm2, %v371_v47, 0 }
  0xed   :  { %v2083_v43 = vpop.f32.mrf.mxu1  ;;  %100 = vperm.xlu1 %2239, %v95_v42  }
  0xee   :  { %v372_v45 = vpack.c.bf16 %v284_v41, %v284_v41 }
  0xef   :  { %v286_v46 = vpop.f32.mrf.mxu1 }
  0xf0   :  { %553 = vrot.lane.b32.xlu0 %v372_v45, %s2373_s9  ;;  %2221 = vmatprep.subr.msk.bf16.mxu1 %vm373_vm2, %v372_v45  ;;  %v387_v48 = vsel %vm373_vm2, %v372_v45, 0 }
  0xf1   :  { %v2084_v51 = vpop.f32.mrf.mxu1  ;;  %2102 = vmatpush3.bf16.xpose.msra.mxu1 %v387_v48  ;;  %106 = vperm.xlu1 %2239, %v97_v50   ;;  %v346_v39 = vpop.f32.mrf.mxu0 }
  0xf2   :  { %2222 = vmatprep.subr.msk.bf16.mxu1 %vm373_vm2, %v371_v47 }
  0xf3   :  { %v2091_v40 = vpop.f32.mrf.mxu0 }
  0xf4   :  { %551 = vrot.lane.b32.xlu0 %v371_v47, %s2373_s9 }
  0xf5   :  { %v349_v41 = vpop.f32.mrf.mxu0 }
  0xf7   :  { %v2092_v42 = vpop.f32.mrf.mxu0 }
  0xf8   :  { %544 = vrot.lane.b32.xlu0 %v369_v52, %s2373_s9 }
  0xf9   :  { %2104 = vmatpush3.bf16.xpose.msra.mxu1 %v384_v53  ;;  %v354_v46 = vpop.f32.mrf.mxu0 }
  0xfa   :  { %2223 = vmatprep.subr.msk.bf16.mxu1 %vm373_vm2, %v370_v27 }
  0xfb   :  { %v2095_v49 = vpop.f32.mrf.mxu0 }
  0xfc   :  { %103 = vperm.xlu0 %2240, %v96_v54  }
 0x101   :  { %2106 = vmatpush3.bf16.xpose.msra.mxu1 %v381_v55  ;;  %v1931_v55 = vld [vmem:[%s3074_s29] ss:$0 sm:$0xff] }
 0x108   :  { %2108 = vmatmul.mubr.msk.bf16.vlgmr.msra.gmra.mxu1 %vm373_vm2, %v369_v52  ;;  %v357_v52 = vpop.f32.mrf.mxu0 }
 0x109   :  { %v358_v58 = vadd.f32 %v1931_v55, %v357_v52 }
 0x10a   :  { %v2096_v56 = vpop.f32.mrf.mxu0 }
 0x156   :  { %v550_v57 = vpop.permute.xlu1 %549 }
 0x157   :  { %v562_v0 = vsel %vm373_vm2, %v550_v57, 0 }
 0x15b   :  { %v543_v59 = vpop.permute.xlu1 %542 }
 0x15c   :  { %2127 = vmatprep.mubr.msk.bf16.mxu1 %vm373_vm2, %v543_v59  ;;  %v362_v59 = vpop.f32.mrf.mxu0 }
 0x162   :  { %v554_v60 = vpop.permute.xlu0 %553 }
 0x163   :  { %v568_v61 = vsel %vm373_vm2, %v554_v60, 0  ;;  %2225 = vmatprep.subr.msk.bf16.mxu1 %vm373_vm2, %v554_v60  ;;  %v363_v60 = vadd.f32 %v1931_v55, %v362_v59  ;;  %v2252_v59 = vld [vmem:[%s3075_s6 + $0x8] sm:$0xff]  }
 0x164   :  { %2122 = vmatpush3.bf16.xpose.msra.mxu1 %v568_v61  ;;  %v2099_v61 = vpop.f32.mrf.mxu0 }
 0x166   :  { %v552_v62 = vpop.permute.xlu0 %551 }
 0x167   :  { %2226 = vmatprep.subr.msk.bf16.mxu1 %vm373_vm2, %v552_v62  ;;  %v565_v63 = vsel %vm373_vm2, %v552_v62, 0  ;;  %v347_v62 = vadd.f32 %v1931_v55, %v346_v39 }
 0x168   :  { %v101_v3 = vpop.permute.xlu1 %100 }
 0x169   :  { %vm112_vm3 = vcmp.eq.s32.totalorder %v101_v3, %v1919_v4  ;;  %v365_v3 = vpop.f32.mrf.mxu0 }
 0x16a   :  { %v545_v2 = vpop.permute.xlu0 %544  ;;  %v115_v7 = vsel %vm112_vm3, 0.0, %v2374_v6 }
 0x16c   :  { %2124 = vmatpush3.bf16.xpose.msra.mxu1 %v565_v63  ;;  %v107_v11 = vpop.permute.xlu1 %106  ;;  %v350_v63 = vadd.f32 %v1931_v55, %v349_v41 }
 0x16d   :  { %2227 = vmatprep.subr.msk.bf16.mxu1 %vm373_vm2, %v550_v57  ;;  %vm114_vm5 = vcmp.eq.s32.totalorder %v107_v11, %v1919_v4  ;;  %v355_v57 = vadd.f32 %v1931_v55, %v354_v46 }
 0x16e   :  { %v117_v21 = vsel %vm114_vm5, 0.0, %v2374_v6 }
 0x174   :  { %2126 = vmatpush3.bf16.xpose.msra.mxu1 %v562_v0  ;;  %v480_v0 = vpack.c.bf16 %v358_v58, %v355_v57 }
 0x177   :  { %v104_v5 = vpop.permute.xlu0 %103 }
 0x178   :  { %vm113_vm4 = vcmp.eq.s32.totalorder %v104_v5, %v1919_v4  ;;  %v479_v5 = vpack.c.bf16 %v350_v63, %v347_v62 }
 0x179   :  { %v116_v16 = vsel %vm113_vm4, 0.0, %v2374_v6 }
 0x17b   :  { %2128 = vmatmul.mubr.msk.bf16.vlgmr.msra.gmra.mxu1 %vm373_vm2, %v545_v2  ;;  %v481_v2 = vpack.c.bf16 %v363_v60, %v363_v60  ;;  %v2253_v60 = vld [vmem:[%s3075_s6] sm:$0xff]  }
 0x17d   :  { %2224 = vmatprep.subr.msk.bf16.mxu0 %vm488_vm7, %v481_v2  ;;  %v490_v4 = vsel %vm488_vm7, %v481_v2, 0 }
 0x17e   :  { %2112 = vmatpush3.bf16.msra.mxu0 %v490_v4 }
 0x17f   :  { %2113 = vmatprep.subr.bf16.mxu0 %v480_v0 }
 0x182   :  { %2114 = vmatpush3.bf16.msra.mxu0 %v480_v0 }
 0x183   :  { %2115 = vmatprep.subr.bf16.mxu0 %v479_v5 }
 0x186   :  { %2116 = vmatpush3.bf16.msra.mxu0 %v479_v5 }
 0x1c8   :  { %v2109_v1 = vpop.f32.mrf.mxu1 }
 0x1c9   :  { %v439_v18 = vmul.f32 0.25, %v2109_v1  ;;  %v2100_v1 = vpop.f32.mrf.mxu0 }
 0x1ca   :  { %v423_v12 = vpop.f32.mrf.mxu1 }
 0x1cb   :  { %v437_v13 = vmul.f32 0.25, %v423_v12  ;;  %v442_v24 = vadd.f32 %v439_v18, %v117_v21 }
 0x1cc   :  { %v2110_v14 = vpop.f32.mrf.mxu1 }
 0x1cd   :  { %v440_v15 = vadd.f32 %v437_v13, %v115_v7  ;;  %v450_v25 = vsel %vm443_vm6, %v442_v24, -inf }
 0x1ce   :  { %v426_v17 = vpop.f32.mrf.mxu1 }
 0x1cf   :  { %v438_v19 = vmul.f32 0.25, %v426_v17  ;;  %v444_v20 = vsel %vm443_vm6, %v440_v15, -inf }
 0x1d0   :  { %445 = vmax.xlane.f32.xlu1 %v444_v20 }
 0x1d1   :  { %v441_v22 = vadd.f32 %v438_v19, %v116_v16 }
 0x1d3   :  { %v447_v23 = vsel %vm443_vm6, %v441_v22, -inf }
 0x1d4   :  { %448 = vmax.xlane.f32.xlu0 %v447_v23 }
 0x1d8   :  { %451 = vmax.xlane.f32.xlu0 %v450_v25 }
 0x23b   :  { %v2129_v26 = vpop.f32.mrf.mxu1 }
 0x23c   :  { %v620_v28 = vmul.f32 0.25, %v2129_v26 }
 0x23d   :  { %v604_v27 = vpop.f32.mrf.mxu1 }
 0x23e   :  { %v618_v29 = vmul.f32 0.25, %v604_v27  ;;  %v2654_v35 = vadd.f32 %v620_v28, %v117_v21 }
 0x23f   :  { %v2130_v30 = vpop.f32.mrf.mxu1 }
 0x240   :  { %v2650_v31 = vadd.f32 %v618_v29, %v115_v7  ;;  %v630_v37 = vsel %vm443_vm6, %v2654_v35, -inf }
 0x241   :  { %v607_v32 = vpop.f32.mrf.mxu1 }
 0x242   :  { %v619_v33 = vmul.f32 0.25, %v607_v32  ;;  %v624_v34 = vsel %vm443_vm6, %v2650_v31, -inf }
 0x243   :  { %625 = vmax.xlane.f32.xlu1 %v624_v34 }
 0x244   :  { %v2656_v36 = vadd.f32 %v619_v33, %v116_v16 }
 0x246   :  { %v627_v38 = vsel %vm443_vm6, %v2656_v36, -inf }
 0x247   :  { %631 = vmax.xlane.f32.xlu1 %v630_v37  ;;  %628 = vmax.xlane.f32.xlu0 %v627_v38 }
 0x259   :  { %v446_v43 = vpop.xlane.xlu1 %445 }
 0x25a   :  { %v453_v47 = vsub.f32 %v440_v15, %v446_v43 }
 0x25c   :  { %v456_v53 = vmul.f32 1.442695, %v453_v47 }
 0x25d   :  { %v449_v44 = vpop.xlane.xlu0 %448 }
 0x25e   :  { %v454_v45 = vsub.f32 %v441_v22, %v449_v44 }
 0x260   :  { %v458_v48 = vmul.f32 1.442695, %v454_v45 }
 0x261   :  { %v452_v50 = vpop.xlane.xlu0 %451 }
 0x262   :  { %2264 = vpow2.f32 %v458_v48  ;;  %v455_v51 = vsub.f32 %v442_v24, %v452_v50 }
 0x264   :  { %v460_v54 = vmul.f32 1.442695, %v455_v51 }
 0x266   :  { %2266 = vpow2.f32 %v460_v54 }
 0x267   :  { %2268 = vpow2.f32 %v456_v53 }
 0x26f   :  { %v2265_v6 = vpop.eup %2264 }
 0x270   :  { %v465_v7 = vsel %vm443_vm6, %v2265_v6, 0.0 }
 0x271   :  { %466 = vadd.xlane.f32.xlu1 %v465_v7 }
 0x273   :  { %v2267_v11 = vpop.eup %2266 }
 0x274   :  { %v468_v12 = vsel %vm443_vm6, %v2267_v11, 0.0  ;;  %v2269_v13 = vpop.eup %2268 }
 0x275   :  { %469 = vadd.xlane.f32.xlu0 %v468_v12  ;;  %v462_v14 = vsel %vm443_vm6, %v2269_v13, 0.0 }
 0x279   :  { %463 = vadd.xlane.f32.xlu0 %v462_v14 }
 0x2cc   :  { %v626_v15 = vpop.xlane.xlu1 %625 }
 0x2cd   :  { %v633_v16 = vsub.f32 %v2650_v31, %v626_v15  ;;  %v2699_v15 = vld [vmem:[%s3030_s12 + $0x8] sm:$0xff]  }
 0x2ce   :  { %2149 = vmatprep.subr.bf16.mxu1 %v2699_v15 }
 0x2cf   :  { %v636_v21 = vmul.f32 1.442695, %v633_v16  ;;  %2150 = vmatpush3.bf16.msra.mxu1 %v2699_v15  ;;  %v2706_v16 = vld [vmem:[%s3030_s12] sm:$0xff]  }
 0x2d0   :  { %v632_v17 = vpop.xlane.xlu1 %631  ;;  %v629_v18 = vpop.xlane.xlu0 %628  ;;  %2151 = vmatprep.subr.bf16.mxu1 %v2706_v16 }
 0x2d1   :  { %v635_v19 = vsub.f32 %v2654_v35, %v632_v17  ;;  %v634_v20 = vsub.f32 %v2656_v36, %v629_v18  ;;  %v1945_v18 = vld [vmem:[%s3076_s28] ss:$0 sm:$0xff] }
 0x2d3   :  { %v640_v22 = vmul.f32 1.442695, %v635_v19  ;;  %v638_v23 = vmul.f32 1.442695, %v634_v20  ;;  %2152 = vmatpush3.bf16.msra.mxu1 %v2706_v16 }
 0x2d5   :  { %2270 = vpow2.f32 %v640_v22 }
 0x2d6   :  { %2272 = vpow2.f32 %v638_v23 }
 0x2d7   :  { %2274 = vpow2.f32 %v636_v21 }
 0x2e2   :  { %v2271_v24 = vpop.eup %2270 }
 0x2e3   :  { %v2273_v25 = vpop.eup %2272  ;;  %v648_v26 = vsel %vm443_vm6, %v2271_v24, 0.0 }
 0x2e4   :  { %v2275_v27 = vpop.eup %2274  ;;  %649 = vadd.xlane.f32.xlu1 %v648_v26  ;;  %v645_v28 = vsel %vm443_vm6, %v2273_v25, 0.0 }
 0x2e5   :  { %646 = vadd.xlane.f32.xlu0 %v645_v28  ;;  %v642_v29 = vsel %vm443_vm6, %v2275_v27, 0.0 }
 0x2e8   :  { %643 = vadd.xlane.f32.xlu1 %v642_v29 }
 0x2f9   :  { %664 = vrot.lane.b32.xlu1 %v480_v0, %s2373_s9 }
 0x2fa   :  { %v467_v30 = vpop.xlane.xlu1 %466 }
 0x2fb   :  { %666 = vrot.lane.b32.xlu0 %v481_v2, %s2373_s9 }
 0x2fd   :  { %662 = vrot.lane.b32.xlu1 %v479_v5, %s2373_s9 }
 0x2fe   :  { %v470_v31 = vpop.xlane.xlu0 %469 }
 0x2ff   :  { %2276 = vrcp.f32 %v470_v31 }
 0x300   :  { %2278 = vrcp.f32 %v467_v30 }
 0x302   :  { %v464_v32 = vpop.xlane.xlu0 %463 }
 0x303   :  { %2280 = vrcp.f32 %v464_v32 }
 0x30c   :  { %v2277_v33 = vpop.eup %2276 }
 0x30d   :  { %v2279_v34 = vpop.eup %2278  ;;  %v476_v36 = vmul.f32 %v2277_v33, %v2267_v11 }
 0x30e   :  { %v475_v38 = vmul.f32 %v2279_v34, %v2265_v6 }
 0x30f   :  { %v478_v40 = vpack.c.bf16 %v476_v36, %v476_v36 }
 0x310   :  { %v2281_v35 = vpop.eup %2280 }
 0x311   :  { %v474_v37 = vmul.f32 %v2281_v35, %v2269_v13 }
 0x313   :  { %v477_v39 = vpack.c.bf16 %v475_v38, %v474_v37 }
 0x315   :  { %2117 = vmatprep.mubr.msk.bf16.mxu0 %vm443_vm6, %v477_v39 }
 0x316   :  { %2118 = vmatmul.mubr.msk.bf16.vlgmr.msra.gmra.mxu0 %vm443_vm6, %v478_v40 }
 0x36d   :  { %v650_v41 = vpop.xlane.xlu1 %649 }
 0x36e   :  { %v647_v42 = vpop.xlane.xlu0 %646  ;;  %2282 = vrcp.f32 %v650_v41 }
 0x36f   :  { %2284 = vrcp.f32 %v647_v42 }
 0x371   :  { %v644_v43 = vpop.xlane.xlu1 %643 }
 0x372   :  { %2286 = vrcp.f32 %v644_v43  ;;  %v667_v44 = vpop.permute.xlu0 %666 }
 0x373   :  { %v677_v45 = vsel %vm488_vm7, %v667_v44, 0  ;;  %2228 = vmatprep.subr.msk.bf16.mxu0 %vm488_vm7, %v667_v44 }
 0x374   :  { %2132 = vmatpush3.bf16.msra.mxu0 %v677_v45 }
 0x375   :  { %v665_v46 = vpop.permute.xlu1 %664 }
 0x376   :  { %2133 = vmatprep.subr.bf16.mxu0 %v665_v46 }
 0x378   :  { %2134 = vmatpush3.bf16.msra.mxu0 %v665_v46 }
 0x379   :  { %v663_v47 = vpop.permute.xlu1 %662 }
 0x37a   :  { %2135 = vmatprep.subr.bf16.mxu0 %v663_v47 }
 0x37b   :  { %v2283_v48 = vpop.eup %2282 }
 0x37c   :  { %2136 = vmatpush3.bf16.msra.mxu0 %v663_v47  ;;  %v2285_v49 = vpop.eup %2284  ;;  %v656_v51 = vmul.f32 %v2283_v48, %v2271_v24 }
 0x37d   :  { %v655_v53 = vmul.f32 %v2285_v49, %v2273_v25  ;;  %2141 = vmatprep.subr.bf16.mxu0 %v2252_v59 }
 0x37e   :  { %v658_v55 = vpack.c.bf16 %v656_v51, %v656_v51 }
 0x37f   :  { %v2287_v50 = vpop.eup %2286 }
 0x380   :  { %v654_v52 = vmul.f32 %v2287_v50, %v2275_v27 }
 0x382   :  { %v657_v54 = vpack.c.bf16 %v655_v53, %v654_v52 }
 0x384   :  { %2137 = vmatprep.mubr.msk.bf16.mxu0 %vm443_vm6, %v657_v54 }
 0x385   :  { %2138 = vmatmul.mubr.msk.bf16.vlgmr.msra.gmra.mxu0 %vm443_vm6, %v658_v55 }
 0x386   :  { %2142 = vmatpush3.bf16.msra.mxu0 %v2252_v59 }
 0x387   :  { %2143 = vmatprep.subr.bf16.mxu0 %v2253_v60 }
 0x38a   :  { %2144 = vmatpush3.bf16.msra.mxu0 %v2253_v60 }
 0x3d6   :  { %v2119_v56 = vpop.f32.mrf.mxu0 }
 0x3d8   :  { %v526_v57 = vpop.f32.mrf.mxu0 }
 0x3da   :  { %v2120_v58 = vpop.f32.mrf.mxu0 }
 0x3dc   :  { %v529_v61 = vpop.f32.mrf.mxu0 }
 0x445   :  { %v2139_v62 = vpop.f32.mrf.mxu0 }
 0x446   :  { %734 = vrot.lane.b32.xlu1 %v2139_v62, %s2375_s3 }
 0x447   :  { %v713_v63 = vpop.f32.mrf.mxu0 }
 0x449   :  { %v2140_v0 = vpop.f32.mrf.mxu0 }
 0x44b   :  { %v716_v2 = vpop.f32.mrf.mxu0 }
 0x44c   :  { %v2241_v3 = vpack.i.bf16 %v716_v2, %v713_v63 }
 0x44e   :  { %2242 = vrot.lane.b32.xlu0 %v2241_v3, %s2375_s3 }
 0x4b8   :  { %v735_v4 = vpop.permute.xlu1 %734 }
 0x4b9   :  { %v741_v7 = vsel %vm373_vm2, %v2119_v56, %v735_v4 }
 0x4ba   :  { %v743_v14 = vpack.c.bf16 %v741_v7, %v741_v7 }
 0x4c0   :  { %v2243_v1 = vpop.permute.xlu0 %2242 }
 0x4c1   :  { %v2245_v5 = vunpack.i.h.bf16 %v2243_v1  ;;  %v2244_v6 = vunpack.i.l.bf16 %v2243_v1 }
 0x4c3   :  { %v740_v11 = vsel %vm373_vm2, %v529_v61, %v2245_v5  ;;  %v739_v12 = vsel %vm373_vm2, %v526_v57, %v2244_v6 }
 0x4c4   :  { %v742_v13 = vpack.c.bf16 %v740_v11, %v739_v12 }
 0x4c6   :  { %2145 = vmatprep.mubr.msk.bf16.mxu0 %vm146_vm1, %v742_v13 }
 0x4c7   :  { %2146 = vmatmul.mubr.msk.bf16.vlgmr.msra.gmra.mxu0 %vm146_vm1, %v743_v14 }
 0x587   :  { %v2147_v17 = vpop.f32.mrf.mxu0 }
 0x588   :  { %v816_v20 = vadd.f32 %v2147_v17, %v1945_v18 }
 0x589   :  { %v807_v19 = vpop.f32.mrf.mxu0 }
 0x58a   :  { %v808_v22 = vadd.f32 %v1945_v18, %v807_v19  ;;  %v2714_v25 = vadd.f32 %v816_v20, %v2557_v10  ;;  %v2731_v10 = vld [vmem:[%s3032_s14 + $0x8] sm:$0xff]  }
 0x58b   :  { %v2148_v21 = vpop.f32.mrf.mxu0  ;;  %2157 = vmatprep.subr.bf16.mxu0 %v2731_v10 }
 0x58c   :  { %v2717_v26 = vadd.f32 %v808_v22, %v2547_v8  ;;  %v825_v29 = vpack.c.bf16 %v2714_v25, %v2714_v25  ;;  %2158 = vmatpush3.bf16.msra.mxu0 %v2731_v10  ;;  %v2738_v8 = vld [vmem:[%s3032_s14] sm:$0xff]  }
 0x58d   :  { %v810_v23 = vpop.f32.mrf.mxu0  ;;  %2159 = vmatprep.subr.bf16.mxu0 %v2738_v8 }
 0x58e   :  { %v811_v24 = vadd.f32 %v1945_v18, %v810_v23 }
 0x590   :  { %v2720_v27 = vadd.f32 %v811_v24, %v2552_v9  ;;  %2160 = vmatpush3.bf16.msra.mxu0 %v2738_v8  ;;  %v2745_v9 = vld [vmem:[%s3031_s13] ss:$0 sm:$0xff] }
 0x592   :  { %v824_v28 = vpack.c.bf16 %v2720_v27, %v2717_v26 }
 0x594   :  { %2153 = vmatprep.mubr.msk.bf16.mxu1 %vm146_vm1, %v824_v28 }
 0x595   :  { %2154 = vmatmul.mubr.msk.bf16.vlgmr.msra.gmra.mxu1 %vm146_vm1, %v825_v29 }
 0x655   :  { %v2155_v30 = vpop.f32.mrf.mxu1 }
 0x656   :  { %v2748_v31 = vadd.f32 %v2155_v30, %v2745_v9 }
 0x657   :  { %v889_v32 = vpop.f32.mrf.mxu1 }
 0x658   :  { %v2751_v33 = vmul.f32 0.70710677, %v2748_v31  ;;  %v2754_v34 = vadd.f32 %v2745_v9, %v889_v32 }
 0x659   :  { %v2156_v35 = vpop.f32.mrf.mxu1 }
 0x65a   :  { %v917_v36 = vand.u32 2147483647, %v2751_v33  ;;  %v2758_v37 = vmul.f32 0.70710677, %v2754_v34  ;;  %vm911_vm8 = vcmp.ge.f32.partialorder %v2751_v33, 0.0 }
 0x65b   :  { %v892_v38 = vpop.f32.mrf.mxu1 }
 0x65c   :  { %v920_v39 = vmul.f32 0.3275911, %v917_v36  ;;  %v915_v40 = vand.u32 2147483647, %v2758_v37  ;;  %v2762_v41 = vadd.f32 %v2745_v9, %v892_v38  ;;  %v959_v49 = vsub.f32 0.0, %v917_v36 }
 0x65d   :  { %vm909_vm9 = vcmp.ge.f32.partialorder %v2758_v37, 0.0 }
 0x65e   :  { %v923_v42 = vadd.f32 1.0, %v920_v39  ;;  %v918_v43 = vmul.f32 0.3275911, %v915_v40  ;;  %v2765_v44 = vmul.f32 0.70710677, %v2762_v41  ;;  %v957_v50 = vsub.f32 0.0, %v915_v40 }
 0x65f   :  { %v962_v51 = vmul.f32 %v959_v49, %v917_v36 }
 0x660   :  { %2288 = vrcp.f32 %v923_v42  ;;  %v921_v45 = vadd.f32 1.0, %v918_v43  ;;  %v916_v46 = vand.u32 2147483647, %v2765_v44  ;;  %v960_v53 = vmul.f32 %v957_v50, %v915_v40 }
 0x661   :  { %v967_v56 = vmul.f32 1.442695, %v962_v51  ;;  %v2376_v40 = vmov -1.0   ;;  %vm910_vm10 = vcmp.ge.f32.partialorder %v2765_v44, 0.0  ;;  %v2782_v44 = vld [vmem:[%s3034_s16 + $0x8] sm:$0xff]  }
 0x662   :  { %2290 = vrcp.f32 %v921_v45  ;;  %v919_v47 = vmul.f32 0.3275911, %v916_v46  ;;  %v958_v54 = vsub.f32 0.0, %v916_v46  ;;  %v963_v60 = vmul.f32 1.442695, %v960_v53  ;;  %2165 = vmatprep.subr.bf16.mxu1 %v2782_v44 }
 0x663   :  { %v914_v42 = vsel %vm911_vm8, 1.0, %v2376_v40  ;;  %2166 = vmatpush3.bf16.msra.mxu1 %v2782_v44 }
 0x664   :  { %v922_v48 = vadd.f32 1.0, %v919_v47  ;;  %v961_v61 = vmul.f32 %v958_v54, %v916_v46  ;;  %v905_v54 = vmul.f32 0.5, %v2748_v31  ;;  %v2789_v31 = vld [vmem:[%s3034_s16] sm:$0xff]  }
 0x665   :  { %2167 = vmatprep.subr.bf16.mxu1 %v2789_v31 }
 0x666   :  { %2292 = vrcp.f32 %v922_v48  ;;  %v965_v1 = vmul.f32 1.442695, %v961_v61  ;;  %v912_v48 = vsel %vm909_vm9, 1.0, %v2376_v40 }
 0x667   :  { %2294 = vpow2.f32 %v967_v56  ;;  %v904_v56 = vmul.f32 0.5, %v2762_v41  ;;  %2168 = vmatpush3.bf16.msra.mxu1 %v2789_v31 }
 0x668   :  { %2296 = vpow2.f32 %v963_v60  ;;  %2181 = vmatprep.subr.bf16.mxu1 %v2699_v15 }
 0x669   :  { %2298 = vpow2.f32 %v965_v1 }
 0x66d   :  { %v2289_v52 = vpop.eup %2288 }
 0x66e   :  { %v932_v55 = vmul.f32 1.0614054, %v2289_v52 }
 0x66f   :  { %v2291_v57 = vpop.eup %2290 }
 0x670   :  { %v935_v58 = vadd.f32 -1.4531521, %v932_v55  ;;  %v930_v59 = vmul.f32 1.0614054, %v2291_v57  ;;  %v903_v55 = vmul.f32 0.5, %v2754_v34 }
 0x672   :  { %v938_v62 = vmul.f32 %v2289_v52, %v935_v58  ;;  %v933_v63 = vadd.f32 -1.4531521, %v930_v59 }
 0x673   :  { %v2293_v0 = vpop.eup %2292 }
 0x674   :  { %v941_v2 = vadd.f32 1.4214138, %v938_v62  ;;  %v936_v3 = vmul.f32 %v2291_v57, %v933_v63  ;;  %v931_v4 = vmul.f32 1.0614054, %v2293_v0  ;;  %v2295_v23 = vpop.eup %2294  ;;  %v2797_v63 = vld [vmem:[%s3033_s15] ss:$0 sm:$0xff] }
 0x675   :  { %v2297_v35 = vpop.eup %2296 }
 0x676   :  { %v944_v5 = vmul.f32 %v2289_v52, %v941_v2  ;;  %v939_v6 = vadd.f32 1.4214138, %v936_v3  ;;  %v934_v7 = vadd.f32 -1.4531521, %v931_v4  ;;  %v2299_v46 = vpop.eup %2298 }
 0x678   :  { %v947_v11 = vadd.f32 -0.28449672, %v944_v5  ;;  %v942_v12 = vmul.f32 %v2291_v57, %v939_v6  ;;  %v937_v13 = vmul.f32 %v2293_v0, %v934_v7  ;;  %v2811_v7 = vld [vmem:[%s3036_s18 + $0x8] sm:$0xff]  }
 0x679   :  { %2173 = vmatprep.subr.bf16.mxu0 %v2811_v7 }
 0x67a   :  { %v950_v14 = vmul.f32 %v2289_v52, %v947_v11  ;;  %v945_v17 = vadd.f32 -0.28449672, %v942_v12  ;;  %v940_v18 = vadd.f32 1.4214138, %v937_v13  ;;  %v2818_v11 = vld [vmem:[%s3036_s18] sm:$0xff]  }
 0x67c   :  { %v953_v19 = vadd.f32 0.2548296, %v950_v14  ;;  %v948_v20 = vmul.f32 %v2291_v57, %v945_v17  ;;  %v943_v21 = vmul.f32 %v2293_v0, %v940_v18 }
 0x67e   :  { %v956_v22 = vmul.f32 %v2289_v52, %v953_v19  ;;  %v951_v24 = vadd.f32 0.2548296, %v948_v20  ;;  %v946_v28 = vadd.f32 -0.28449672, %v943_v21  ;;  %v913_v52 = vsel %vm910_vm10, 1.0, %v2376_v40 }
 0x680   :  { %v971_v29 = vmul.f32 %v2295_v23, %v956_v22  ;;  %v954_v30 = vmul.f32 %v2291_v57, %v951_v24  ;;  %v949_v32 = vmul.f32 %v2293_v0, %v946_v28 }
 0x682   :  { %v974_v36 = vsub.f32 1.0, %v971_v29  ;;  %v969_v38 = vmul.f32 %v2297_v35, %v954_v30  ;;  %v952_v39 = vadd.f32 0.2548296, %v949_v32 }
 0x684   :  { %v972_v43 = vsub.f32 1.0, %v969_v38  ;;  %v955_v45 = vmul.f32 %v2293_v0, %v952_v39  ;;  %v977_v47 = vmul.f32 %v974_v36, %v914_v42 }
 0x686   :  { %v975_v49 = vmul.f32 %v972_v43, %v912_v48  ;;  %v970_v50 = vmul.f32 %v2299_v46, %v955_v45  ;;  %v980_v33 = vadd.f32 1.0, %v977_v47 }
 0x688   :  { %v973_v51 = vsub.f32 1.0, %v970_v50  ;;  %v978_v37 = vadd.f32 1.0, %v975_v49  ;;  %v983_v58 = vmul.f32 %v980_v33, %v905_v54 }
 0x68a   :  { %v976_v53 = vmul.f32 %v973_v51, %v913_v52  ;;  %v981_v59 = vmul.f32 %v978_v37, %v903_v55  ;;  %v985_v62 = vpack.c.bf16 %v983_v58, %v983_v58 }
 0x68c   :  { %v979_v57 = vadd.f32 1.0, %v976_v53 }
 0x68e   :  { %v982_v60 = vmul.f32 %v979_v57, %v904_v56 }
 0x690   :  { %v984_v61 = vpack.c.bf16 %v982_v60, %v981_v59 }
 0x692   :  { %2161 = vmatprep.mubr.msk.bf16.mxu0 %vm146_vm1, %v984_v61 }
 0x693   :  { %2162 = vmatmul.mubr.msk.bf16.vlgmr.msra.gmra.mxu0 %vm146_vm1, %v985_v62 }
 0x694   :  { %2174 = vmatpush3.bf16.msra.mxu0 %v2811_v7 }
 0x695   :  { %2175 = vmatprep.subr.bf16.mxu0 %v2818_v11 }
 0x698   :  { %2176 = vmatpush3.bf16.msra.mxu0 %v2818_v11 }
 0x699   :  { %2189 = vmatprep.subr.bf16.mxu0 %v2731_v10 }
 0x753   :  { %v2163_v34 = vpop.f32.mrf.mxu0 }
 0x754   :  { %v1058_v2 = vadd.f32 %v2163_v34, %v2797_v63 }
 0x755   :  { %v1049_v41 = vpop.f32.mrf.mxu0 }
 0x756   :  { %v1050_v4 = vadd.f32 %v2797_v63, %v1049_v41  ;;  %v1064_v6 = vpack.c.bf16 %v1058_v2, %v1058_v2 }
 0x757   :  { %v2164_v0 = vpop.f32.mrf.mxu0 }
 0x759   :  { %v1052_v3 = vpop.f32.mrf.mxu0 }
 0x75a   :  { %v1053_v1 = vadd.f32 %v2797_v63, %v1052_v3 }
 0x75c   :  { %v1063_v5 = vpack.c.bf16 %v1053_v1, %v1050_v4 }
 0x75e   :  { %2169 = vmatprep.mubr.msk.bf16.mxu1 %vm146_vm1, %v1063_v5 }
 0x75f   :  { %2170 = vmatmul.mubr.msk.bf16.vlgmr.msra.gmra.mxu1 %vm146_vm1, %v1064_v6 }
 0x760   :  { %2182 = vmatpush3.bf16.msra.mxu1 %v2699_v15  ;;  %v2826_v15 = vld [vmem:[%s3035_s17] ss:$0 sm:$0xff] }
 0x761   :  { %2183 = vmatprep.subr.bf16.mxu1 %v2706_v16 }
 0x764   :  { %2184 = vmatpush3.bf16.msra.mxu1 %v2706_v16 }
 0x765   :  { %2197 = vmatprep.subr.bf16.mxu1 %v2782_v44 }
 0x81f   :  { %v2171_v16 = vpop.f32.mrf.mxu1 }
 0x820   :  { %v2829_v12 = vadd.f32 %v2171_v16, %v2826_v15 }
 0x821   :  { %v1128_v13 = vpop.f32.mrf.mxu1 }
 0x822   :  { %v2832_v14 = vmul.f32 0.70710677, %v2829_v12  ;;  %v2835_v17 = vadd.f32 %v2826_v15, %v1128_v13 }
 0x823   :  { %v2172_v18 = vpop.f32.mrf.mxu1 }
 0x824   :  { %v1156_v19 = vand.u32 2147483647, %v2832_v14  ;;  %v2839_v20 = vmul.f32 0.70710677, %v2835_v17  ;;  %vm1150_vm11 = vcmp.ge.f32.partialorder %v2832_v14, 0.0 }
 0x825   :  { %v1131_v21 = vpop.f32.mrf.mxu1 }
 0x826   :  { %v1159_v22 = vmul.f32 0.3275911, %v1156_v19  ;;  %v1154_v23 = vand.u32 2147483647, %v2839_v20  ;;  %v2843_v24 = vadd.f32 %v2826_v15, %v1131_v21  ;;  %v1198_v39 = vsub.f32 0.0, %v1156_v19 }
 0x827   :  { %vm1148_vm12 = vcmp.ge.f32.partialorder %v2839_v20, 0.0 }
 0x828   :  { %v1162_v28 = vadd.f32 1.0, %v1159_v22  ;;  %v1157_v29 = vmul.f32 0.3275911, %v1154_v23  ;;  %v2846_v30 = vmul.f32 0.70710677, %v2843_v24  ;;  %v1196_v42 = vsub.f32 0.0, %v1154_v23 }
 0x829   :  { %v1201_v43 = vmul.f32 %v1198_v39, %v1156_v19 }
 0x82a   :  { %2300 = vrcp.f32 %v1162_v28  ;;  %v1160_v32 = vadd.f32 1.0, %v1157_v29  ;;  %v1155_v35 = vand.u32 2147483647, %v2846_v30  ;;  %v1199_v46 = vmul.f32 %v1196_v42, %v1154_v23 }
 0x82b   :  { %v1206_v49 = vmul.f32 1.442695, %v1201_v43  ;;  %vm1149_vm13 = vcmp.ge.f32.partialorder %v2846_v30, 0.0 }
 0x82c   :  { %2302 = vrcp.f32 %v1160_v32  ;;  %v1158_v36 = vmul.f32 0.3275911, %v1155_v35  ;;  %v1197_v47 = vsub.f32 0.0, %v1155_v35  ;;  %v1202_v52 = vmul.f32 1.442695, %v1199_v46 }
 0x82d   :  { %v1152_v14 = vsel %vm1149_vm13, 1.0, %v2376_v40 }
 0x82e   :  { %v1161_v38 = vadd.f32 1.0, %v1158_v36  ;;  %v1200_v37 = vmul.f32 %v1197_v47, %v1155_v35  ;;  %v1153_v36 = vsel %vm1150_vm11, 1.0, %v2376_v40 }
 0x830   :  { %2304 = vrcp.f32 %v1161_v38  ;;  %v1204_v59 = vmul.f32 1.442695, %v1200_v37 }
 0x831   :  { %2306 = vpow2.f32 %v1206_v49 }
 0x832   :  { %2308 = vpow2.f32 %v1202_v52  ;;  %v1143_v52 = vmul.f32 0.5, %v2843_v24 }
 0x833   :  { %2310 = vpow2.f32 %v1204_v59 }
 0x837   :  { %v2301_v45 = vpop.eup %2300 }
 0x838   :  { %v1171_v48 = vmul.f32 1.0614054, %v2301_v45 }
 0x839   :  { %v2303_v50 = vpop.eup %2302 }
 0x83a   :  { %v1174_v51 = vadd.f32 -1.4531521, %v1171_v48  ;;  %v1169_v33 = vmul.f32 1.0614054, %v2303_v50 }
 0x83c   :  { %v1177_v53 = vmul.f32 %v2301_v45, %v1174_v51  ;;  %v1172_v54 = vadd.f32 -1.4531521, %v1169_v33  ;;  %v1144_v51 = vmul.f32 0.5, %v2829_v12  ;;  %v1142_v33 = vmul.f32 0.5, %v2835_v17  ;;  %v2867_v17 = vld [vmem:[%s3037_s19] ss:$0 sm:$0xff] }
 0x83d   :  { %v2305_v55 = vpop.eup %2304 }
 0x83e   :  { %v1180_v56 = vadd.f32 1.4214138, %v1177_v53  ;;  %v1175_v57 = vmul.f32 %v2303_v50, %v1172_v54  ;;  %v1170_v58 = vmul.f32 1.0614054, %v2305_v55  ;;  %v2307_v13 = vpop.eup %2306 }
 0x83f   :  { %v2309_v28 = vpop.eup %2308 }
 0x840   :  { %v1183_v60 = vmul.f32 %v2301_v45, %v1180_v56  ;;  %v1178_v61 = vadd.f32 1.4214138, %v1175_v57  ;;  %v1173_v62 = vadd.f32 -1.4531521, %v1170_v58  ;;  %v2311_v42 = vpop.eup %2310 }
 0x842   :  { %v1186_v34 = vadd.f32 -0.28449672, %v1183_v60  ;;  %v1181_v41 = vmul.f32 %v2303_v50, %v1178_v61  ;;  %v1176_v0 = vmul.f32 %v2305_v55, %v1173_v62 }
 0x844   :  { %v1189_v2 = vmul.f32 %v2301_v45, %v1186_v34  ;;  %v1184_v3 = vadd.f32 -0.28449672, %v1181_v41  ;;  %v1179_v4 = vadd.f32 1.4214138, %v1176_v0 }
 0x846   :  { %v1192_v1 = vadd.f32 0.2548296, %v1189_v2  ;;  %v1187_v5 = vmul.f32 %v2303_v50, %v1184_v3  ;;  %v1182_v6 = vmul.f32 %v2305_v55, %v1179_v4 }
 0x848   :  { %v1195_v16 = vmul.f32 %v2301_v45, %v1192_v1  ;;  %v1190_v18 = vadd.f32 0.2548296, %v1187_v5  ;;  %v1185_v19 = vadd.f32 -0.28449672, %v1182_v6  ;;  %v1151_v45 = vsel %vm1148_vm12, 1.0, %v2376_v40 }
 0x84a   :  { %v1210_v21 = vmul.f32 %v2307_v13, %v1195_v16  ;;  %v1193_v22 = vmul.f32 %v2303_v50, %v1190_v18  ;;  %v1188_v23 = vmul.f32 %v2305_v55, %v1185_v19 }
 0x84c   :  { %v1213_v29 = vsub.f32 1.0, %v1210_v21  ;;  %v1208_v32 = vmul.f32 %v2309_v28, %v1193_v22  ;;  %v1191_v35 = vadd.f32 0.2548296, %v1188_v23 }
 0x84e   :  { %v1211_v38 = vsub.f32 1.0, %v1208_v32  ;;  %v1194_v39 = vmul.f32 %v2305_v55, %v1191_v35  ;;  %v1216_v43 = vmul.f32 %v1213_v29, %v1153_v36 }
 0x850   :  { %v1214_v46 = vmul.f32 %v1211_v38, %v1151_v45  ;;  %v1209_v47 = vmul.f32 %v2311_v42, %v1194_v39  ;;  %v1219_v49 = vadd.f32 1.0, %v1216_v43 }
 0x852   :  { %v1212_v48 = vsub.f32 1.0, %v1209_v47  ;;  %v1217_v50 = vadd.f32 1.0, %v1214_v46  ;;  %v1222_v53 = vmul.f32 %v1219_v49, %v1144_v51  ;;  %v1970_v46 = vld [vmem:[%s3038_s20] ss:$0 sm:$0xff] }
 0x854   :  { %v1215_v20 = vmul.f32 %v1212_v48, %v1152_v14  ;;  %v1220_v54 = vmul.f32 %v1217_v50, %v1142_v33  ;;  %v1224_v57 = vpack.c.bf16 %v1222_v53, %v1222_v53 }
 0x856   :  { %v1218_v37 = vadd.f32 1.0, %v1215_v20  ;;  %v1971_v20 = vld [vmem:[%s3039_s21] ss:$0 sm:$0xff] }
 0x858   :  { %v1221_v55 = vmul.f32 %v1218_v37, %v1143_v52 }
 0x85a   :  { %v1223_v56 = vpack.c.bf16 %v1221_v55, %v1220_v54 }
 0x85c   :  { %2177 = vmatprep.mubr.msk.bf16.mxu0 %vm146_vm1, %v1223_v56 }
 0x85d   :  { %2178 = vmatmul.mubr.msk.bf16.vlgmr.msra.gmra.mxu0 %vm146_vm1, %v1224_v57 }
 0x85e   :  { %2190 = vmatpush3.bf16.msra.mxu0 %v2731_v10 }
 0x85f   :  { %2191 = vmatprep.subr.bf16.mxu0 %v2738_v8 }
 0x862   :  { %2192 = vmatpush3.bf16.msra.mxu0 %v2738_v8 }
 0x863   :  { %2205 = vmatprep.subr.bf16.mxu0 %v2811_v7 }
 0x91d   :  { %v2179_v12 = vpop.f32.mrf.mxu0 }
 0x91e   :  { %v1297_v30 = vadd.f32 %v2179_v12, %v2867_v17 }
 0x91f   :  { %v1288_v24 = vpop.f32.mrf.mxu0 }
 0x920   :  { %v1289_v58 = vadd.f32 %v2867_v17, %v1288_v24  ;;  %v1304_v62 = vadd.f32 %v1297_v30, %v2714_v25 }
 0x921   :  { %v2180_v59 = vpop.f32.mrf.mxu0 }
 0x922   :  { %v1302_v10 = vadd.f32 %v1289_v58, %v2717_v26  ;;  %v1311_v0 = vsel %vm146_vm1, %v1304_v62, 0.0 }
 0x923   :  { %v1291_v60 = vpop.f32.mrf.mxu0 }
 0x924   :  { %v1292_v61 = vadd.f32 %v2867_v17, %v1291_v60  ;;  %v1305_v8 = vsel %vm146_vm1, %v1302_v10, 0.0 }
 0x925   :  { %1306 = vadd.xlane.f32.xlu0 %v1305_v8 }
 0x926   :  { %v1303_v34 = vadd.f32 %v1292_v61, %v2720_v27 }
 0x928   :  { %v1308_v41 = vsel %vm146_vm1, %v1303_v34, 0.0 }
 0x929   :  { %1309 = vadd.xlane.f32.xlu1 %v1308_v41  ;;  %1312 = vadd.xlane.f32.xlu0 %v1311_v0 }
 0x9ae   :  { %v1307_v2 = vpop.xlane.xlu0 %1306 }
 0x9af   :  { %v1315_v3 = vmul.f32 0.03125, %v1307_v2 }
 0x9b1   :  { %v1318_v4 = vsub.f32 %v1302_v10, %v1315_v3 }
 0x9b2   :  { %v1310_v26 = vpop.xlane.xlu1 %1309  ;;  %v1313_v1 = vpop.xlane.xlu0 %1312 }
 0x9b3   :  { %v1316_v5 = vmul.f32 0.03125, %v1310_v26  ;;  %v1317_v6 = vmul.f32 0.03125, %v1313_v1  ;;  %v1321_v16 = vmul.f32 %v1318_v4, %v1318_v4 }
 0x9b5   :  { %v1319_v13 = vsub.f32 %v1303_v34, %v1316_v5  ;;  %v1320_v18 = vsub.f32 %v1304_v62, %v1317_v6  ;;  %v1324_v25 = vsel %vm146_vm1, %v1321_v16, 0.0 }
 0x9b6   :  { %1325 = vadd.xlane.f32.xlu0 %v1324_v25 }
 0x9b7   :  { %v1322_v27 = vmul.f32 %v1319_v13, %v1319_v13  ;;  %v1323_v19 = vmul.f32 %v1320_v18, %v1320_v18 }
 0x9b9   :  { %v1327_v21 = vsel %vm146_vm1, %v1322_v27, 0.0  ;;  %v1330_v22 = vsel %vm146_vm1, %v1323_v19, 0.0 }
 0x9ba   :  { %1328 = vadd.xlane.f32.xlu1 %v1327_v21  ;;  %1331 = vadd.xlane.f32.xlu0 %v1330_v22 }
 0xa3f   :  { %v1326_v23 = vpop.xlane.xlu0 %1325 }
 0xa40   :  { %v1333_v28 = vmul.f32 0.03125, %v1326_v23 }
 0xa42   :  { %v1336_v29 = vadd.f32 1e-05, %v1333_v28 }
 0xa43   :  { %v1329_v32 = vpop.xlane.xlu1 %1328  ;;  %v1332_v35 = vpop.xlane.xlu0 %1331 }
 0xa44   :  { %2312 = vrsqrt.f32 %v1336_v29  ;;  %v1334_v36 = vmul.f32 0.03125, %v1329_v32  ;;  %v1335_v38 = vmul.f32 0.03125, %v1332_v35 }
 0xa46   :  { %v1337_v39 = vadd.f32 1e-05, %v1334_v36  ;;  %v1338_v42 = vadd.f32 1e-05, %v1335_v38 }
 0xa48   :  { %2314 = vrsqrt.f32 %v1337_v39 }
 0xa49   :  { %2316 = vrsqrt.f32 %v1338_v42 }
 0xa51   :  { %v2313_v43 = vpop.eup %2312 }
 0xa52   :  { %v1342_v45 = vmul.f32 %v2313_v43, %v1318_v4 }
 0xa54   :  { %v1352_v14 = vmul.f32 %v1970_v46, %v1342_v45 }
 0xa55   :  { %v2315_v47 = vpop.eup %2314 }
 0xa56   :  { %v2317_v48 = vpop.eup %2316  ;;  %v1343_v49 = vmul.f32 %v2315_v47, %v1319_v13  ;;  %v2887_v52 = vadd.f32 %v1971_v20, %v1352_v14 }
 0xa57   :  { %v1344_v50 = vmul.f32 %v2317_v48, %v1320_v18 }
 0xa58   :  { %v1353_v51 = vmul.f32 %v1970_v46, %v1343_v49 }
 0xa59   :  { %v1354_v33 = vmul.f32 %v1970_v46, %v1344_v50 }
 0xa5a   :  { %v2889_v37 = vadd.f32 %v1971_v20, %v1353_v51 }
 0xa5b   :  { %v2891_v53 = vadd.f32 %v1971_v20, %v1354_v33 }
 0xa5c   :  { %v1365_v54 = vpack.c.bf16 %v2889_v37, %v2887_v52 }
 0xa5d   :  { %v1366_v55 = vpack.c.bf16 %v2891_v53, %v2891_v53 }
 0xa5e   :  { %2185 = vmatprep.mubr.msk.bf16.mxu1 %vm146_vm1, %v1365_v54 }
 0xa5f   :  { %2186 = vmatmul.mubr.msk.bf16.vlgmr.msra.gmra.mxu1 %vm146_vm1, %v1366_v55 }
 0xa60   :  { %2198 = vmatpush3.bf16.msra.mxu1 %v2782_v44 }
 0xa61   :  { %2199 = vmatprep.subr.bf16.mxu1 %v2789_v31 }
 0xa64   :  { %2200 = vmatpush3.bf16.msra.mxu1 %v2789_v31 }
 0xb1f   :  { %v2187_v56 = vpop.f32.mrf.mxu1 }
 0xb20   :  { %v2903_v57 = vadd.f32 %v2187_v56, %v2745_v9 }
 0xb21   :  { %v1407_v12 = vpop.f32.mrf.mxu1 }
 0xb22   :  { %v2906_v24 = vmul.f32 0.70710677, %v2903_v57  ;;  %v2909_v30 = vadd.f32 %v2745_v9, %v1407_v12 }
 0xb23   :  { %v2188_v58 = vpop.f32.mrf.mxu1 }
 0xb24   :  { %v1435_v59 = vand.u32 2147483647, %v2906_v24  ;;  %v2913_v44 = vmul.f32 0.70710677, %v2909_v30  ;;  %vm1429_vm14 = vcmp.ge.f32.partialorder %v2906_v24, 0.0 }
 0xb25   :  { %v1410_v10 = vpop.f32.mrf.mxu1 }
 0xb26   :  { %v1438_v60 = vmul.f32 0.3275911, %v1435_v59  ;;  %v1433_v31 = vand.u32 2147483647, %v2913_v44  ;;  %v2917_v61 = vadd.f32 %v2745_v9, %v1410_v10  ;;  %v1477_v4 = vsub.f32 0.0, %v1435_v59 }
 0xb27   :  { %vm1427_vm15 = vcmp.ge.f32.partialorder %v2913_v44, 0.0 }
 0xb28   :  { %v1441_v8 = vadd.f32 1.0, %v1438_v60  ;;  %v1436_v62 = vmul.f32 0.3275911, %v1433_v31  ;;  %v2920_v34 = vmul.f32 0.70710677, %v2917_v61  ;;  %v1475_v26 = vsub.f32 0.0, %v1433_v31 }
 0xb29   :  { %v1480_v1 = vmul.f32 %v1477_v4, %v1435_v59 }
 0xb2a   :  { %2318 = vrcp.f32 %v1441_v8  ;;  %v1439_v41 = vadd.f32 1.0, %v1436_v62  ;;  %v1434_v0 = vand.u32 2147483647, %v2920_v34  ;;  %v1478_v6 = vmul.f32 %v1475_v26, %v1433_v31 }
 0xb2b   :  { %v1485_v13 = vmul.f32 1.442695, %v1480_v1  ;;  %v1432_v8 = vsel %vm1429_vm14, 1.0, %v2376_v40  ;;  %vm1428_vm0 = vcmp.ge.f32.partialorder %v2920_v34, 0.0 }
 0xb2c   :  { %2320 = vrcp.f32 %v1439_v41  ;;  %v1437_v2 = vmul.f32 0.3275911, %v1434_v0  ;;  %v1476_v9 = vsub.f32 0.0, %v1434_v0  ;;  %v1481_v19 = vmul.f32 1.442695, %v1478_v6 }
 0xb2d   :  { %v1431_v24 = vsel %vm1428_vm0, 1.0, %v2376_v40 }
 0xb2e   :  { %v1440_v3 = vadd.f32 1.0, %v1437_v2  ;;  %v1479_v21 = vmul.f32 %v1476_v9, %v1434_v0  ;;  %v1423_v9 = vmul.f32 0.5, %v2903_v57 }
 0xb30   :  { %2322 = vrcp.f32 %v1440_v3  ;;  %v1483_v36 = vmul.f32 1.442695, %v1479_v21  ;;  %v1430_v3 = vsel %vm1427_vm15, 1.0, %v2376_v40 }
 0xb31   :  { %2324 = vpow2.f32 %v1485_v13  ;;  %v1422_v13 = vmul.f32 0.5, %v2917_v61 }
 0xb32   :  { %2326 = vpow2.f32 %v1481_v19 }
 0xb33   :  { %2328 = vpow2.f32 %v1483_v36 }
 0xb37   :  { %v2319_v5 = vpop.eup %2318 }
 0xb38   :  { %v1450_v16 = vmul.f32 1.0614054, %v2319_v5 }
 0xb39   :  { %v2321_v18 = vpop.eup %2320 }
 0xb3a   :  { %v1453_v25 = vadd.f32 -1.4531521, %v1450_v16  ;;  %v1448_v27 = vmul.f32 1.0614054, %v2321_v18  ;;  %v1421_v16 = vmul.f32 0.5, %v2909_v30 }
 0xb3c   :  { %v1456_v22 = vmul.f32 %v2319_v5, %v1453_v25  ;;  %v1451_v23 = vadd.f32 -1.4531521, %v1448_v27 }
 0xb3d   :  { %v2323_v28 = vpop.eup %2322 }
 0xb3e   :  { %v1459_v29 = vadd.f32 1.4214138, %v1456_v22  ;;  %v1454_v32 = vmul.f32 %v2321_v18, %v1451_v23  ;;  %v1449_v35 = vmul.f32 1.0614054, %v2323_v28  ;;  %v2325_v33 = vpop.eup %2324 }
 0xb3f   :  { %v2327_v59 = vpop.eup %2326 }
 0xb40   :  { %v1462_v38 = vmul.f32 %v2319_v5, %v1459_v29  ;;  %v1457_v39 = vadd.f32 1.4214138, %v1454_v32  ;;  %v1452_v42 = vadd.f32 -1.4531521, %v1449_v35  ;;  %v2329_v0 = vpop.eup %2328 }
 0xb42   :  { %v1465_v43 = vadd.f32 -0.28449672, %v1462_v38  ;;  %v1460_v45 = vmul.f32 %v2321_v18, %v1457_v39  ;;  %v1455_v46 = vmul.f32 %v2323_v28, %v1452_v42 }
 0xb44   :  { %v1468_v47 = vmul.f32 %v2319_v5, %v1465_v43  ;;  %v1463_v48 = vadd.f32 -0.28449672, %v1460_v45  ;;  %v1458_v49 = vadd.f32 1.4214138, %v1455_v46 }
 0xb46   :  { %v1471_v14 = vadd.f32 0.2548296, %v1468_v47  ;;  %v1466_v50 = vmul.f32 %v2321_v18, %v1463_v48  ;;  %v1461_v20 = vmul.f32 %v2323_v28, %v1458_v49 }
 0xb48   :  { %v1474_v51 = vmul.f32 %v2319_v5, %v1471_v14  ;;  %v1469_v54 = vadd.f32 0.2548296, %v1466_v50  ;;  %v1464_v55 = vadd.f32 -0.28449672, %v1461_v20 }
 0xb4a   :  { %v1489_v56 = vmul.f32 %v2325_v33, %v1474_v51  ;;  %v1472_v12 = vmul.f32 %v2321_v18, %v1469_v54  ;;  %v1467_v58 = vmul.f32 %v2323_v28, %v1464_v55 }
 0xb4c   :  { %v1492_v10 = vsub.f32 1.0, %v1489_v56  ;;  %v1487_v60 = vmul.f32 %v2327_v59, %v1472_v12  ;;  %v1470_v31 = vadd.f32 0.2548296, %v1467_v58 }
 0xb4e   :  { %v1490_v62 = vsub.f32 1.0, %v1487_v60  ;;  %v1473_v41 = vmul.f32 %v2323_v28, %v1470_v31  ;;  %v1495_v2 = vmul.f32 %v1492_v10, %v1432_v8 }
 0xb50   :  { %v1493_v4 = vmul.f32 %v1490_v62, %v1430_v3  ;;  %v1488_v26 = vmul.f32 %v2329_v0, %v1473_v41  ;;  %v1498_v5 = vadd.f32 1.0, %v1495_v2 }
 0xb52   :  { %v1491_v1 = vsub.f32 1.0, %v1488_v26  ;;  %v1496_v6 = vadd.f32 1.0, %v1493_v4  ;;  %v1501_v25 = vmul.f32 %v1498_v5, %v1423_v9 }
 0xb54   :  { %v1494_v44 = vmul.f32 %v1491_v1, %v1431_v24  ;;  %v1499_v27 = vmul.f32 %v1496_v6, %v1421_v16  ;;  %v1503_v22 = vpack.c.bf16 %v1501_v25, %v1501_v25 }
 0xb56   :  { %v1497_v18 = vadd.f32 1.0, %v1494_v44 }
 0xb58   :  { %v1500_v19 = vmul.f32 %v1497_v18, %v1422_v13 }
 0xb5a   :  { %v1502_v21 = vpack.c.bf16 %v1500_v19, %v1499_v27 }
 0xb5c   :  { %2193 = vmatprep.mubr.msk.bf16.mxu0 %vm146_vm1, %v1502_v21 }
 0xb5d   :  { %2194 = vmatmul.mubr.msk.bf16.vlgmr.msra.gmra.mxu0 %vm146_vm1, %v1503_v22 }
 0xb5e   :  { %2206 = vmatpush3.bf16.msra.mxu0 %v2811_v7 }
 0xb5f   :  { %2207 = vmatprep.subr.bf16.mxu0 %v2818_v11 }
 0xb62   :  { %2208 = vmatpush3.bf16.msra.mxu0 %v2818_v11 }
 0xc1d   :  { %v2195_v57 = vpop.f32.mrf.mxu0 }
 0xc1e   :  { %v1553_v61 = vadd.f32 %v2195_v57, %v2797_v63 }
 0xc1f   :  { %v1544_v30 = vpop.f32.mrf.mxu0 }
 0xc20   :  { %v1545_v28 = vadd.f32 %v2797_v63, %v1544_v30  ;;  %v1559_v35 = vpack.c.bf16 %v1553_v61, %v1553_v61 }
 0xc21   :  { %v2196_v34 = vpop.f32.mrf.mxu0 }
 0xc23   :  { %v1547_v23 = vpop.f32.mrf.mxu0 }
 0xc24   :  { %v1548_v29 = vadd.f32 %v2797_v63, %v1547_v23 }
 0xc26   :  { %v1558_v32 = vpack.c.bf16 %v1548_v29, %v1545_v28 }
 0xc28   :  { %2201 = vmatprep.mubr.msk.bf16.mxu1 %vm146_vm1, %v1558_v32 }
 0xc29   :  { %2202 = vmatmul.mubr.msk.bf16.vlgmr.msra.gmra.mxu1 %vm146_vm1, %v1559_v35 }
 0xce9   :  { %v2203_v7 = vpop.f32.mrf.mxu1 }
 0xcea   :  { %v2943_v36 = vadd.f32 %v2203_v7, %v2826_v15 }
 0xceb   :  { %v1600_v11 = vpop.f32.mrf.mxu1 }
 0xcec   :  { %v2946_v38 = vmul.f32 0.70710677, %v2943_v36  ;;  %v2949_v39 = vadd.f32 %v2826_v15, %v1600_v11 }
 0xced   :  { %v2204_v42 = vpop.f32.mrf.mxu1 }
 0xcee   :  { %v1628_v63 = vand.u32 2147483647, %v2946_v38  ;;  %v2953_v43 = vmul.f32 0.70710677, %v2949_v39  ;;  %vm1622_vm2 = vcmp.ge.f32.partialorder %v2946_v38, 0.0 }
 0xcef   :  { %v1603_v45 = vpop.f32.mrf.mxu1 }
 0xcf0   :  { %v1631_v46 = vmul.f32 0.3275911, %v1628_v63  ;;  %v1626_v47 = vand.u32 2147483647, %v2953_v43  ;;  %v2957_v48 = vadd.f32 %v2826_v15, %v1603_v45  ;;  %v1670_v55 = vsub.f32 0.0, %v1628_v63 }
 0xcf1   :  { %vm1620_vm3 = vcmp.ge.f32.partialorder %v2953_v43, 0.0 }
 0xcf2   :  { %v1634_v49 = vadd.f32 1.0, %v1631_v46  ;;  %v1629_v14 = vmul.f32 0.3275911, %v1626_v47  ;;  %v2960_v50 = vmul.f32 0.70710677, %v2957_v48  ;;  %v1668_v56 = vsub.f32 0.0, %v1626_v47 }
 0xcf3   :  { %v1673_v12 = vmul.f32 %v1670_v55, %v1628_v63  ;;  %v1625_v63 = vsel %vm1622_vm2, 1.0, %v2376_v40 }
 0xcf4   :  { %2330 = vrcp.f32 %v1634_v49  ;;  %v1632_v20 = vadd.f32 1.0, %v1629_v14  ;;  %v1627_v51 = vand.u32 2147483647, %v2960_v50  ;;  %v1671_v59 = vmul.f32 %v1668_v56, %v1626_v47 }
 0xcf5   :  { %v1678_v60 = vmul.f32 1.442695, %v1673_v12  ;;  %v1623_v14 = vsel %vm1620_vm3, 1.0, %v2376_v40  ;;  %vm1621_vm4 = vcmp.ge.f32.partialorder %v2960_v50, 0.0  ;;  %v1616_v56 = vmul.f32 0.5, %v2943_v36 }
 0xcf6   :  { %2332 = vrcp.f32 %v1632_v20  ;;  %v1630_v33 = vmul.f32 0.3275911, %v1627_v51  ;;  %v1669_v15 = vsub.f32 0.0, %v1627_v51  ;;  %v1674_v41 = vmul.f32 1.442695, %v1671_v59 }
 0xcf7   :  { %v1624_v38 = vsel %vm1621_vm4, 1.0, %v2376_v40  ;;  %v1614_v12 = vmul.f32 0.5, %v2949_v39 }
 0xcf8   :  { %v1633_v54 = vadd.f32 1.0, %v1630_v33  ;;  %v1672_v0 = vmul.f32 %v1669_v15, %v1627_v51 }
 0xcfa   :  { %2334 = vrcp.f32 %v1633_v54  ;;  %v1676_v24 = vmul.f32 1.442695, %v1672_v0 }
 0xcfb   :  { %2336 = vpow2.f32 %v1678_v60 }
 0xcfc   :  { %2338 = vpow2.f32 %v1674_v41 }
 0xcfd   :  { %2340 = vpow2.f32 %v1676_v24 }
 0xd01   :  { %v2331_v58 = vpop.eup %2330 }
 0xd02   :  { %v1643_v10 = vmul.f32 1.0614054, %v2331_v58 }
 0xd03   :  { %v2333_v31 = vpop.eup %2332 }
 0xd04   :  { %v1646_v8 = vadd.f32 -1.4531521, %v1643_v10  ;;  %v1641_v62 = vmul.f32 1.0614054, %v2333_v31 }
 0xd06   :  { %v1649_v2 = vmul.f32 %v2331_v58, %v1646_v8  ;;  %v1644_v3 = vadd.f32 -1.4531521, %v1641_v62 }
 0xd07   :  { %v2335_v4 = vpop.eup %2334 }
 0xd08   :  { %v1652_v26 = vadd.f32 1.4214138, %v1649_v2  ;;  %v1647_v1 = vmul.f32 %v2333_v31, %v1644_v3  ;;  %v1642_v5 = vmul.f32 1.0614054, %v2335_v4  ;;  %v2337_v34 = vpop.eup %2336 }
 0xd09   :  { %v2339_v35 = vpop.eup %2338 }
 0xd0a   :  { %v1655_v6 = vmul.f32 %v2331_v58, %v1652_v26  ;;  %v1650_v44 = vadd.f32 1.4214138, %v1647_v1  ;;  %v1645_v9 = vadd.f32 -1.4531521, %v1642_v5  ;;  %v2341_v47 = vpop.eup %2340 }
 0xd0c   :  { %v1658_v16 = vadd.f32 -0.28449672, %v1655_v6  ;;  %v1653_v13 = vmul.f32 %v2333_v31, %v1650_v44  ;;  %v1648_v18 = vmul.f32 %v2335_v4, %v1645_v9 }
 0xd0e   :  { %v1661_v25 = vmul.f32 %v2331_v58, %v1658_v16  ;;  %v1656_v27 = vadd.f32 -0.28449672, %v1653_v13  ;;  %v1651_v19 = vadd.f32 1.4214138, %v1648_v18 }
 0xd10   :  { %v1664_v21 = vadd.f32 0.2548296, %v1661_v25  ;;  %v1659_v22 = vmul.f32 %v2333_v31, %v1656_v27  ;;  %v1654_v57 = vmul.f32 %v2335_v4, %v1651_v19 }
 0xd12   :  { %v1667_v30 = vmul.f32 %v2331_v58, %v1664_v21  ;;  %v1662_v61 = vadd.f32 0.2548296, %v1659_v22  ;;  %v1657_v23 = vadd.f32 -0.28449672, %v1654_v57  ;;  %v1615_v58 = vmul.f32 0.5, %v2957_v48  ;;  %v2262_v21 = vld [vmem:[%s3042_s24 + $0x8] sm:$0xff]  }
 0xd13   :  { %v2263_v22 = vld [vmem:[%s3042_s24] sm:$0xff]   ;;  %2213 = vmatprep.subr.bf16.mxu1 %v2262_v21 }
 0xd14   :  { %v1682_v28 = vmul.f32 %v2337_v34, %v1667_v30  ;;  %v1665_v29 = vmul.f32 %v2333_v31, %v1662_v61  ;;  %v1660_v32 = vmul.f32 %v2335_v4, %v1657_v23  ;;  %2214 = vmatpush3.bf16.msra.mxu1 %v2262_v21 }
 0xd15   :  { %2215 = vmatprep.subr.bf16.mxu1 %v2263_v22 }
 0xd16   :  { %v1685_v7 = vsub.f32 1.0, %v1682_v28  ;;  %v1680_v11 = vmul.f32 %v2339_v35, %v1665_v29  ;;  %v1663_v42 = vadd.f32 0.2548296, %v1660_v32 }
 0xd18   :  { %v1683_v45 = vsub.f32 1.0, %v1680_v11  ;;  %v1666_v46 = vmul.f32 %v2335_v4, %v1663_v42  ;;  %v1688_v49 = vmul.f32 %v1685_v7, %v1625_v63  ;;  %2216 = vmatpush3.bf16.msra.mxu1 %v2263_v22  ;;  %v1980_v11 = vld [vmem:[%s3040_s22] ss:$0 sm:$0xff]  ;;  %s2377_s22 = smov [#allocation2]  }
 0xd19   :  { %v1981_v63 = vld [vmem:[%s3041_s23] ss:$0 sm:$0xff]  ;;  %s1904_s23 = sshll.u32 %s2377_s22, 4  ;;  %s1905_s23 = int_to_ptr.vmem [resolvable:$true] %s1904_s23 }
 0xd1a   :  { %v1686_v20 = vmul.f32 %v1683_v45, %v1623_v14  ;;  %v1681_v51 = vmul.f32 %v2341_v47, %v1666_v46  ;;  %v1691_v54 = vadd.f32 1.0, %v1688_v49  ;;  %s2348_s13 = scalar_lea.vmem %s1905_s23, 384  ;;  %p2353_p1 = scmp.lt.s32.totalorder %s1905_s23, %s1905_s23 }
 0xd1b   :  { %p2349_p0 = scmp.ne.s32.totalorder %s1905_s23, %s2348_s13  ;;  %p2354_p2 = scmp.lt.s32.totalorder %s2348_s13, %s2348_s13 }
 0xd1c   :  { %v1684_v33 = vsub.f32 1.0, %v1681_v51  ;;  %v1689_v55 = vadd.f32 1.0, %v1686_v20  ;;  %v1694_v15 = vmul.f32 %v1691_v54, %v1616_v56 }
 0xd1d   :  { %p2355_p3 = por %p2354_p2, %p2353_p1 }
 0xd1e   :  { %v1687_v43 = vmul.f32 %v1684_v33, %v1624_v38  ;;  %v1692_v10 = vmul.f32 %v1689_v55, %v1614_v12  ;;  %v1696_v8 = vpack.c.bf16 %v1694_v15, %v1694_v15 }
 0xd1f   :  { %p2356_p4 = pnand %p2355_p3, %p2349_p0 }
 0xd20   :  { %v1690_v59 = vadd.f32 1.0, %v1687_v43 }
 0xd22   :  { %v1693_v60 = vmul.f32 %v1690_v59, %v1615_v58 }
 0xd24   :  { %v1695_v31 = vpack.c.bf16 %v1693_v60, %v1692_v10 }
 0xd26   :  { %2209 = vmatprep.mubr.msk.bf16.mxu0 %vm146_vm1, %v1695_v31 }
 0xd27   :  { %2210 = vmatmul.mubr.msk.bf16.vlgmr.msra.gmra.mxu0 %vm146_vm1, %v1696_v8 }
 0xde7   :  { %v2211_v50 = vpop.f32.mrf.mxu0 }
 0xde8   :  { %v1746_v62 = vadd.f32 %v2211_v50, %v2867_v17 }
 0xde9   :  { %v1737_v40 = vpop.f32.mrf.mxu0 }
 0xdea   :  { %v1738_v36 = vadd.f32 %v2867_v17, %v1737_v40  ;;  %v1753_v3 = vadd.f32 %v1746_v62, %v2891_v53 }
 0xdeb   :  { %v2212_v41 = vpop.f32.mrf.mxu0 }
 0xdec   :  { %v1751_v39 = vadd.f32 %v1738_v36, %v2887_v52  ;;  %v1760_v1 = vsel %vm146_vm1, %v1753_v3, 0.0 }
 0xded   :  { %v1740_v48 = vpop.f32.mrf.mxu0 }
 0xdee   :  { %v1741_v0 = vadd.f32 %v2867_v17, %v1740_v48  ;;  %v1754_v2 = vsel %vm146_vm1, %v1751_v39, 0.0 }
 0xdef   :  { %1755 = vadd.xlane.f32.xlu1 %v1754_v2 }
 0xdf0   :  { %v1752_v4 = vadd.f32 %v1741_v0, %v2889_v37 }
 0xdf2   :  { %v1757_v26 = vsel %vm146_vm1, %v1752_v4, 0.0 }
 0xdf3   :  { %1758 = vadd.xlane.f32.xlu0 %v1757_v26  ;;  %1761 = vadd.xlane.f32.xlu1 %v1760_v1 }
 0xe78   :  { %v1756_v5 = vpop.xlane.xlu1 %1755 }
 0xe79   :  { %v1763_v24 = vmul.f32 0.03125, %v1756_v5 }
 0xe7b   :  { %v1766_v6 = vsub.f32 %v1751_v39, %v1763_v24 }
 0xe7c   :  { %v1759_v52 = vpop.xlane.xlu0 %1758  ;;  %v1762_v44 = vpop.xlane.xlu1 %1761 }
 0xe7d   :  { %v1764_v9 = vmul.f32 0.03125, %v1759_v52  ;;  %v1765_v17 = vmul.f32 0.03125, %v1762_v44  ;;  %v1769_v16 = vmul.f32 %v1766_v6, %v1766_v6 }
 0xe7f   :  { %v1767_v13 = vsub.f32 %v1752_v4, %v1764_v9  ;;  %v1768_v18 = vsub.f32 %v1753_v3, %v1765_v17  ;;  %v1772_v53 = vsel %vm146_vm1, %v1769_v16, 0.0 }
 0xe80   :  { %1773 = vadd.xlane.f32.xlu0 %v1772_v53 }
 0xe81   :  { %v1770_v37 = vmul.f32 %v1767_v13, %v1767_v13  ;;  %v1771_v25 = vmul.f32 %v1768_v18, %v1768_v18 }
 0xe83   :  { %v1775_v27 = vsel %vm146_vm1, %v1770_v37, 0.0  ;;  %v1778_v19 = vsel %vm146_vm1, %v1771_v25, 0.0 }
 0xe84   :  { %1776 = vadd.xlane.f32.xlu1 %v1775_v27  ;;  %1779 = vadd.xlane.f32.xlu0 %v1778_v19 }
 0xf09   :  { %v1774_v57 = vpop.xlane.xlu0 %1773 }
 0xf0a   :  { %v1781_v30 = vmul.f32 0.03125, %v1774_v57 }
 0xf0c   :  { %v1784_v34 = vadd.f32 1e-05, %v1781_v30 }
 0xf0d   :  { %v1780_v61 = vpop.xlane.xlu0 %1779  ;;  %v1777_v23 = vpop.xlane.xlu1 %1776 }
 0xf0e   :  { %2342 = vrsqrt.f32 %v1784_v34  ;;  %v1783_v28 = vmul.f32 0.03125, %v1780_v61  ;;  %v1782_v29 = vmul.f32 0.03125, %v1777_v23 }
 0xf10   :  { %v1786_v32 = vadd.f32 1e-05, %v1783_v28  ;;  %v1785_v35 = vadd.f32 1e-05, %v1782_v29 }
 0xf12   :  { %2344 = vrsqrt.f32 %v1786_v32 }
 0xf13   :  { %2346 = vrsqrt.f32 %v1785_v35 }
 0xf1b   :  { %v2343_v7 = vpop.eup %2342 }
 0xf1c   :  { %v1790_v42 = vmul.f32 %v2343_v7, %v1766_v6 }
 0xf1e   :  { %v1800_v45 = vmul.f32 %v1980_v11, %v1790_v42 }
 0xf1f   :  { %v2345_v46 = vpop.eup %2344 }
 0xf20   :  { %v2347_v47 = vpop.eup %2346  ;;  %v1792_v49 = vmul.f32 %v2345_v46, %v1768_v18  ;;  %v1810_v14 = vadd.f32 %v1981_v63, %v1800_v45 }
 0xf21   :  { %v1791_v20 = vmul.f32 %v2347_v47, %v1767_v13 }
 0xf22   :  { %1813 = vst.msk [vmem:[#allocation2] sm:$0xff] %vm146_vm1, %v1810_v14  ;;  %v1802_v51 = vmul.f32 %v1980_v11, %v1792_v49 }
 0xf23   :  { %v1801_v33 = vmul.f32 %v1980_v11, %v1791_v20 }
 0xf24   :  { %v1812_v54 = vadd.f32 %v1981_v63, %v1802_v51 }
 0xf25   :  { %v1811_v38 = vadd.f32 %v1981_v63, %v1801_v33 }
 0xf26   :  { %v1817_v55 = vpack.c.bf16 %v1812_v54, %v1812_v54  ;;  %1815 = vst.msk [vmem:[#allocation2 + $0x10] sm:$0xff] %vm146_vm1, %v1812_v54 }
 0xf27   :  { %1814 = vst.msk [vmem:[#allocation2 + $0x8] sm:$0xff] %vm146_vm1, %v1811_v38  ;;  %v1816_v43 = vpack.c.bf16 %v1811_v38, %v1810_v14 }
 0xf29   :  { %2217 = vmatprep.mubr.msk.bf16.mxu1 %vm146_vm1, %v1816_v43 }
 0xf2a   :  { %2218 = vmatmul.mubr.msk.bf16.vlgmr.msra.gmra.mxu1 %vm146_vm1, %v1817_v55 }
 0xf2b   :  { %2359 = shalt.err (!%p2356_p4)
}
 0xf2c   :  { %s2378_s14 = smov 128   ;;  %s2379_s11 = smov 8   ;;  %v1982_v56 = vld [vmem:[%s3043_s25] ss:$0 sm:$0xff]  ;;  %vm1895_vm1 = vcmask 64512  }
 0xf2d   :  { %1910 = dma.vmem_to_hbm [thread:$0]  %s1905_s23, 384, %s3044_s26, [#allocation3], %s2378_s14, %s2378_s14, %s2379_s11  }
 0xfea   :  { %v2219_v12 = vpop.f32.mrf.mxu1 }
 0xfeb   :  { %v1890_v58 = vadd.f32 %v2219_v12, %v1982_v56 }
 0xfec   :  { %v1881_v59 = vpop.f32.mrf.mxu1 }
 0xfed   :  { %1898 = vst.msk [vmem:[%s3045_s27 + $0x10] sm:$0xff] %vm1895_vm1, %v1890_v58  ;;  %v1882_v15 = vadd.f32 %v1982_v56, %v1881_v59 }
 0xfee   :  { %v2220_v10 = vpop.f32.mrf.mxu1 }
 0xfef   :  { %1896 = vst.msk [vmem:[%s3045_s27] sm:$0xff] %vm1895_vm1, %v1882_v15 }
 0xff0   :  { %v1884_v60 = vpop.f32.mrf.mxu1 }
 0xff1   :  { %v1885_v31 = vadd.f32 %v1982_v56, %v1884_v60 }
 0xff3   :  { %1897 = vst.msk [vmem:[%s3045_s27 + $0x8] sm:$0xff] %vm1895_vm1, %v1885_v31 }
 0xff4   :  { %2368 = dma.done.wait [#allocation3], 384  }
 0xff5   :  { %2369 = vsyncadd [#allocation3], 4294966912 }
 0xff6   :  { %1918 = vsyncpa [#allocation3], 1 }

</bundles_post_ra>
